<compile_context>
chip_gen: v6e
topology: v6e:2x2x1
jax: 0.10.0
libtpu: 0.0.40
codegen_flags: <defaults>
</compile_context>

<pallas_src>
import math
import functools

import jax
import jax.numpy as jnp
from jax.experimental import pallas as pl
from jax.experimental.pallas import tpu as pltpu

_EPS = 1e-5


# ----------------------------------------------------------------------------
# In-kernel helpers (traced inside Pallas kernels)
# ----------------------------------------------------------------------------

def _layernorm(x, g, b):
    mu = jnp.mean(x, axis=-1, keepdims=True)
    var = jnp.mean(jnp.square(x - mu), axis=-1, keepdims=True)
    return (x - mu) * jax.lax.rsqrt(var + _EPS) * g + b


def _silu(x):
    return x * jax.nn.sigmoid(x)


def _bf16_dot(a, b):
    # MXU-friendly: bf16 operands, f32 accumulation.
    return jnp.dot(a.astype(jnp.bfloat16), b.astype(jnp.bfloat16),
                   preferred_element_type=jnp.float32)


# ----------------------------------------------------------------------------
# Fused Pallas kernels (2 per conformer stage)
# ----------------------------------------------------------------------------

def _ffn_attn_kernel(x_ref,
                     f_g, f_b, f_w1, f_b1, f_w2, f_b2,
                     a_g, a_b, a_wi, a_bi, a_wo, a_bo,
                     o_ref, *, n_head):
    # Block = (Bb, S0, C): Bb MHA batch elements, each with the full length-S0 sequence.
    bb, s0, c = x_ref.shape
    dh = c // n_head
    scale = 1.0 / math.sqrt(dh)

    x = x_ref[...].astype(jnp.float32).reshape(bb * s0, c)

    # ---- FFN1:  x += 0.5 * W2(SiLU(W1(LN(x)))) ------------------------------
    h = _layernorm(x, f_g[...], f_b[...])
    h = _silu(_bf16_dot(h, f_w1[...]) + f_b1[...])
    x = x + 0.5 * (_bf16_dot(h, f_w2[...]) + f_b2[...])

    # ---- MHA (batch_first=False): sequence = S0 axis, batch = Bb axis -------
    h = _layernorm(x, a_g[...], a_b[...])
    qkv = _bf16_dot(h, a_wi[...]) + a_bi[...]                  # (Bb*S0, 3C) f32
    qkv3 = qkv.reshape(bb, s0, 3 * c)
    wo = a_wo[...]                                             # (C, C) bf16
    acc = jnp.zeros((bb * s0, c), jnp.float32)
    for hh in range(n_head):                                   # short static head loop;
        lo = hh * dh                                           # every dot batched over Bb
        q = (qkv3[:, :, lo:lo + dh] * scale).astype(jnp.bfloat16)
        k = qkv3[:, :, c + lo:c + lo + dh].astype(jnp.bfloat16)
        v = qkv3[:, :, 2 * c + lo:2 * c + lo + dh].astype(jnp.bfloat16)
        s = jnp.einsum("bid,bjd->bij", q, k, preferred_element_type=jnp.float32)
        s = s - jnp.max(s, axis=-1, keepdims=True)
        p = jnp.exp(s)
        p = p * pl.reciprocal(jnp.sum(p, axis=-1, keepdims=True), approx=True)
        oh = jnp.einsum("bij,bjd->bid", p.astype(jnp.bfloat16), v,
                        preferred_element_type=jnp.float32)    # (Bb, S0, dh)
        # fold the out-projection per head: concat(heads) @ Wo == sum_h oh @ Wo[h-rows]
        acc = acc + jnp.dot(oh.reshape(bb * s0, dh).astype(jnp.bfloat16),
                            wo[lo:lo + dh, :], preferred_element_type=jnp.float32)
    x = x + acc + a_bo[...]                                    # attention residual fused
    o_ref[...] = x.reshape(bb, s0, c).astype(o_ref.dtype)


def _ccm_ffn_post_kernel(x_ref, r_ref,
                         c_g, c_b, c_wa, c_ba, c_wb, c_bb, c_wd, c_bd,
                         c_bns, c_bnt, c_w2, c_b2,
                         f_g, f_b, f_w1, f_b1, f_w2, f_b2,
                         p_g, p_b, o_ref, *, ksize):
    # Block = (S1, Bs, C): Bs conv rows, conv axis (length S1) is the leading block dim,
    # so the depthwise-conv taps are cheap major-axis slices (no sublane relayout).
    s1, bs, c = x_ref.shape
    pad = (ksize - 1) // 2

    x = x_ref[...].astype(jnp.float32).reshape(s1 * bs, c)

    # ---- ConformerConvModule: LN -> pw1(GLU) -> depthwise conv -> BN+SiLU -> pw2 ----
    h = _layernorm(x, c_g[...], c_b[...])
    ha = _bf16_dot(h, c_wa[...]) + c_ba[...]
    hb = _bf16_dot(h, c_wb[...]) + c_bb[...]
    glu = ha * jax.nn.sigmoid(hb)                              # (S1*Bs, inner)
    inner = glu.shape[-1]

    g3 = glu.reshape(s1, bs, inner)
    zpad = jnp.zeros((pad, bs, inner), jnp.float32)
    gp = jnp.concatenate([zpad, g3, zpad], axis=0)             # zero 'same' padding
    wd = c_wd[...]                                             # (ksize, inner) f32
    acc = jnp.zeros((s1, bs, inner), jnp.float32)
    for k in range(ksize):                                     # 31 taps, static unroll
        acc = acc + gp[k:k + s1] * wd[k, :]
    y = acc.reshape(s1 * bs, inner) + c_bd[...]
    y = y * c_bns[...] + c_bnt[...]                            # eval-mode BatchNorm folded
    y = _silu(y)
    x = x + (_bf16_dot(y, c_w2[...]) + c_b2[...])              # conv-module residual fused

    # ---- FFN2:  x += 0.5 * W2(SiLU(W1(LN(x)))) ------------------------------
    h = _layernorm(x, f_g[...], f_b[...])
    h = _silu(_bf16_dot(h, f_w1[...]) + f_b1[...])
    x = x + 0.5 * (_bf16_dot(h, f_w2[...]) + f_b2[...])

    # ---- post-LayerNorm + outer TS residual ---------------------------------
    r = r_ref[...].astype(jnp.float32).reshape(s1 * bs, c)
    x = _layernorm(x, p_g[...], p_b[...]) + r
    o_ref[...] = x.reshape(s1, bs, c).astype(o_ref.dtype)


# ----------------------------------------------------------------------------
# Tiling helpers
# ----------------------------------------------------------------------------

def _num_tensorcores():
    try:
        info = pltpu.get_tpu_info()
    except Exception:
        return 2
    for name in ("num_cores", "core_count", "num_tensorcores", "tensor_cores",
                 "tensorcores_per_chip"):
        v = getattr(info, name, None)
        if isinstance(v, int) and v > 0:
            return v
    return 2  # conservative: keep >=2 parallel grid steps if we cannot tell


def _tile(total, unit_rows, min_steps, sub=1, max_rows=4096):
    # Largest divisor d of `total` such that:
    #   * d % sub == 0 or d == total   (TPU (8,128) block-dim constraint where relevant)
    #   * total // d >= min_steps      (keep both v7x TensorCores busy)
    #   * d * unit_rows <= max_rows    (bound per-step VMEM footprint)
    cands = [d for d in range(1, total + 1)
             if total % d == 0 and (d % sub == 0 or d == total)]
    for steps in (min_steps, 1):
        good = [d for d in cands if total // d >= steps and d * unit_rows <= max_rows]
        if good:
            return max(good)
    return min(cands) if cands else total


def _rep(shape):
    nd = len(shape)
    return pl.BlockSpec(shape, lambda *_: (0,) * nd)


# ----------------------------------------------------------------------------
# pallas_call wrappers
# ----------------------------------------------------------------------------

def ffn_attn_block(xT, p_ffm1, p_attn, n_head, bb):
    s1, s0, c = xT.shape
    n1 = p_ffm1["w1"].shape[1]
    blk = pl.BlockSpec((bb, s0, c), lambda j: (j, 0, 0))
    kern = functools.partial(_ffn_attn_kernel, n_head=n_head)
    return pl.pallas_call(
        kern,
        out_shape=jax.ShapeDtypeStruct((s1, s0, c), xT.dtype),
        grid=(s1 // bb,),
        in_specs=[blk,
                  _rep((1, c)), _rep((1, c)),
                  _rep((c, n1)), _rep((1, n1)),
                  _rep((n1, c)), _rep((1, c)),
                  _rep((1, c)), _rep((1, c)),
                  _rep((c, 3 * c)), _rep((1, 3 * c)),
                  _rep((c, c)), _rep((1, c))],
        out_specs=blk,
        compiler_params=pltpu.CompilerParams(dimension_semantics=("parallel",)),
    )(xT,
      p_ffm1["ln_g"], p_ffm1["ln_b"], p_ffm1["w1"], p_ffm1["b1"],
      p_ffm1["w2"], p_ffm1["b2"],
      p_attn["ln_g"], p_attn["ln_b"], p_attn["w_in"], p_attn["b_in"],
      p_attn["w_out"], p_attn["b_out"])


def ccm_ffn_post_block(y, x0, p_ccm, p_ffm2, post_g, post_b, bs, ksize=31):
    s1, s0, c = y.shape
    inner = p_ccm["w_a"].shape[1]
    n1 = p_ffm2["w1"].shape[1]
    blk = pl.BlockSpec((s1, bs, c), lambda i: (0, i, 0))
    kern = functools.partial(_ccm_ffn_post_kernel, ksize=ksize)
    return pl.pallas_call(
        kern,
        out_shape=jax.ShapeDtypeStruct((s1, s0, c), y.dtype),
        grid=(s0 // bs,),
        in_specs=[blk, blk,
                  _rep((1, c)), _rep((1, c)),
                  _rep((c, inner)), _rep((1, inner)),
                  _rep((c, inner)), _rep((1, inner)),
                  _rep((ksize, inner)), _rep((1, inner)),
                  _rep((1, inner)), _rep((1, inner)),
                  _rep((inner, c)), _rep((1, c)),
                  _rep((1, c)), _rep((1, c)),
                  _rep((c, n1)), _rep((1, n1)),
                  _rep((n1, c)), _rep((1, c)),
                  _rep((1, c)), _rep((1, c))],
        out_specs=blk,
        compiler_params=pltpu.CompilerParams(dimension_semantics=("parallel",)),
    )(y, x0,
      p_ccm["ln_g"], p_ccm["ln_b"], p_ccm["w_a"], p_ccm["b_a"],
      p_ccm["w_b"], p_ccm["b_b"], p_ccm["w_dw"], p_ccm["b_dw"],
      p_ccm["bn_scale"], p_ccm["bn_shift"], p_ccm["w_pw2"], p_ccm["b_pw2"],
      p_ffm2["ln_g"], p_ffm2["ln_b"], p_ffm2["w1"], p_ffm2["b1"],
      p_ffm2["w2"], p_ffm2["b2"],
      post_g, post_b)


# ----------------------------------------------------------------------------
# Conformer stage / TS block glue (2 fused kernels per stage)
# ----------------------------------------------------------------------------

def conformer_stage(xT, p, n_head=4, ksize=31):
    # xT: (S1, S0, C) kept attention-batch-major for the whole stage:
    #   S1 = MHA batch (= depthwise-conv length axis), S0 = attention sequence.
    # Returns conformer_block(x) + x in the same (S1, S0, C) layout (outer TS residual fused).
    s1, s0, c = xT.shape
    min_steps = 2 if _num_tensorcores() >= 2 else 1
    bb = _tile(s1, s0, min_steps, sub=1)     # rows per attention grid step = bb * s0
    bs = _tile(s0, s1, min_steps, sub=8)     # rows per conv grid step      = s1 * bs
    y = ffn_attn_block(xT, p["ffm1"], p["attn"], n_head, bb)
    return ccm_ffn_post_block(y, xT, p["ccm"], p["ffm2"], p["post_g"], p["post_b"],
                              bs, ksize)


def ts_conformer_block(x, params, n_head=4):
    # x: (b, c, t, f) exactly like the PyTorch module.
    b, c, t, f = x.shape
    # TODO(synk): these three boundary permutes stay in XLA (inherent to the (b,c,t,f)
    # API); the per-stage transposes around attention are eliminated by running each
    # stage in the attention-batch-major (S1, S0, C) layout end-to-end.
    xt = jnp.transpose(x, (2, 0, 3, 1)).reshape(t, b * f, c)            # (t,  b*f, c)
    xt = conformer_stage(xt, params["time"], n_head)                     # (t,  b*f, c)
    xf = jnp.transpose(xt.reshape(t, b, f, c), (2, 1, 0, 3)).reshape(f, b * t, c)
    xf = conformer_stage(xf, params["freq"], n_head)                     # (f,  b*t, c)
    return jnp.transpose(xf.reshape(f, b, t, c), (1, 3, 2, 0))           # (b, c, t, f)


# ----------------------------------------------------------------------------
# Deterministic synthetic parameters (mirror module shapes; not a checkpoint)
# ----------------------------------------------------------------------------

def init_conformer_params(key, dim, n_head=4, ffm_mult=4, exp=2, ksize=31):
    assert dim % n_head == 0
    inner = dim * exp
    ks = iter(jax.random.split(key, 48))

    def w(shape, scale=0.05):      # matmul weights -> bf16 (MXU operands)
        return (scale * jax.random.normal(next(ks), shape, jnp.float32)).astype(jnp.bfloat16)

    def v(shape, scale=0.01):      # biases / norm params -> f32
        return scale * jax.random.normal(next(ks), shape, jnp.float32)

    def ffm_p():
        return dict(ln_g=jnp.ones((1, dim), jnp.float32),
                    ln_b=jnp.zeros((1, dim), jnp.float32),
                    w1=w((dim, dim * ffm_mult)), b1=v((1, dim * ffm_mult)),
                    w2=w((dim * ffm_mult, dim)), b2=v((1, dim)))

    attn_p = dict(ln_g=jnp.ones((1, dim), jnp.float32),
                  ln_b=jnp.zeros((1, dim), jnp.float32),
                  w_in=w((dim, 3 * dim)), b_in=v((1, 3 * dim)),
                  w_out=w((dim, dim)), b_out=v((1, dim)))

    # BatchNorm1d (eval) with fresh running stats (mean=0, var=1) folded to scale/shift.
    bn_gamma = 1.0 + v((1, inner))
    bn_beta = v((1, inner))

    ccm_p = dict(ln_g=jnp.ones((1, dim), jnp.float32),
                 ln_b=jnp.zeros((1, dim), jnp.float32),
                 # pointwise conv1 weight pre-split into the two GLU halves
                 w_a=w((dim, inner)), b_a=v((1, inner)),
                 w_b=w((dim, inner)), b_b=v((1, inner)),
                 w_dw=0.05 * jax.random.normal(next(ks), (ksize, inner), jnp.float32),
                 b_dw=v((1, inner)),
                 bn_scale=bn_gamma / jnp.sqrt(1.0 + _EPS), bn_shift=bn_beta,
                 w_pw2=w((inner, dim)), b_pw2=v((1, dim)))

    return dict(ffm1=ffm_p(), attn=attn_p, ccm=ccm_p, ffm2=ffm_p(),
                post_g=jnp.ones((1, dim), jnp.float32),
                post_b=jnp.zeros((1, dim), jnp.float32))


def init_ts_params(key, num_channel, n_head=4):
    k1, k2 = jax.random.split(key)
    return dict(time=init_conformer_params(k1, num_channel, n_head),
                freq=init_conformer_params(k2, num_channel, n_head))


# ----------------------------------------------------------------------------
# Main
# ----------------------------------------------------------------------------

if __name__ == "__main__":
    key = jax.random.PRNGKey(0)
    kx, kp = jax.random.split(key)

    b, num_channel, t, f = 2, 32, 8, 8       # small shapes; dim divisible by n_head=4
    x = jax.random.normal(kx, (b, num_channel, t, f), jnp.float32)
    params = init_ts_params(kp, num_channel, n_head=4)

    fn = jax.jit(lambda xx: ts_conformer_block(xx, params, n_head=4))
    y = fn(x)
    jax.block_until_ready(y)

    assert y.shape == (b, num_channel, t, f)
    assert bool(jnp.all(jnp.isfinite(y)))
    print("KERNEL_OK")
</pallas_src>

<mosaic_0001>
module attributes {stable_mosaic.version = 11 : i64} {
  func.func @_ffn_attn_kernel(%arg0: i32, %arg1: memref<4x16x32xf32, #tpu.memory_space<vmem>>, %arg2: memref<1x32xf32, #tpu.memory_space<vmem>>, %arg3: memref<1x32xf32, #tpu.memory_space<vmem>>, %arg4: memref<32x128xbf16, #tpu.memory_space<vmem>>, %arg5: memref<1x128xf32, #tpu.memory_space<vmem>>, %arg6: memref<128x32xbf16, #tpu.memory_space<vmem>>, %arg7: memref<1x32xf32, #tpu.memory_space<vmem>>, %arg8: memref<1x32xf32, #tpu.memory_space<vmem>>, %arg9: memref<1x32xf32, #tpu.memory_space<vmem>>, %arg10: memref<32x96xbf16, #tpu.memory_space<vmem>>, %arg11: memref<1x96xf32, #tpu.memory_space<vmem>>, %arg12: memref<32x32xbf16, #tpu.memory_space<vmem>>, %arg13: memref<1x32xf32, #tpu.memory_space<vmem>>, %arg14: memref<4x16x32xf32, #tpu.memory_space<vmem>>) attributes {dimension_semantics = [#tpu.dimension_semantics<parallel>], iteration_bounds = array<i64: 2>, scalar_prefetch = 0 : i64, scratch_operands = 0 : i64, tpu.core_type = #tpu.core_type<tc>, window_params = [{transform_indices = @transform_0, window_bounds = array<i64: 4, 16, 32>}, {pipeline_mode = #tpu.pipeline_mode<synchronous>, transform_indices = @transform_1, window_bounds = array<i64: 1, 32>}, {pipeline_mode = #tpu.pipeline_mode<synchronous>, transform_indices = @transform_2, window_bounds = array<i64: 1, 32>}, {pipeline_mode = #tpu.pipeline_mode<synchronous>, transform_indices = @transform_3, window_bounds = array<i64: 32, 128>}, {pipeline_mode = #tpu.pipeline_mode<synchronous>, transform_indices = @transform_4, window_bounds = array<i64: 1, 128>}, {pipeline_mode = #tpu.pipeline_mode<synchronous>, transform_indices = @transform_5, window_bounds = array<i64: 128, 32>}, {pipeline_mode = #tpu.pipeline_mode<synchronous>, transform_indices = @transform_6, window_bounds = array<i64: 1, 32>}, {pipeline_mode = #tpu.pipeline_mode<synchronous>, transform_indices = @transform_7, window_bounds = array<i64: 1, 32>}, {pipeline_mode = #tpu.pipeline_mode<synchronous>, transform_indices = @transform_8, window_bounds = array<i64: 1, 32>}, {pipeline_mode = #tpu.pipeline_mode<synchronous>, transform_indices = @transform_9, window_bounds = array<i64: 32, 96>}, {pipeline_mode = #tpu.pipeline_mode<synchronous>, transform_indices = @transform_10, window_bounds = array<i64: 1, 96>}, {pipeline_mode = #tpu.pipeline_mode<synchronous>, transform_indices = @transform_11, window_bounds = array<i64: 32, 32>}, {pipeline_mode = #tpu.pipeline_mode<synchronous>, transform_indices = @transform_12, window_bounds = array<i64: 1, 32>}, {transform_indices = @transform_13, window_bounds = array<i64: 4, 16, 32>}]} {
    %c0 = arith.constant 0 : index
    %c0_0 = arith.constant 0 : index
    %c0_1 = arith.constant 0 : index
    %0 = vector.load %arg1[%c0, %c0_0, %c0_1] : memref<4x16x32xf32, #tpu.memory_space<vmem>>, vector<4x16x32xf32>
    %1 = vector.shape_cast %0 : vector<4x16x32xf32> to vector<64x32xf32>
    %c0_2 = arith.constant 0 : index
    %c0_3 = arith.constant 0 : index
    %2 = vector.load %arg2[%c0_2, %c0_3] : memref<1x32xf32, #tpu.memory_space<vmem>>, vector<1x32xf32>
    %c0_4 = arith.constant 0 : index
    %c0_5 = arith.constant 0 : index
    %3 = vector.load %arg3[%c0_4, %c0_5] : memref<1x32xf32, #tpu.memory_space<vmem>>, vector<1x32xf32>
    %cst = arith.constant dense<0.000000e+00> : vector<64xf32>
    %4 = vector.multi_reduction <add>, %1, %cst [1] : vector<64x32xf32> to vector<64xf32>
    %5 = vector.shape_cast %4 : vector<64xf32> to vector<64x1xf32>
    %cst_6 = arith.constant 3.200000e+01 : f32
    %6 = vector.broadcast %cst_6 : f32 to vector<64x1xf32>
    %7 = arith.divf %5, %6 : vector<64x1xf32>
    %8 = vector.broadcast %7 : vector<64x1xf32> to vector<64x32xf32>
    %9 = arith.subf %1, %8 : vector<64x32xf32>
    %10 = arith.mulf %9, %9 : vector<64x32xf32>
    %cst_7 = arith.constant dense<0.000000e+00> : vector<64xf32>
    %11 = vector.multi_reduction <add>, %10, %cst_7 [1] : vector<64x32xf32> to vector<64xf32>
    %12 = vector.shape_cast %11 : vector<64xf32> to vector<64x1xf32>
    %cst_8 = arith.constant 3.200000e+01 : f32
    %13 = vector.broadcast %cst_8 : f32 to vector<64x1xf32>
    %14 = arith.divf %12, %13 : vector<64x1xf32>
    %15 = vector.broadcast %7 : vector<64x1xf32> to vector<64x32xf32>
    %16 = arith.subf %1, %15 : vector<64x32xf32>
    %cst_9 = arith.constant 9.99999974E-6 : f32
    %17 = vector.broadcast %cst_9 : f32 to vector<64x1xf32>
    %18 = arith.addf %14, %17 : vector<64x1xf32>
    %19 = math.rsqrt %18 : vector<64x1xf32>
    %20 = vector.broadcast %19 : vector<64x1xf32> to vector<64x32xf32>
    %21 = arith.mulf %16, %20 : vector<64x32xf32>
    %22 = vector.broadcast %2 : vector<1x32xf32> to vector<64x32xf32>
    %23 = arith.mulf %21, %22 : vector<64x32xf32>
    %24 = vector.broadcast %3 : vector<1x32xf32> to vector<64x32xf32>
    %25 = arith.addf %23, %24 : vector<64x32xf32>
    %c0_10 = arith.constant 0 : index
    %c0_11 = arith.constant 0 : index
    %26 = vector.load %arg4[%c0_10, %c0_11] : memref<32x128xbf16, #tpu.memory_space<vmem>>, vector<32x128xbf16>
    %27 = arith.truncf %25 : vector<64x32xf32> to vector<64x32xbf16>
    %cst_12 = arith.constant dense<0.000000e+00> : vector<64x128xf32>
    %28 = tpu.matmul %27, %26, %cst_12 {dimension_numbers = #tpu.dot_dimension_numbers<[1], [0], [0], [1], [0, 0, 1, 1], [], []>} : vector<64x32xbf16>, vector<32x128xbf16>, vector<64x128xf32> -> vector<64x128xf32>
    %c0_13 = arith.constant 0 : index
    %c0_14 = arith.constant 0 : index
    %29 = vector.load %arg5[%c0_13, %c0_14] : memref<1x128xf32, #tpu.memory_space<vmem>>, vector<1x128xf32>
    %30 = vector.broadcast %29 : vector<1x128xf32> to vector<64x128xf32>
    %31 = arith.addf %28, %30 : vector<64x128xf32>
    %32 = arith.negf %31 : vector<64x128xf32>
    %33 = math.exp %32 : vector<64x128xf32>
    %cst_15 = arith.constant 1.000000e+00 : f32
    %34 = vector.broadcast %cst_15 : f32 to vector<64x128xf32>
    %35 = arith.addf %34, %33 : vector<64x128xf32>
    %36 = arith.divf %34, %35 : vector<64x128xf32>
    %37 = arith.mulf %31, %36 : vector<64x128xf32>
    %c0_16 = arith.constant 0 : index
    %c0_17 = arith.constant 0 : index
    %38 = vector.load %arg6[%c0_16, %c0_17] : memref<128x32xbf16, #tpu.memory_space<vmem>>, vector<128x32xbf16>
    %39 = arith.truncf %37 : vector<64x128xf32> to vector<64x128xbf16>
    %cst_18 = arith.constant dense<0.000000e+00> : vector<64x32xf32>
    %40 = tpu.matmul %39, %38, %cst_18 {dimension_numbers = #tpu.dot_dimension_numbers<[1], [0], [0], [1], [0, 0, 1, 1], [], []>} : vector<64x128xbf16>, vector<128x32xbf16>, vector<64x32xf32> -> vector<64x32xf32>
    %c0_19 = arith.constant 0 : index
    %c0_20 = arith.constant 0 : index
    %41 = vector.load %arg7[%c0_19, %c0_20] : memref<1x32xf32, #tpu.memory_space<vmem>>, vector<1x32xf32>
    %42 = vector.broadcast %41 : vector<1x32xf32> to vector<64x32xf32>
    %43 = arith.addf %40, %42 : vector<64x32xf32>
    %cst_21 = arith.constant 5.000000e-01 : f32
    %44 = vector.broadcast %cst_21 : f32 to vector<64x32xf32>
    %45 = arith.mulf %44, %43 : vector<64x32xf32>
    %46 = arith.addf %1, %45 : vector<64x32xf32>
    %c0_22 = arith.constant 0 : index
    %c0_23 = arith.constant 0 : index
    %47 = vector.load %arg8[%c0_22, %c0_23] : memref<1x32xf32, #tpu.memory_space<vmem>>, vector<1x32xf32>
    %c0_24 = arith.constant 0 : index
    %c0_25 = arith.constant 0 : index
    %48 = vector.load %arg9[%c0_24, %c0_25] : memref<1x32xf32, #tpu.memory_space<vmem>>, vector<1x32xf32>
    %cst_26 = arith.constant dense<0.000000e+00> : vector<64xf32>
    %49 = vector.multi_reduction <add>, %46, %cst_26 [1] : vector<64x32xf32> to vector<64xf32>
    %50 = vector.shape_cast %49 : vector<64xf32> to vector<64x1xf32>
    %cst_27 = arith.constant 3.200000e+01 : f32
    %51 = vector.broadcast %cst_27 : f32 to vector<64x1xf32>
    %52 = arith.divf %50, %51 : vector<64x1xf32>
    %53 = vector.broadcast %52 : vector<64x1xf32> to vector<64x32xf32>
    %54 = arith.subf %46, %53 : vector<64x32xf32>
    %55 = arith.mulf %54, %54 : vector<64x32xf32>
    %cst_28 = arith.constant dense<0.000000e+00> : vector<64xf32>
    %56 = vector.multi_reduction <add>, %55, %cst_28 [1] : vector<64x32xf32> to vector<64xf32>
    %57 = vector.shape_cast %56 : vector<64xf32> to vector<64x1xf32>
    %cst_29 = arith.constant 3.200000e+01 : f32
    %58 = vector.broadcast %cst_29 : f32 to vector<64x1xf32>
    %59 = arith.divf %57, %58 : vector<64x1xf32>
    %60 = vector.broadcast %52 : vector<64x1xf32> to vector<64x32xf32>
    %61 = arith.subf %46, %60 : vector<64x32xf32>
    %cst_30 = arith.constant 9.99999974E-6 : f32
    %62 = vector.broadcast %cst_30 : f32 to vector<64x1xf32>
    %63 = arith.addf %59, %62 : vector<64x1xf32>
    %64 = math.rsqrt %63 : vector<64x1xf32>
    %65 = vector.broadcast %64 : vector<64x1xf32> to vector<64x32xf32>
    %66 = arith.mulf %61, %65 : vector<64x32xf32>
    %67 = vector.broadcast %47 : vector<1x32xf32> to vector<64x32xf32>
    %68 = arith.mulf %66, %67 : vector<64x32xf32>
    %69 = vector.broadcast %48 : vector<1x32xf32> to vector<64x32xf32>
    %70 = arith.addf %68, %69 : vector<64x32xf32>
    %c0_31 = arith.constant 0 : index
    %c0_32 = arith.constant 0 : index
    %71 = vector.load %arg10[%c0_31, %c0_32] : memref<32x96xbf16, #tpu.memory_space<vmem>>, vector<32x96xbf16>
    %72 = arith.truncf %70 : vector<64x32xf32> to vector<64x32xbf16>
    %cst_33 = arith.constant dense<0.000000e+00> : vector<64x96xf32>
    %73 = tpu.matmul %72, %71, %cst_33 {dimension_numbers = #tpu.dot_dimension_numbers<[1], [0], [0], [1], [0, 0, 1, 1], [], []>} : vector<64x32xbf16>, vector<32x96xbf16>, vector<64x96xf32> -> vector<64x96xf32>
    %c0_34 = arith.constant 0 : index
    %c0_35 = arith.constant 0 : index
    %74 = vector.load %arg11[%c0_34, %c0_35] : memref<1x96xf32, #tpu.memory_space<vmem>>, vector<1x96xf32>
    %75 = vector.broadcast %74 : vector<1x96xf32> to vector<64x96xf32>
    %76 = arith.addf %73, %75 : vector<64x96xf32>
    %77 = vector.shape_cast %76 : vector<64x96xf32> to vector<4x16x96xf32>
    %c0_36 = arith.constant 0 : index
    %c0_37 = arith.constant 0 : index
    %78 = vector.load %arg12[%c0_36, %c0_37] : memref<32x32xbf16, #tpu.memory_space<vmem>>, vector<32x32xbf16>
    %cst_38 = arith.constant 0.000000e+00 : f32
    %79 = vector.broadcast %cst_38 : f32 to vector<64x32xf32>
    %80 = vector.extract_strided_slice %77 {offsets = [0, 0, 0], sizes = [4, 16, 8], strides = [1, 1, 1]} : vector<4x16x96xf32> to vector<4x16x8xf32>
    %cst_39 = arith.constant 0.353553385 : f32
    %81 = vector.broadcast %cst_39 : f32 to vector<4x16x8xf32>
    %82 = arith.mulf %80, %81 : vector<4x16x8xf32>
    %83 = arith.truncf %82 : vector<4x16x8xf32> to vector<4x16x8xbf16>
    %84 = vector.extract_strided_slice %77 {offsets = [0, 0, 32], sizes = [4, 16, 8], strides = [1, 1, 1]} : vector<4x16x96xf32> to vector<4x16x8xf32>
    %85 = arith.truncf %84 : vector<4x16x8xf32> to vector<4x16x8xbf16>
    %86 = vector.extract_strided_slice %77 {offsets = [0, 0, 64], sizes = [4, 16, 8], strides = [1, 1, 1]} : vector<4x16x96xf32> to vector<4x16x8xf32>
    %87 = arith.truncf %86 : vector<4x16x8xf32> to vector<4x16x8xbf16>
    "tpu.trace_start"() <{level = 10 : i32, message = "bid,bjd->bij"}> : () -> ()
    %cst_40 = arith.constant dense<0.000000e+00> : vector<4x16x16xf32>
    %88 = tpu.matmul %83, %85, %cst_40 {dimension_numbers = #tpu.dot_dimension_numbers<[2], [2], [1], [1], [0, 0, 0, 1, 1, 1], [0], [0]>} : vector<4x16x8xbf16>, vector<4x16x8xbf16>, vector<4x16x16xf32> -> vector<4x16x16xf32>
    "tpu.trace_stop"() : () -> ()
    %cst_41 = arith.constant dense<0xFF800000> : vector<4x16xf32>
    %89 = vector.multi_reduction <maximumf>, %88, %cst_41 [2] : vector<4x16x16xf32> to vector<4x16xf32>
    %90 = vector.shape_cast %89 : vector<4x16xf32> to vector<4x16x1xf32>
    %91 = vector.broadcast %90 : vector<4x16x1xf32> to vector<4x16x16xf32>
    %92 = arith.subf %88, %91 : vector<4x16x16xf32>
    %93 = math.exp %92 : vector<4x16x16xf32>
    %cst_42 = arith.constant dense<0.000000e+00> : vector<4x16xf32>
    %94 = vector.multi_reduction <add>, %93, %cst_42 [2] : vector<4x16x16xf32> to vector<4x16xf32>
    %95 = vector.shape_cast %94 : vector<4x16xf32> to vector<4x16x1xf32>
    %96 = tpu.reciprocal %95 {approx = true} : vector<4x16x1xf32> -> vector<4x16x1xf32>
    %97 = vector.broadcast %96 : vector<4x16x1xf32> to vector<4x16x16xf32>
    %98 = arith.mulf %93, %97 : vector<4x16x16xf32>
    %99 = arith.truncf %98 : vector<4x16x16xf32> to vector<4x16x16xbf16>
    "tpu.trace_start"() <{level = 10 : i32, message = "bij,bjd->bid"}> : () -> ()
    %cst_43 = arith.constant dense<0.000000e+00> : vector<4x16x8xf32>
    %100 = tpu.matmul %99, %87, %cst_43 {dimension_numbers = #tpu.dot_dimension_numbers<[2], [1], [1], [2], [0, 0, 0, 1, 1, 2], [0], [0]>} : vector<4x16x16xbf16>, vector<4x16x8xbf16>, vector<4x16x8xf32> -> vector<4x16x8xf32>
    "tpu.trace_stop"() : () -> ()
    %101 = vector.shape_cast %100 : vector<4x16x8xf32> to vector<64x8xf32>
    %102 = arith.truncf %101 : vector<64x8xf32> to vector<64x8xbf16>
    %103 = vector.extract_strided_slice %78 {offsets = [0, 0], sizes = [8, 32], strides = [1, 1]} : vector<32x32xbf16> to vector<8x32xbf16>
    %cst_44 = arith.constant dense<0.000000e+00> : vector<64x32xf32>
    %104 = tpu.matmul %102, %103, %cst_44 {dimension_numbers = #tpu.dot_dimension_numbers<[1], [0], [0], [1], [0, 0, 1, 1], [], []>} : vector<64x8xbf16>, vector<8x32xbf16>, vector<64x32xf32> -> vector<64x32xf32>
    %105 = arith.addf %79, %104 : vector<64x32xf32>
    %106 = vector.extract_strided_slice %77 {offsets = [0, 0, 8], sizes = [4, 16, 8], strides = [1, 1, 1]} : vector<4x16x96xf32> to vector<4x16x8xf32>
    %cst_45 = arith.constant 0.353553385 : f32
    %107 = vector.broadcast %cst_45 : f32 to vector<4x16x8xf32>
    %108 = arith.mulf %106, %107 : vector<4x16x8xf32>
    %109 = arith.truncf %108 : vector<4x16x8xf32> to vector<4x16x8xbf16>
    %110 = vector.extract_strided_slice %77 {offsets = [0, 0, 40], sizes = [4, 16, 8], strides = [1, 1, 1]} : vector<4x16x96xf32> to vector<4x16x8xf32>
    %111 = arith.truncf %110 : vector<4x16x8xf32> to vector<4x16x8xbf16>
    %112 = vector.extract_strided_slice %77 {offsets = [0, 0, 72], sizes = [4, 16, 8], strides = [1, 1, 1]} : vector<4x16x96xf32> to vector<4x16x8xf32>
    %113 = arith.truncf %112 : vector<4x16x8xf32> to vector<4x16x8xbf16>
    "tpu.trace_start"() <{level = 10 : i32, message = "bid,bjd->bij"}> : () -> ()
    %cst_46 = arith.constant dense<0.000000e+00> : vector<4x16x16xf32>
    %114 = tpu.matmul %109, %111, %cst_46 {dimension_numbers = #tpu.dot_dimension_numbers<[2], [2], [1], [1], [0, 0, 0, 1, 1, 1], [0], [0]>} : vector<4x16x8xbf16>, vector<4x16x8xbf16>, vector<4x16x16xf32> -> vector<4x16x16xf32>
    "tpu.trace_stop"() : () -> ()
    %cst_47 = arith.constant dense<0xFF800000> : vector<4x16xf32>
    %115 = vector.multi_reduction <maximumf>, %114, %cst_47 [2] : vector<4x16x16xf32> to vector<4x16xf32>
    %116 = vector.shape_cast %115 : vector<4x16xf32> to vector<4x16x1xf32>
    %117 = vector.broadcast %116 : vector<4x16x1xf32> to vector<4x16x16xf32>
    %118 = arith.subf %114, %117 : vector<4x16x16xf32>
    %119 = math.exp %118 : vector<4x16x16xf32>
    %cst_48 = arith.constant dense<0.000000e+00> : vector<4x16xf32>
    %120 = vector.multi_reduction <add>, %119, %cst_48 [2] : vector<4x16x16xf32> to vector<4x16xf32>
    %121 = vector.shape_cast %120 : vector<4x16xf32> to vector<4x16x1xf32>
    %122 = tpu.reciprocal %121 {approx = true} : vector<4x16x1xf32> -> vector<4x16x1xf32>
    %123 = vector.broadcast %122 : vector<4x16x1xf32> to vector<4x16x16xf32>
    %124 = arith.mulf %119, %123 : vector<4x16x16xf32>
    %125 = arith.truncf %124 : vector<4x16x16xf32> to vector<4x16x16xbf16>
    "tpu.trace_start"() <{level = 10 : i32, message = "bij,bjd->bid"}> : () -> ()
    %cst_49 = arith.constant dense<0.000000e+00> : vector<4x16x8xf32>
    %126 = tpu.matmul %125, %113, %cst_49 {dimension_numbers = #tpu.dot_dimension_numbers<[2], [1], [1], [2], [0, 0, 0, 1, 1, 2], [0], [0]>} : vector<4x16x16xbf16>, vector<4x16x8xbf16>, vector<4x16x8xf32> -> vector<4x16x8xf32>
    "tpu.trace_stop"() : () -> ()
    %127 = vector.shape_cast %126 : vector<4x16x8xf32> to vector<64x8xf32>
    %128 = arith.truncf %127 : vector<64x8xf32> to vector<64x8xbf16>
    %129 = vector.extract_strided_slice %78 {offsets = [8, 0], sizes = [8, 32], strides = [1, 1]} : vector<32x32xbf16> to vector<8x32xbf16>
    %cst_50 = arith.constant dense<0.000000e+00> : vector<64x32xf32>
    %130 = tpu.matmul %128, %129, %cst_50 {dimension_numbers = #tpu.dot_dimension_numbers<[1], [0], [0], [1], [0, 0, 1, 1], [], []>} : vector<64x8xbf16>, vector<8x32xbf16>, vector<64x32xf32> -> vector<64x32xf32>
    %131 = arith.addf %105, %130 : vector<64x32xf32>
    %132 = vector.extract_strided_slice %77 {offsets = [0, 0, 16], sizes = [4, 16, 8], strides = [1, 1, 1]} : vector<4x16x96xf32> to vector<4x16x8xf32>
    %cst_51 = arith.constant 0.353553385 : f32
    %133 = vector.broadcast %cst_51 : f32 to vector<4x16x8xf32>
    %134 = arith.mulf %132, %133 : vector<4x16x8xf32>
    %135 = arith.truncf %134 : vector<4x16x8xf32> to vector<4x16x8xbf16>
    %136 = vector.extract_strided_slice %77 {offsets = [0, 0, 48], sizes = [4, 16, 8], strides = [1, 1, 1]} : vector<4x16x96xf32> to vector<4x16x8xf32>
    %137 = arith.truncf %136 : vector<4x16x8xf32> to vector<4x16x8xbf16>
    %138 = vector.extract_strided_slice %77 {offsets = [0, 0, 80], sizes = [4, 16, 8], strides = [1, 1, 1]} : vector<4x16x96xf32> to vector<4x16x8xf32>
    %139 = arith.truncf %138 : vector<4x16x8xf32> to vector<4x16x8xbf16>
    "tpu.trace_start"() <{level = 10 : i32, message = "bid,bjd->bij"}> : () -> ()
    %cst_52 = arith.constant dense<0.000000e+00> : vector<4x16x16xf32>
    %140 = tpu.matmul %135, %137, %cst_52 {dimension_numbers = #tpu.dot_dimension_numbers<[2], [2], [1], [1], [0, 0, 0, 1, 1, 1], [0], [0]>} : vector<4x16x8xbf16>, vector<4x16x8xbf16>, vector<4x16x16xf32> -> vector<4x16x16xf32>
    "tpu.trace_stop"() : () -> ()
    %cst_53 = arith.constant dense<0xFF800000> : vector<4x16xf32>
    %141 = vector.multi_reduction <maximumf>, %140, %cst_53 [2] : vector<4x16x16xf32> to vector<4x16xf32>
    %142 = vector.shape_cast %141 : vector<4x16xf32> to vector<4x16x1xf32>
    %143 = vector.broadcast %142 : vector<4x16x1xf32> to vector<4x16x16xf32>
    %144 = arith.subf %140, %143 : vector<4x16x16xf32>
    %145 = math.exp %144 : vector<4x16x16xf32>
    %cst_54 = arith.constant dense<0.000000e+00> : vector<4x16xf32>
    %146 = vector.multi_reduction <add>, %145, %cst_54 [2] : vector<4x16x16xf32> to vector<4x16xf32>
    %147 = vector.shape_cast %146 : vector<4x16xf32> to vector<4x16x1xf32>
    %148 = tpu.reciprocal %147 {approx = true} : vector<4x16x1xf32> -> vector<4x16x1xf32>
    %149 = vector.broadcast %148 : vector<4x16x1xf32> to vector<4x16x16xf32>
    %150 = arith.mulf %145, %149 : vector<4x16x16xf32>
    %151 = arith.truncf %150 : vector<4x16x16xf32> to vector<4x16x16xbf16>
    "tpu.trace_start"() <{level = 10 : i32, message = "bij,bjd->bid"}> : () -> ()
    %cst_55 = arith.constant dense<0.000000e+00> : vector<4x16x8xf32>
    %152 = tpu.matmul %151, %139, %cst_55 {dimension_numbers = #tpu.dot_dimension_numbers<[2], [1], [1], [2], [0, 0, 0, 1, 1, 2], [0], [0]>} : vector<4x16x16xbf16>, vector<4x16x8xbf16>, vector<4x16x8xf32> -> vector<4x16x8xf32>
    "tpu.trace_stop"() : () -> ()
    %153 = vector.shape_cast %152 : vector<4x16x8xf32> to vector<64x8xf32>
    %154 = arith.truncf %153 : vector<64x8xf32> to vector<64x8xbf16>
    %155 = vector.extract_strided_slice %78 {offsets = [16, 0], sizes = [8, 32], strides = [1, 1]} : vector<32x32xbf16> to vector<8x32xbf16>
    %cst_56 = arith.constant dense<0.000000e+00> : vector<64x32xf32>
    %156 = tpu.matmul %154, %155, %cst_56 {dimension_numbers = #tpu.dot_dimension_numbers<[1], [0], [0], [1], [0, 0, 1, 1], [], []>} : vector<64x8xbf16>, vector<8x32xbf16>, vector<64x32xf32> -> vector<64x32xf32>
    %157 = arith.addf %131, %156 : vector<64x32xf32>
    %158 = vector.extract_strided_slice %77 {offsets = [0, 0, 24], sizes = [4, 16, 8], strides = [1, 1, 1]} : vector<4x16x96xf32> to vector<4x16x8xf32>
    %cst_57 = arith.constant 0.353553385 : f32
    %159 = vector.broadcast %cst_57 : f32 to vector<4x16x8xf32>
    %160 = arith.mulf %158, %159 : vector<4x16x8xf32>
    %161 = arith.truncf %160 : vector<4x16x8xf32> to vector<4x16x8xbf16>
    %162 = vector.extract_strided_slice %77 {offsets = [0, 0, 56], sizes = [4, 16, 8], strides = [1, 1, 1]} : vector<4x16x96xf32> to vector<4x16x8xf32>
    %163 = arith.truncf %162 : vector<4x16x8xf32> to vector<4x16x8xbf16>
    %164 = vector.extract_strided_slice %77 {offsets = [0, 0, 88], sizes = [4, 16, 8], strides = [1, 1, 1]} : vector<4x16x96xf32> to vector<4x16x8xf32>
    %165 = arith.truncf %164 : vector<4x16x8xf32> to vector<4x16x8xbf16>
    "tpu.trace_start"() <{level = 10 : i32, message = "bid,bjd->bij"}> : () -> ()
    %cst_58 = arith.constant dense<0.000000e+00> : vector<4x16x16xf32>
    %166 = tpu.matmul %161, %163, %cst_58 {dimension_numbers = #tpu.dot_dimension_numbers<[2], [2], [1], [1], [0, 0, 0, 1, 1, 1], [0], [0]>} : vector<4x16x8xbf16>, vector<4x16x8xbf16>, vector<4x16x16xf32> -> vector<4x16x16xf32>
    "tpu.trace_stop"() : () -> ()
    %cst_59 = arith.constant dense<0xFF800000> : vector<4x16xf32>
    %167 = vector.multi_reduction <maximumf>, %166, %cst_59 [2] : vector<4x16x16xf32> to vector<4x16xf32>
    %168 = vector.shape_cast %167 : vector<4x16xf32> to vector<4x16x1xf32>
    %169 = vector.broadcast %168 : vector<4x16x1xf32> to vector<4x16x16xf32>
    %170 = arith.subf %166, %169 : vector<4x16x16xf32>
    %171 = math.exp %170 : vector<4x16x16xf32>
    %cst_60 = arith.constant dense<0.000000e+00> : vector<4x16xf32>
    %172 = vector.multi_reduction <add>, %171, %cst_60 [2] : vector<4x16x16xf32> to vector<4x16xf32>
    %173 = vector.shape_cast %172 : vector<4x16xf32> to vector<4x16x1xf32>
    %174 = tpu.reciprocal %173 {approx = true} : vector<4x16x1xf32> -> vector<4x16x1xf32>
    %175 = vector.broadcast %174 : vector<4x16x1xf32> to vector<4x16x16xf32>
    %176 = arith.mulf %171, %175 : vector<4x16x16xf32>
    %177 = arith.truncf %176 : vector<4x16x16xf32> to vector<4x16x16xbf16>
    "tpu.trace_start"() <{level = 10 : i32, message = "bij,bjd->bid"}> : () -> ()
    %cst_61 = arith.constant dense<0.000000e+00> : vector<4x16x8xf32>
    %178 = tpu.matmul %177, %165, %cst_61 {dimension_numbers = #tpu.dot_dimension_numbers<[2], [1], [1], [2], [0, 0, 0, 1, 1, 2], [0], [0]>} : vector<4x16x16xbf16>, vector<4x16x8xbf16>, vector<4x16x8xf32> -> vector<4x16x8xf32>
    "tpu.trace_stop"() : () -> ()
    %179 = vector.shape_cast %178 : vector<4x16x8xf32> to vector<64x8xf32>
    %180 = arith.truncf %179 : vector<64x8xf32> to vector<64x8xbf16>
    %181 = vector.extract_strided_slice %78 {offsets = [24, 0], sizes = [8, 32], strides = [1, 1]} : vector<32x32xbf16> to vector<8x32xbf16>
    %cst_62 = arith.constant dense<0.000000e+00> : vector<64x32xf32>
    %182 = tpu.matmul %180, %181, %cst_62 {dimension_numbers = #tpu.dot_dimension_numbers<[1], [0], [0], [1], [0, 0, 1, 1], [], []>} : vector<64x8xbf16>, vector<8x32xbf16>, vector<64x32xf32> -> vector<64x32xf32>
    %183 = arith.addf %157, %182 : vector<64x32xf32>
    %184 = arith.addf %46, %183 : vector<64x32xf32>
    %c0_63 = arith.constant 0 : index
    %c0_64 = arith.constant 0 : index
    %185 = vector.load %arg13[%c0_63, %c0_64] : memref<1x32xf32, #tpu.memory_space<vmem>>, vector<1x32xf32>
    %186 = vector.broadcast %185 : vector<1x32xf32> to vector<64x32xf32>
    %187 = arith.addf %184, %186 : vector<64x32xf32>
    %188 = vector.shape_cast %187 : vector<64x32xf32> to vector<4x16x32xf32>
    %c0_65 = arith.constant 0 : index
    %c0_66 = arith.constant 0 : index
    %c0_67 = arith.constant 0 : index
    %189 = vector.load %arg14[%c0_65, %c0_66, %c0_67] : memref<4x16x32xf32, #tpu.memory_space<vmem>>, vector<4x16x32xf32>
    tpu.vector_store %arg14[%c0_65, %c0_66, %c0_67], %188 {strides = array<i32>} : memref<4x16x32xf32, #tpu.memory_space<vmem>>, vector<4x16x32xf32>,
    return
  }
  func.func @transform_0(%arg0: i32) -> (i32, i32, i32) {
    %c0_i32 = arith.constant 0 : i32
    %c0_i32_0 = arith.constant 0 : i32
    %c0_i32_1 = arith.constant 0 : i32
    return %arg0, %c0_i32, %c0_i32_0 : i32, i32, i32
  }
  func.func @transform_1(%arg0: i32) -> (i32, i32) {
    %c0_i32 = arith.constant 0 : i32
    %c0_i32_0 = arith.constant 0 : i32
    %c0_i32_1 = arith.constant 0 : i32
    return %c0_i32, %c0_i32_0 : i32, i32
  }
  func.func @transform_2(%arg0: i32) -> (i32, i32) {
    %c0_i32 = arith.constant 0 : i32
    %c0_i32_0 = arith.constant 0 : i32
    %c0_i32_1 = arith.constant 0 : i32
    return %c0_i32, %c0_i32_0 : i32, i32
  }
  func.func @transform_3(%arg0: i32) -> (i32, i32) {
    %c0_i32 = arith.constant 0 : i32
    %c0_i32_0 = arith.constant 0 : i32
    %c0_i32_1 = arith.constant 0 : i32
    return %c0_i32, %c0_i32_0 : i32, i32
  }
  func.func @transform_4(%arg0: i32) -> (i32, i32) {
    %c0_i32 = arith.constant 0 : i32
    %c0_i32_0 = arith.constant 0 : i32
    %c0_i32_1 = arith.constant 0 : i32
    return %c0_i32, %c0_i32_0 : i32, i32
  }
  func.func @transform_5(%arg0: i32) -> (i32, i32) {
    %c0_i32 = arith.constant 0 : i32
    %c0_i32_0 = arith.constant 0 : i32
    %c0_i32_1 = arith.constant 0 : i32
    return %c0_i32, %c0_i32_0 : i32, i32
  }
  func.func @transform_6(%arg0: i32) -> (i32, i32) {
    %c0_i32 = arith.constant 0 : i32
    %c0_i32_0 = arith.constant 0 : i32
    %c0_i32_1 = arith.constant 0 : i32
    return %c0_i32, %c0_i32_0 : i32, i32
  }
  func.func @transform_7(%arg0: i32) -> (i32, i32) {
    %c0_i32 = arith.constant 0 : i32
    %c0_i32_0 = arith.constant 0 : i32
    %c0_i32_1 = arith.constant 0 : i32
    return %c0_i32, %c0_i32_0 : i32, i32
  }
  func.func @transform_8(%arg0: i32) -> (i32, i32) {
    %c0_i32 = arith.constant 0 : i32
    %c0_i32_0 = arith.constant 0 : i32
    %c0_i32_1 = arith.constant 0 : i32
    return %c0_i32, %c0_i32_0 : i32, i32
  }
  func.func @transform_9(%arg0: i32) -> (i32, i32) {
    %c0_i32 = arith.constant 0 : i32
    %c0_i32_0 = arith.constant 0 : i32
    %c0_i32_1 = arith.constant 0 : i32
    return %c0_i32, %c0_i32_0 : i32, i32
  }
  func.func @transform_10(%arg0: i32) -> (i32, i32) {
    %c0_i32 = arith.constant 0 : i32
    %c0_i32_0 = arith.constant 0 : i32
    %c0_i32_1 = arith.constant 0 : i32
    return %c0_i32, %c0_i32_0 : i32, i32
  }
  func.func @transform_11(%arg0: i32) -> (i32, i32) {
    %c0_i32 = arith.constant 0 : i32
    %c0_i32_0 = arith.constant 0 : i32
    %c0_i32_1 = arith.constant 0 : i32
    return %c0_i32, %c0_i32_0 : i32, i32
  }
  func.func @transform_12(%arg0: i32) -> (i32, i32) {
    %c0_i32 = arith.constant 0 : i32
    %c0_i32_0 = arith.constant 0 : i32
    %c0_i32_1 = arith.constant 0 : i32
    return %c0_i32, %c0_i32_0 : i32, i32
  }
  func.func @transform_13(%arg0: i32) -> (i32, i32, i32) {
    %c0_i32 = arith.constant 0 : i32
    %c0_i32_0 = arith.constant 0 : i32
    %c0_i32_1 = arith.constant 0 : i32
    return %arg0, %c0_i32, %c0_i32_0 : i32, i32, i32
  }
}

module attributes {stable_mosaic.version = 11 : i64} {
  func.func @_ccm_ffn_post_kernel(%arg0: i32, %arg1: memref<8x8x32xf32, #tpu.memory_space<vmem>>, %arg2: memref<8x8x32xf32, #tpu.memory_space<vmem>>, %arg3: memref<1x32xf32, #tpu.memory_space<vmem>>, %arg4: memref<1x32xf32, #tpu.memory_space<vmem>>, %arg5: memref<32x64xbf16, #tpu.memory_space<vmem>>, %arg6: memref<1x64xf32, #tpu.memory_space<vmem>>, %arg7: memref<32x64xbf16, #tpu.memory_space<vmem>>, %arg8: memref<1x64xf32, #tpu.memory_space<vmem>>, %arg9: memref<31x64xf32, #tpu.memory_space<vmem>>, %arg10: memref<1x64xf32, #tpu.memory_space<vmem>>, %arg11: memref<1x64xf32, #tpu.memory_space<vmem>>, %arg12: memref<1x64xf32, #tpu.memory_space<vmem>>, %arg13: memref<64x32xbf16, #tpu.memory_space<vmem>>, %arg14: memref<1x32xf32, #tpu.memory_space<vmem>>, %arg15: memref<1x32xf32, #tpu.memory_space<vmem>>, %arg16: memref<1x32xf32, #tpu.memory_space<vmem>>, %arg17: memref<32x128xbf16, #tpu.memory_space<vmem>>, %arg18: memref<1x128xf32, #tpu.memory_space<vmem>>, %arg19: memref<128x32xbf16, #tpu.memory_space<vmem>>, %arg20: memref<1x32xf32, #tpu.memory_space<vmem>>, %arg21: memref<1x32xf32, #tpu.memory_space<vmem>>, %arg22: memref<1x32xf32, #tpu.memory_space<vmem>>, %arg23: memref<8x8x32xf32, #tpu.memory_space<vmem>>) attributes {dimension_semantics = [#tpu.dimension_semantics<parallel>], iteration_bounds = array<i64: 2>, scalar_prefetch = 0 : i64, scratch_operands = 0 : i64, tpu.core_type = #tpu.core_type<tc>, window_params = [{transform_indices = @transform_0, window_bounds = array<i64: 8, 8, 32>}, {transform_indices = @transform_1, window_bounds = array<i64: 8, 8, 32>}, {pipeline_mode = #tpu.pipeline_mode<synchronous>, transform_indices = @transform_2, window_bounds = array<i64: 1, 32>}, {pipeline_mode = #tpu.pipeline_mode<synchronous>, transform_indices = @transform_3, window_bounds = array<i64: 1, 32>}, {pipeline_mode = #tpu.pipeline_mode<synchronous>, transform_indices = @transform_4, window_bounds = array<i64: 32, 64>}, {pipeline_mode = #tpu.pipeline_mode<synchronous>, transform_indices = @transform_5, window_bounds = array<i64: 1, 64>}, {pipeline_mode = #tpu.pipeline_mode<synchronous>, transform_indices = @transform_6, window_bounds = array<i64: 32, 64>}, {pipeline_mode = #tpu.pipeline_mode<synchronous>, transform_indices = @transform_7, window_bounds = array<i64: 1, 64>}, {pipeline_mode = #tpu.pipeline_mode<synchronous>, transform_indices = @transform_8, window_bounds = array<i64: 31, 64>}, {pipeline_mode = #tpu.pipeline_mode<synchronous>, transform_indices = @transform_9, window_bounds = array<i64: 1, 64>}, {pipeline_mode = #tpu.pipeline_mode<synchronous>, transform_indices = @transform_10, window_bounds = array<i64: 1, 64>}, {pipeline_mode = #tpu.pipeline_mode<synchronous>, transform_indices = @transform_11, window_bounds = array<i64: 1, 64>}, {pipeline_mode = #tpu.pipeline_mode<synchronous>, transform_indices = @transform_12, window_bounds = array<i64: 64, 32>}, {pipeline_mode = #tpu.pipeline_mode<synchronous>, transform_indices = @transform_13, window_bounds = array<i64: 1, 32>}, {pipeline_mode = #tpu.pipeline_mode<synchronous>, transform_indices = @transform_14, window_bounds = array<i64: 1, 32>}, {pipeline_mode = #tpu.pipeline_mode<synchronous>, transform_indices = @transform_15, window_bounds = array<i64: 1, 32>}, {pipeline_mode = #tpu.pipeline_mode<synchronous>, transform_indices = @transform_16, window_bounds = array<i64: 32, 128>}, {pipeline_mode = #tpu.pipeline_mode<synchronous>, transform_indices = @transform_17, window_bounds = array<i64: 1, 128>}, {pipeline_mode = #tpu.pipeline_mode<synchronous>, transform_indices = @transform_18, window_bounds = array<i64: 128, 32>}, {pipeline_mode = #tpu.pipeline_mode<synchronous>, transform_indices = @transform_19, window_bounds = array<i64: 1, 32>}, {pipeline_mode = #tpu.pipeline_mode<synchronous>, transform_indices = @transform_20, window_bounds = array<i64: 1, 32>}, {pipeline_mode = #tpu.pipeline_mode<synchronous>, transform_indices = @transform_21, window_bounds = array<i64: 1, 32>}, {transform_indices = @transform_22, window_bounds = array<i64: 8, 8, 32>}]} {
    %c0 = arith.constant 0 : index
    %c0_0 = arith.constant 0 : index
    %c0_1 = arith.constant 0 : index
    %0 = vector.load %arg1[%c0, %c0_0, %c0_1] : memref<8x8x32xf32, #tpu.memory_space<vmem>>, vector<8x8x32xf32>
    %1 = vector.shape_cast %0 : vector<8x8x32xf32> to vector<64x32xf32>
    %c0_2 = arith.constant 0 : index
    %c0_3 = arith.constant 0 : index
    %2 = vector.load %arg3[%c0_2, %c0_3] : memref<1x32xf32, #tpu.memory_space<vmem>>, vector<1x32xf32>
    %c0_4 = arith.constant 0 : index
    %c0_5 = arith.constant 0 : index
    %3 = vector.load %arg4[%c0_4, %c0_5] : memref<1x32xf32, #tpu.memory_space<vmem>>, vector<1x32xf32>
    %cst = arith.constant dense<0.000000e+00> : vector<64xf32>
    %4 = vector.multi_reduction <add>, %1, %cst [1] : vector<64x32xf32> to vector<64xf32>
    %5 = vector.shape_cast %4 : vector<64xf32> to vector<64x1xf32>
    %cst_6 = arith.constant 3.200000e+01 : f32
    %6 = vector.broadcast %cst_6 : f32 to vector<64x1xf32>
    %7 = arith.divf %5, %6 : vector<64x1xf32>
    %8 = vector.broadcast %7 : vector<64x1xf32> to vector<64x32xf32>
    %9 = arith.subf %1, %8 : vector<64x32xf32>
    %10 = arith.mulf %9, %9 : vector<64x32xf32>
    %cst_7 = arith.constant dense<0.000000e+00> : vector<64xf32>
    %11 = vector.multi_reduction <add>, %10, %cst_7 [1] : vector<64x32xf32> to vector<64xf32>
    %12 = vector.shape_cast %11 : vector<64xf32> to vector<64x1xf32>
    %cst_8 = arith.constant 3.200000e+01 : f32
    %13 = vector.broadcast %cst_8 : f32 to vector<64x1xf32>
    %14 = arith.divf %12, %13 : vector<64x1xf32>
    %15 = vector.broadcast %7 : vector<64x1xf32> to vector<64x32xf32>
    %16 = arith.subf %1, %15 : vector<64x32xf32>
    %cst_9 = arith.constant 9.99999974E-6 : f32
    %17 = vector.broadcast %cst_9 : f32 to vector<64x1xf32>
    %18 = arith.addf %14, %17 : vector<64x1xf32>
    %19 = math.rsqrt %18 : vector<64x1xf32>
    %20 = vector.broadcast %19 : vector<64x1xf32> to vector<64x32xf32>
    %21 = arith.mulf %16, %20 : vector<64x32xf32>
    %22 = vector.broadcast %2 : vector<1x32xf32> to vector<64x32xf32>
    %23 = arith.mulf %21, %22 : vector<64x32xf32>
    %24 = vector.broadcast %3 : vector<1x32xf32> to vector<64x32xf32>
    %25 = arith.addf %23, %24 : vector<64x32xf32>
    %c0_10 = arith.constant 0 : index
    %c0_11 = arith.constant 0 : index
    %26 = vector.load %arg5[%c0_10, %c0_11] : memref<32x64xbf16, #tpu.memory_space<vmem>>, vector<32x64xbf16>
    %27 = arith.truncf %25 : vector<64x32xf32> to vector<64x32xbf16>
    %cst_12 = arith.constant dense<0.000000e+00> : vector<64x64xf32>
    %28 = tpu.matmul %27, %26, %cst_12 {dimension_numbers = #tpu.dot_dimension_numbers<[1], [0], [0], [1], [0, 0, 1, 1], [], []>} : vector<64x32xbf16>, vector<32x64xbf16>, vector<64x64xf32> -> vector<64x64xf32>
    %c0_13 = arith.constant 0 : index
    %c0_14 = arith.constant 0 : index
    %29 = vector.load %arg6[%c0_13, %c0_14] : memref<1x64xf32, #tpu.memory_space<vmem>>, vector<1x64xf32>
    %30 = vector.broadcast %29 : vector<1x64xf32> to vector<64x64xf32>
    %31 = arith.addf %28, %30 : vector<64x64xf32>
    %c0_15 = arith.constant 0 : index
    %c0_16 = arith.constant 0 : index
    %32 = vector.load %arg7[%c0_15, %c0_16] : memref<32x64xbf16, #tpu.memory_space<vmem>>, vector<32x64xbf16>
    %33 = arith.truncf %25 : vector<64x32xf32> to vector<64x32xbf16>
    %cst_17 = arith.constant dense<0.000000e+00> : vector<64x64xf32>
    %34 = tpu.matmul %33, %32, %cst_17 {dimension_numbers = #tpu.dot_dimension_numbers<[1], [0], [0], [1], [0, 0, 1, 1], [], []>} : vector<64x32xbf16>, vector<32x64xbf16>, vector<64x64xf32> -> vector<64x64xf32>
    %c0_18 = arith.constant 0 : index
    %c0_19 = arith.constant 0 : index
    %35 = vector.load %arg8[%c0_18, %c0_19] : memref<1x64xf32, #tpu.memory_space<vmem>>, vector<1x64xf32>
    %36 = vector.broadcast %35 : vector<1x64xf32> to vector<64x64xf32>
    %37 = arith.addf %34, %36 : vector<64x64xf32>
    %38 = arith.negf %37 : vector<64x64xf32>
    %39 = math.exp %38 : vector<64x64xf32>
    %cst_20 = arith.constant 1.000000e+00 : f32
    %40 = vector.broadcast %cst_20 : f32 to vector<64x64xf32>
    %41 = arith.addf %40, %39 : vector<64x64xf32>
    %42 = arith.divf %40, %41 : vector<64x64xf32>
    %43 = arith.mulf %31, %42 : vector<64x64xf32>
    %44 = vector.shape_cast %43 : vector<64x64xf32> to vector<8x8x64xf32>
    %cst_21 = arith.constant 0.000000e+00 : f32
    %45 = vector.broadcast %cst_21 : f32 to vector<15x8x64xf32>
    %46 = tpu.concatenate %45, %44, %45 in 0 : vector<15x8x64xf32>, vector<8x8x64xf32>, vector<15x8x64xf32> -> vector<38x8x64xf32>
    %c0_22 = arith.constant 0 : index
    %c0_23 = arith.constant 0 : index
    %47 = vector.load %arg9[%c0_22, %c0_23] : memref<31x64xf32, #tpu.memory_space<vmem>>, vector<31x64xf32>
    %cst_24 = arith.constant 0.000000e+00 : f32
    %48 = vector.broadcast %cst_24 : f32 to vector<8x8x64xf32>
    %49 = vector.extract_strided_slice %46 {offsets = [0, 0, 0], sizes = [8, 8, 64], strides = [1, 1, 1]} : vector<38x8x64xf32> to vector<8x8x64xf32>
    %50 = vector.extract_strided_slice %47 {offsets = [0, 0], sizes = [1, 64], strides = [1, 1]} : vector<31x64xf32> to vector<1x64xf32>
    %51 = vector.shape_cast %50 : vector<1x64xf32> to vector<64xf32>
    %52 = vector.shape_cast %51 : vector<64xf32> to vector<1x1x64xf32>
    %53 = vector.broadcast %52 : vector<1x1x64xf32> to vector<8x8x64xf32>
    %54 = arith.mulf %49, %53 : vector<8x8x64xf32>
    %55 = arith.addf %48, %54 : vector<8x8x64xf32>
    %56 = vector.extract_strided_slice %46 {offsets = [1, 0, 0], sizes = [8, 8, 64], strides = [1, 1, 1]} : vector<38x8x64xf32> to vector<8x8x64xf32>
    %57 = vector.extract_strided_slice %47 {offsets = [1, 0], sizes = [1, 64], strides = [1, 1]} : vector<31x64xf32> to vector<1x64xf32>
    %58 = vector.shape_cast %57 : vector<1x64xf32> to vector<64xf32>
    %59 = vector.shape_cast %58 : vector<64xf32> to vector<1x1x64xf32>
    %60 = vector.broadcast %59 : vector<1x1x64xf32> to vector<8x8x64xf32>
    %61 = arith.mulf %56, %60 : vector<8x8x64xf32>
    %62 = arith.addf %55, %61 : vector<8x8x64xf32>
    %63 = vector.extract_strided_slice %46 {offsets = [2, 0, 0], sizes = [8, 8, 64], strides = [1, 1, 1]} : vector<38x8x64xf32> to vector<8x8x64xf32>
    %64 = vector.extract_strided_slice %47 {offsets = [2, 0], sizes = [1, 64], strides = [1, 1]} : vector<31x64xf32> to vector<1x64xf32>
    %65 = vector.shape_cast %64 : vector<1x64xf32> to vector<64xf32>
    %66 = vector.shape_cast %65 : vector<64xf32> to vector<1x1x64xf32>
    %67 = vector.broadcast %66 : vector<1x1x64xf32> to vector<8x8x64xf32>
    %68 = arith.mulf %63, %67 : vector<8x8x64xf32>
    %69 = arith.addf %62, %68 : vector<8x8x64xf32>
    %70 = vector.extract_strided_slice %46 {offsets = [3, 0, 0], sizes = [8, 8, 64], strides = [1, 1, 1]} : vector<38x8x64xf32> to vector<8x8x64xf32>
    %71 = vector.extract_strided_slice %47 {offsets = [3, 0], sizes = [1, 64], strides = [1, 1]} : vector<31x64xf32> to vector<1x64xf32>
    %72 = vector.shape_cast %71 : vector<1x64xf32> to vector<64xf32>
    %73 = vector.shape_cast %72 : vector<64xf32> to vector<1x1x64xf32>
    %74 = vector.broadcast %73 : vector<1x1x64xf32> to vector<8x8x64xf32>
    %75 = arith.mulf %70, %74 : vector<8x8x64xf32>
    %76 = arith.addf %69, %75 : vector<8x8x64xf32>
    %77 = vector.extract_strided_slice %46 {offsets = [4, 0, 0], sizes = [8, 8, 64], strides = [1, 1, 1]} : vector<38x8x64xf32> to vector<8x8x64xf32>
    %78 = vector.extract_strided_slice %47 {offsets = [4, 0], sizes = [1, 64], strides = [1, 1]} : vector<31x64xf32> to vector<1x64xf32>
    %79 = vector.shape_cast %78 : vector<1x64xf32> to vector<64xf32>
    %80 = vector.shape_cast %79 : vector<64xf32> to vector<1x1x64xf32>
    %81 = vector.broadcast %80 : vector<1x1x64xf32> to vector<8x8x64xf32>
    %82 = arith.mulf %77, %81 : vector<8x8x64xf32>
    %83 = arith.addf %76, %82 : vector<8x8x64xf32>
    %84 = vector.extract_strided_slice %46 {offsets = [5, 0, 0], sizes = [8, 8, 64], strides = [1, 1, 1]} : vector<38x8x64xf32> to vector<8x8x64xf32>
    %85 = vector.extract_strided_slice %47 {offsets = [5, 0], sizes = [1, 64], strides = [1, 1]} : vector<31x64xf32> to vector<1x64xf32>
    %86 = vector.shape_cast %85 : vector<1x64xf32> to vector<64xf32>
    %87 = vector.shape_cast %86 : vector<64xf32> to vector<1x1x64xf32>
    %88 = vector.broadcast %87 : vector<1x1x64xf32> to vector<8x8x64xf32>
    %89 = arith.mulf %84, %88 : vector<8x8x64xf32>
    %90 = arith.addf %83, %89 : vector<8x8x64xf32>
    %91 = vector.extract_strided_slice %46 {offsets = [6, 0, 0], sizes = [8, 8, 64], strides = [1, 1, 1]} : vector<38x8x64xf32> to vector<8x8x64xf32>
    %92 = vector.extract_strided_slice %47 {offsets = [6, 0], sizes = [1, 64], strides = [1, 1]} : vector<31x64xf32> to vector<1x64xf32>
    %93 = vector.shape_cast %92 : vector<1x64xf32> to vector<64xf32>
    %94 = vector.shape_cast %93 : vector<64xf32> to vector<1x1x64xf32>
    %95 = vector.broadcast %94 : vector<1x1x64xf32> to vector<8x8x64xf32>
    %96 = arith.mulf %91, %95 : vector<8x8x64xf32>
    %97 = arith.addf %90, %96 : vector<8x8x64xf32>
    %98 = vector.extract_strided_slice %46 {offsets = [7, 0, 0], sizes = [8, 8, 64], strides = [1, 1, 1]} : vector<38x8x64xf32> to vector<8x8x64xf32>
    %99 = vector.extract_strided_slice %47 {offsets = [7, 0], sizes = [1, 64], strides = [1, 1]} : vector<31x64xf32> to vector<1x64xf32>
    %100 = vector.shape_cast %99 : vector<1x64xf32> to vector<64xf32>
    %101 = vector.shape_cast %100 : vector<64xf32> to vector<1x1x64xf32>
    %102 = vector.broadcast %101 : vector<1x1x64xf32> to vector<8x8x64xf32>
    %103 = arith.mulf %98, %102 : vector<8x8x64xf32>
    %104 = arith.addf %97, %103 : vector<8x8x64xf32>
    %105 = vector.extract_strided_slice %46 {offsets = [8, 0, 0], sizes = [8, 8, 64], strides = [1, 1, 1]} : vector<38x8x64xf32> to vector<8x8x64xf32>
    %106 = vector.extract_strided_slice %47 {offsets = [8, 0], sizes = [1, 64], strides = [1, 1]} : vector<31x64xf32> to vector<1x64xf32>
    %107 = vector.shape_cast %106 : vector<1x64xf32> to vector<64xf32>
    %108 = vector.shape_cast %107 : vector<64xf32> to vector<1x1x64xf32>
    %109 = vector.broadcast %108 : vector<1x1x64xf32> to vector<8x8x64xf32>
    %110 = arith.mulf %105, %109 : vector<8x8x64xf32>
    %111 = arith.addf %104, %110 : vector<8x8x64xf32>
    %112 = vector.extract_strided_slice %46 {offsets = [9, 0, 0], sizes = [8, 8, 64], strides = [1, 1, 1]} : vector<38x8x64xf32> to vector<8x8x64xf32>
    %113 = vector.extract_strided_slice %47 {offsets = [9, 0], sizes = [1, 64], strides = [1, 1]} : vector<31x64xf32> to vector<1x64xf32>
    %114 = vector.shape_cast %113 : vector<1x64xf32> to vector<64xf32>
    %115 = vector.shape_cast %114 : vector<64xf32> to vector<1x1x64xf32>
    %116 = vector.broadcast %115 : vector<1x1x64xf32> to vector<8x8x64xf32>
    %117 = arith.mulf %112, %116 : vector<8x8x64xf32>
    %118 = arith.addf %111, %117 : vector<8x8x64xf32>
    %119 = vector.extract_strided_slice %46 {offsets = [10, 0, 0], sizes = [8, 8, 64], strides = [1, 1, 1]} : vector<38x8x64xf32> to vector<8x8x64xf32>
    %120 = vector.extract_strided_slice %47 {offsets = [10, 0], sizes = [1, 64], strides = [1, 1]} : vector<31x64xf32> to vector<1x64xf32>
    %121 = vector.shape_cast %120 : vector<1x64xf32> to vector<64xf32>
    %122 = vector.shape_cast %121 : vector<64xf32> to vector<1x1x64xf32>
    %123 = vector.broadcast %122 : vector<1x1x64xf32> to vector<8x8x64xf32>
    %124 = arith.mulf %119, %123 : vector<8x8x64xf32>
    %125 = arith.addf %118, %124 : vector<8x8x64xf32>
    %126 = vector.extract_strided_slice %46 {offsets = [11, 0, 0], sizes = [8, 8, 64], strides = [1, 1, 1]} : vector<38x8x64xf32> to vector<8x8x64xf32>
    %127 = vector.extract_strided_slice %47 {offsets = [11, 0], sizes = [1, 64], strides = [1, 1]} : vector<31x64xf32> to vector<1x64xf32>
    %128 = vector.shape_cast %127 : vector<1x64xf32> to vector<64xf32>
    %129 = vector.shape_cast %128 : vector<64xf32> to vector<1x1x64xf32>
    %130 = vector.broadcast %129 : vector<1x1x64xf32> to vector<8x8x64xf32>
    %131 = arith.mulf %126, %130 : vector<8x8x64xf32>
    %132 = arith.addf %125, %131 : vector<8x8x64xf32>
    %133 = vector.extract_strided_slice %46 {offsets = [12, 0, 0], sizes = [8, 8, 64], strides = [1, 1, 1]} : vector<38x8x64xf32> to vector<8x8x64xf32>
    %134 = vector.extract_strided_slice %47 {offsets = [12, 0], sizes = [1, 64], strides = [1, 1]} : vector<31x64xf32> to vector<1x64xf32>
    %135 = vector.shape_cast %134 : vector<1x64xf32> to vector<64xf32>
    %136 = vector.shape_cast %135 : vector<64xf32> to vector<1x1x64xf32>
    %137 = vector.broadcast %136 : vector<1x1x64xf32> to vector<8x8x64xf32>
    %138 = arith.mulf %133, %137 : vector<8x8x64xf32>
    %139 = arith.addf %132, %138 : vector<8x8x64xf32>
    %140 = vector.extract_strided_slice %46 {offsets = [13, 0, 0], sizes = [8, 8, 64], strides = [1, 1, 1]} : vector<38x8x64xf32> to vector<8x8x64xf32>
    %141 = vector.extract_strided_slice %47 {offsets = [13, 0], sizes = [1, 64], strides = [1, 1]} : vector<31x64xf32> to vector<1x64xf32>
    %142 = vector.shape_cast %141 : vector<1x64xf32> to vector<64xf32>
    %143 = vector.shape_cast %142 : vector<64xf32> to vector<1x1x64xf32>
    %144 = vector.broadcast %143 : vector<1x1x64xf32> to vector<8x8x64xf32>
    %145 = arith.mulf %140, %144 : vector<8x8x64xf32>
    %146 = arith.addf %139, %145 : vector<8x8x64xf32>
    %147 = vector.extract_strided_slice %46 {offsets = [14, 0, 0], sizes = [8, 8, 64], strides = [1, 1, 1]} : vector<38x8x64xf32> to vector<8x8x64xf32>
    %148 = vector.extract_strided_slice %47 {offsets = [14, 0], sizes = [1, 64], strides = [1, 1]} : vector<31x64xf32> to vector<1x64xf32>
    %149 = vector.shape_cast %148 : vector<1x64xf32> to vector<64xf32>
    %150 = vector.shape_cast %149 : vector<64xf32> to vector<1x1x64xf32>
    %151 = vector.broadcast %150 : vector<1x1x64xf32> to vector<8x8x64xf32>
    %152 = arith.mulf %147, %151 : vector<8x8x64xf32>
    %153 = arith.addf %146, %152 : vector<8x8x64xf32>
    %154 = vector.extract_strided_slice %46 {offsets = [15, 0, 0], sizes = [8, 8, 64], strides = [1, 1, 1]} : vector<38x8x64xf32> to vector<8x8x64xf32>
    %155 = vector.extract_strided_slice %47 {offsets = [15, 0], sizes = [1, 64], strides = [1, 1]} : vector<31x64xf32> to vector<1x64xf32>
    %156 = vector.shape_cast %155 : vector<1x64xf32> to vector<64xf32>
    %157 = vector.shape_cast %156 : vector<64xf32> to vector<1x1x64xf32>
    %158 = vector.broadcast %157 : vector<1x1x64xf32> to vector<8x8x64xf32>
    %159 = arith.mulf %154, %158 : vector<8x8x64xf32>
    %160 = arith.addf %153, %159 : vector<8x8x64xf32>
    %161 = vector.extract_strided_slice %46 {offsets = [16, 0, 0], sizes = [8, 8, 64], strides = [1, 1, 1]} : vector<38x8x64xf32> to vector<8x8x64xf32>
    %162 = vector.extract_strided_slice %47 {offsets = [16, 0], sizes = [1, 64], strides = [1, 1]} : vector<31x64xf32> to vector<1x64xf32>
    %163 = vector.shape_cast %162 : vector<1x64xf32> to vector<64xf32>
    %164 = vector.shape_cast %163 : vector<64xf32> to vector<1x1x64xf32>
    %165 = vector.broadcast %164 : vector<1x1x64xf32> to vector<8x8x64xf32>
    %166 = arith.mulf %161, %165 : vector<8x8x64xf32>
    %167 = arith.addf %160, %166 : vector<8x8x64xf32>
    %168 = vector.extract_strided_slice %46 {offsets = [17, 0, 0], sizes = [8, 8, 64], strides = [1, 1, 1]} : vector<38x8x64xf32> to vector<8x8x64xf32>
    %169 = vector.extract_strided_slice %47 {offsets = [17, 0], sizes = [1, 64], strides = [1, 1]} : vector<31x64xf32> to vector<1x64xf32>
    %170 = vector.shape_cast %169 : vector<1x64xf32> to vector<64xf32>
    %171 = vector.shape_cast %170 : vector<64xf32> to vector<1x1x64xf32>
    %172 = vector.broadcast %171 : vector<1x1x64xf32> to vector<8x8x64xf32>
    %173 = arith.mulf %168, %172 : vector<8x8x64xf32>
    %174 = arith.addf %167, %173 : vector<8x8x64xf32>
    %175 = vector.extract_strided_slice %46 {offsets = [18, 0, 0], sizes = [8, 8, 64], strides = [1, 1, 1]} : vector<38x8x64xf32> to vector<8x8x64xf32>
    %176 = vector.extract_strided_slice %47 {offsets = [18, 0], sizes = [1, 64], strides = [1, 1]} : vector<31x64xf32> to vector<1x64xf32>
    %177 = vector.shape_cast %176 : vector<1x64xf32> to vector<64xf32>
    %178 = vector.shape_cast %177 : vector<64xf32> to vector<1x1x64xf32>
    %179 = vector.broadcast %178 : vector<1x1x64xf32> to vector<8x8x64xf32>
    %180 = arith.mulf %175, %179 : vector<8x8x64xf32>
    %181 = arith.addf %174, %180 : vector<8x8x64xf32>
    %182 = vector.extract_strided_slice %46 {offsets = [19, 0, 0], sizes = [8, 8, 64], strides = [1, 1, 1]} : vector<38x8x64xf32> to vector<8x8x64xf32>
    %183 = vector.extract_strided_slice %47 {offsets = [19, 0], sizes = [1, 64], strides = [1, 1]} : vector<31x64xf32> to vector<1x64xf32>
    %184 = vector.shape_cast %183 : vector<1x64xf32> to vector<64xf32>
    %185 = vector.shape_cast %184 : vector<64xf32> to vector<1x1x64xf32>
    %186 = vector.broadcast %185 : vector<1x1x64xf32> to vector<8x8x64xf32>
    %187 = arith.mulf %182, %186 : vector<8x8x64xf32>
    %188 = arith.addf %181, %187 : vector<8x8x64xf32>
    %189 = vector.extract_strided_slice %46 {offsets = [20, 0, 0], sizes = [8, 8, 64], strides = [1, 1, 1]} : vector<38x8x64xf32> to vector<8x8x64xf32>
    %190 = vector.extract_strided_slice %47 {offsets = [20, 0], sizes = [1, 64], strides = [1, 1]} : vector<31x64xf32> to vector<1x64xf32>
    %191 = vector.shape_cast %190 : vector<1x64xf32> to vector<64xf32>
    %192 = vector.shape_cast %191 : vector<64xf32> to vector<1x1x64xf32>
    %193 = vector.broadcast %192 : vector<1x1x64xf32> to vector<8x8x64xf32>
    %194 = arith.mulf %189, %193 : vector<8x8x64xf32>
    %195 = arith.addf %188, %194 : vector<8x8x64xf32>
    %196 = vector.extract_strided_slice %46 {offsets = [21, 0, 0], sizes = [8, 8, 64], strides = [1, 1, 1]} : vector<38x8x64xf32> to vector<8x8x64xf32>
    %197 = vector.extract_strided_slice %47 {offsets = [21, 0], sizes = [1, 64], strides = [1, 1]} : vector<31x64xf32> to vector<1x64xf32>
    %198 = vector.shape_cast %197 : vector<1x64xf32> to vector<64xf32>
    %199 = vector.shape_cast %198 : vector<64xf32> to vector<1x1x64xf32>
    %200 = vector.broadcast %199 : vector<1x1x64xf32> to vector<8x8x64xf32>
    %201 = arith.mulf %196, %200 : vector<8x8x64xf32>
    %202 = arith.addf %195, %201 : vector<8x8x64xf32>
    %203 = vector.extract_strided_slice %46 {offsets = [22, 0, 0], sizes = [8, 8, 64], strides = [1, 1, 1]} : vector<38x8x64xf32> to vector<8x8x64xf32>
    %204 = vector.extract_strided_slice %47 {offsets = [22, 0], sizes = [1, 64], strides = [1, 1]} : vector<31x64xf32> to vector<1x64xf32>
    %205 = vector.shape_cast %204 : vector<1x64xf32> to vector<64xf32>
    %206 = vector.shape_cast %205 : vector<64xf32> to vector<1x1x64xf32>
    %207 = vector.broadcast %206 : vector<1x1x64xf32> to vector<8x8x64xf32>
    %208 = arith.mulf %203, %207 : vector<8x8x64xf32>
    %209 = arith.addf %202, %208 : vector<8x8x64xf32>
    %210 = vector.extract_strided_slice %46 {offsets = [23, 0, 0], sizes = [8, 8, 64], strides = [1, 1, 1]} : vector<38x8x64xf32> to vector<8x8x64xf32>
    %211 = vector.extract_strided_slice %47 {offsets = [23, 0], sizes = [1, 64], strides = [1, 1]} : vector<31x64xf32> to vector<1x64xf32>
    %212 = vector.shape_cast %211 : vector<1x64xf32> to vector<64xf32>
    %213 = vector.shape_cast %212 : vector<64xf32> to vector<1x1x64xf32>
    %214 = vector.broadcast %213 : vector<1x1x64xf32> to vector<8x8x64xf32>
    %215 = arith.mulf %210, %214 : vector<8x8x64xf32>
    %216 = arith.addf %209, %215 : vector<8x8x64xf32>
    %217 = vector.extract_strided_slice %46 {offsets = [24, 0, 0], sizes = [8, 8, 64], strides = [1, 1, 1]} : vector<38x8x64xf32> to vector<8x8x64xf32>
    %218 = vector.extract_strided_slice %47 {offsets = [24, 0], sizes = [1, 64], strides = [1, 1]} : vector<31x64xf32> to vector<1x64xf32>
    %219 = vector.shape_cast %218 : vector<1x64xf32> to vector<64xf32>
    %220 = vector.shape_cast %219 : vector<64xf32> to vector<1x1x64xf32>
    %221 = vector.broadcast %220 : vector<1x1x64xf32> to vector<8x8x64xf32>
    %222 = arith.mulf %217, %221 : vector<8x8x64xf32>
    %223 = arith.addf %216, %222 : vector<8x8x64xf32>
    %224 = vector.extract_strided_slice %46 {offsets = [25, 0, 0], sizes = [8, 8, 64], strides = [1, 1, 1]} : vector<38x8x64xf32> to vector<8x8x64xf32>
    %225 = vector.extract_strided_slice %47 {offsets = [25, 0], sizes = [1, 64], strides = [1, 1]} : vector<31x64xf32> to vector<1x64xf32>
    %226 = vector.shape_cast %225 : vector<1x64xf32> to vector<64xf32>
    %227 = vector.shape_cast %226 : vector<64xf32> to vector<1x1x64xf32>
    %228 = vector.broadcast %227 : vector<1x1x64xf32> to vector<8x8x64xf32>
    %229 = arith.mulf %224, %228 : vector<8x8x64xf32>
    %230 = arith.addf %223, %229 : vector<8x8x64xf32>
    %231 = vector.extract_strided_slice %46 {offsets = [26, 0, 0], sizes = [8, 8, 64], strides = [1, 1, 1]} : vector<38x8x64xf32> to vector<8x8x64xf32>
    %232 = vector.extract_strided_slice %47 {offsets = [26, 0], sizes = [1, 64], strides = [1, 1]} : vector<31x64xf32> to vector<1x64xf32>
    %233 = vector.shape_cast %232 : vector<1x64xf32> to vector<64xf32>
    %234 = vector.shape_cast %233 : vector<64xf32> to vector<1x1x64xf32>
    %235 = vector.broadcast %234 : vector<1x1x64xf32> to vector<8x8x64xf32>
    %236 = arith.mulf %231, %235 : vector<8x8x64xf32>
    %237 = arith.addf %230, %236 : vector<8x8x64xf32>
    %238 = vector.extract_strided_slice %46 {offsets = [27, 0, 0], sizes = [8, 8, 64], strides = [1, 1, 1]} : vector<38x8x64xf32> to vector<8x8x64xf32>
    %239 = vector.extract_strided_slice %47 {offsets = [27, 0], sizes = [1, 64], strides = [1, 1]} : vector<31x64xf32> to vector<1x64xf32>
    %240 = vector.shape_cast %239 : vector<1x64xf32> to vector<64xf32>
    %241 = vector.shape_cast %240 : vector<64xf32> to vector<1x1x64xf32>
    %242 = vector.broadcast %241 : vector<1x1x64xf32> to vector<8x8x64xf32>
    %243 = arith.mulf %238, %242 : vector<8x8x64xf32>
    %244 = arith.addf %237, %243 : vector<8x8x64xf32>
    %245 = vector.extract_strided_slice %46 {offsets = [28, 0, 0], sizes = [8, 8, 64], strides = [1, 1, 1]} : vector<38x8x64xf32> to vector<8x8x64xf32>
    %246 = vector.extract_strided_slice %47 {offsets = [28, 0], sizes = [1, 64], strides = [1, 1]} : vector<31x64xf32> to vector<1x64xf32>
    %247 = vector.shape_cast %246 : vector<1x64xf32> to vector<64xf32>
    %248 = vector.shape_cast %247 : vector<64xf32> to vector<1x1x64xf32>
    %249 = vector.broadcast %248 : vector<1x1x64xf32> to vector<8x8x64xf32>
    %250 = arith.mulf %245, %249 : vector<8x8x64xf32>
    %251 = arith.addf %244, %250 : vector<8x8x64xf32>
    %252 = vector.extract_strided_slice %46 {offsets = [29, 0, 0], sizes = [8, 8, 64], strides = [1, 1, 1]} : vector<38x8x64xf32> to vector<8x8x64xf32>
    %253 = vector.extract_strided_slice %47 {offsets = [29, 0], sizes = [1, 64], strides = [1, 1]} : vector<31x64xf32> to vector<1x64xf32>
    %254 = vector.shape_cast %253 : vector<1x64xf32> to vector<64xf32>
    %255 = vector.shape_cast %254 : vector<64xf32> to vector<1x1x64xf32>
    %256 = vector.broadcast %255 : vector<1x1x64xf32> to vector<8x8x64xf32>
    %257 = arith.mulf %252, %256 : vector<8x8x64xf32>
    %258 = arith.addf %251, %257 : vector<8x8x64xf32>
    %259 = vector.extract_strided_slice %46 {offsets = [30, 0, 0], sizes = [8, 8, 64], strides = [1, 1, 1]} : vector<38x8x64xf32> to vector<8x8x64xf32>
    %260 = vector.extract_strided_slice %47 {offsets = [30, 0], sizes = [1, 64], strides = [1, 1]} : vector<31x64xf32> to vector<1x64xf32>
    %261 = vector.shape_cast %260 : vector<1x64xf32> to vector<64xf32>
    %262 = vector.shape_cast %261 : vector<64xf32> to vector<1x1x64xf32>
    %263 = vector.broadcast %262 : vector<1x1x64xf32> to vector<8x8x64xf32>
    %264 = arith.mulf %259, %263 : vector<8x8x64xf32>
    %265 = arith.addf %258, %264 : vector<8x8x64xf32>
    %266 = vector.shape_cast %265 : vector<8x8x64xf32> to vector<64x64xf32>
    %c0_25 = arith.constant 0 : index
    %c0_26 = arith.constant 0 : index
    %267 = vector.load %arg10[%c0_25, %c0_26] : memref<1x64xf32, #tpu.memory_space<vmem>>, vector<1x64xf32>
    %268 = vector.broadcast %267 : vector<1x64xf32> to vector<64x64xf32>
    %269 = arith.addf %266, %268 : vector<64x64xf32>
    %c0_27 = arith.constant 0 : index
    %c0_28 = arith.constant 0 : index
    %270 = vector.load %arg11[%c0_27, %c0_28] : memref<1x64xf32, #tpu.memory_space<vmem>>, vector<1x64xf32>
    %271 = vector.broadcast %270 : vector<1x64xf32> to vector<64x64xf32>
    %272 = arith.mulf %269, %271 : vector<64x64xf32>
    %c0_29 = arith.constant 0 : index
    %c0_30 = arith.constant 0 : index
    %273 = vector.load %arg12[%c0_29, %c0_30] : memref<1x64xf32, #tpu.memory_space<vmem>>, vector<1x64xf32>
    %274 = vector.broadcast %273 : vector<1x64xf32> to vector<64x64xf32>
    %275 = arith.addf %272, %274 : vector<64x64xf32>
    %276 = arith.negf %275 : vector<64x64xf32>
    %277 = math.exp %276 : vector<64x64xf32>
    %cst_31 = arith.constant 1.000000e+00 : f32
    %278 = vector.broadcast %cst_31 : f32 to vector<64x64xf32>
    %279 = arith.addf %278, %277 : vector<64x64xf32>
    %280 = arith.divf %278, %279 : vector<64x64xf32>
    %281 = arith.mulf %275, %280 : vector<64x64xf32>
    %c0_32 = arith.constant 0 : index
    %c0_33 = arith.constant 0 : index
    %282 = vector.load %arg13[%c0_32, %c0_33] : memref<64x32xbf16, #tpu.memory_space<vmem>>, vector<64x32xbf16>
    %283 = arith.truncf %281 : vector<64x64xf32> to vector<64x64xbf16>
    %cst_34 = arith.constant dense<0.000000e+00> : vector<64x32xf32>
    %284 = tpu.matmul %283, %282, %cst_34 {dimension_numbers = #tpu.dot_dimension_numbers<[1], [0], [0], [1], [0, 0, 1, 1], [], []>} : vector<64x64xbf16>, vector<64x32xbf16>, vector<64x32xf32> -> vector<64x32xf32>
    %c0_35 = arith.constant 0 : index
    %c0_36 = arith.constant 0 : index
    %285 = vector.load %arg14[%c0_35, %c0_36] : memref<1x32xf32, #tpu.memory_space<vmem>>, vector<1x32xf32>
    %286 = vector.broadcast %285 : vector<1x32xf32> to vector<64x32xf32>
    %287 = arith.addf %284, %286 : vector<64x32xf32>
    %288 = arith.addf %1, %287 : vector<64x32xf32>
    %c0_37 = arith.constant 0 : index
    %c0_38 = arith.constant 0 : index
    %289 = vector.load %arg15[%c0_37, %c0_38] : memref<1x32xf32, #tpu.memory_space<vmem>>, vector<1x32xf32>
    %c0_39 = arith.constant 0 : index
    %c0_40 = arith.constant 0 : index
    %290 = vector.load %arg16[%c0_39, %c0_40] : memref<1x32xf32, #tpu.memory_space<vmem>>, vector<1x32xf32>
    %cst_41 = arith.constant dense<0.000000e+00> : vector<64xf32>
    %291 = vector.multi_reduction <add>, %288, %cst_41 [1] : vector<64x32xf32> to vector<64xf32>
    %292 = vector.shape_cast %291 : vector<64xf32> to vector<64x1xf32>
    %cst_42 = arith.constant 3.200000e+01 : f32
    %293 = vector.broadcast %cst_42 : f32 to vector<64x1xf32>
    %294 = arith.divf %292, %293 : vector<64x1xf32>
    %295 = vector.broadcast %294 : vector<64x1xf32> to vector<64x32xf32>
    %296 = arith.subf %288, %295 : vector<64x32xf32>
    %297 = arith.mulf %296, %296 : vector<64x32xf32>
    %cst_43 = arith.constant dense<0.000000e+00> : vector<64xf32>
    %298 = vector.multi_reduction <add>, %297, %cst_43 [1] : vector<64x32xf32> to vector<64xf32>
    %299 = vector.shape_cast %298 : vector<64xf32> to vector<64x1xf32>
    %cst_44 = arith.constant 3.200000e+01 : f32
    %300 = vector.broadcast %cst_44 : f32 to vector<64x1xf32>
    %301 = arith.divf %299, %300 : vector<64x1xf32>
    %302 = vector.broadcast %294 : vector<64x1xf32> to vector<64x32xf32>
    %303 = arith.subf %288, %302 : vector<64x32xf32>
    %cst_45 = arith.constant 9.99999974E-6 : f32
    %304 = vector.broadcast %cst_45 : f32 to vector<64x1xf32>
    %305 = arith.addf %301, %304 : vector<64x1xf32>
    %306 = math.rsqrt %305 : vector<64x1xf32>
    %307 = vector.broadcast %306 : vector<64x1xf32> to vector<64x32xf32>
    %308 = arith.mulf %303, %307 : vector<64x32xf32>
    %309 = vector.broadcast %289 : vector<1x32xf32> to vector<64x32xf32>
    %310 = arith.mulf %308, %309 : vector<64x32xf32>
    %311 = vector.broadcast %290 : vector<1x32xf32> to vector<64x32xf32>
    %312 = arith.addf %310, %311 : vector<64x32xf32>
    %c0_46 = arith.constant 0 : index
    %c0_47 = arith.constant 0 : index
    %313 = vector.load %arg17[%c0_46, %c0_47] : memref<32x128xbf16, #tpu.memory_space<vmem>>, vector<32x128xbf16>
    %314 = arith.truncf %312 : vector<64x32xf32> to vector<64x32xbf16>
    %cst_48 = arith.constant dense<0.000000e+00> : vector<64x128xf32>
    %315 = tpu.matmul %314, %313, %cst_48 {dimension_numbers = #tpu.dot_dimension_numbers<[1], [0], [0], [1], [0, 0, 1, 1], [], []>} : vector<64x32xbf16>, vector<32x128xbf16>, vector<64x128xf32> -> vector<64x128xf32>
    %c0_49 = arith.constant 0 : index
    %c0_50 = arith.constant 0 : index
    %316 = vector.load %arg18[%c0_49, %c0_50] : memref<1x128xf32, #tpu.memory_space<vmem>>, vector<1x128xf32>
    %317 = vector.broadcast %316 : vector<1x128xf32> to vector<64x128xf32>
    %318 = arith.addf %315, %317 : vector<64x128xf32>
    %319 = arith.negf %318 : vector<64x128xf32>
    %320 = math.exp %319 : vector<64x128xf32>
    %cst_51 = arith.constant 1.000000e+00 : f32
    %321 = vector.broadcast %cst_51 : f32 to vector<64x128xf32>
    %322 = arith.addf %321, %320 : vector<64x128xf32>
    %323 = arith.divf %321, %322 : vector<64x128xf32>
    %324 = arith.mulf %318, %323 : vector<64x128xf32>
    %c0_52 = arith.constant 0 : index
    %c0_53 = arith.constant 0 : index
    %325 = vector.load %arg19[%c0_52, %c0_53] : memref<128x32xbf16, #tpu.memory_space<vmem>>, vector<128x32xbf16>
    %326 = arith.truncf %324 : vector<64x128xf32> to vector<64x128xbf16>
    %cst_54 = arith.constant dense<0.000000e+00> : vector<64x32xf32>
    %327 = tpu.matmul %326, %325, %cst_54 {dimension_numbers = #tpu.dot_dimension_numbers<[1], [0], [0], [1], [0, 0, 1, 1], [], []>} : vector<64x128xbf16>, vector<128x32xbf16>, vector<64x32xf32> -> vector<64x32xf32>
    %c0_55 = arith.constant 0 : index
    %c0_56 = arith.constant 0 : index
    %328 = vector.load %arg20[%c0_55, %c0_56] : memref<1x32xf32, #tpu.memory_space<vmem>>, vector<1x32xf32>
    %329 = vector.broadcast %328 : vector<1x32xf32> to vector<64x32xf32>
    %330 = arith.addf %327, %329 : vector<64x32xf32>
    %cst_57 = arith.constant 5.000000e-01 : f32
    %331 = vector.broadcast %cst_57 : f32 to vector<64x32xf32>
    %332 = arith.mulf %331, %330 : vector<64x32xf32>
    %333 = arith.addf %288, %332 : vector<64x32xf32>
    %c0_58 = arith.constant 0 : index
    %c0_59 = arith.constant 0 : index
    %c0_60 = arith.constant 0 : index
    %334 = vector.load %arg2[%c0_58, %c0_59, %c0_60] : memref<8x8x32xf32, #tpu.memory_space<vmem>>, vector<8x8x32xf32>
    %335 = vector.shape_cast %334 : vector<8x8x32xf32> to vector<64x32xf32>
    %c0_61 = arith.constant 0 : index
    %c0_62 = arith.constant 0 : index
    %336 = vector.load %arg21[%c0_61, %c0_62] : memref<1x32xf32, #tpu.memory_space<vmem>>, vector<1x32xf32>
    %c0_63 = arith.constant 0 : index
    %c0_64 = arith.constant 0 : index
    %337 = vector.load %arg22[%c0_63, %c0_64] : memref<1x32xf32, #tpu.memory_space<vmem>>, vector<1x32xf32>
    %cst_65 = arith.constant dense<0.000000e+00> : vector<64xf32>
    %338 = vector.multi_reduction <add>, %333, %cst_65 [1] : vector<64x32xf32> to vector<64xf32>
    %339 = vector.shape_cast %338 : vector<64xf32> to vector<64x1xf32>
    %cst_66 = arith.constant 3.200000e+01 : f32
    %340 = vector.broadcast %cst_66 : f32 to vector<64x1xf32>
    %341 = arith.divf %339, %340 : vector<64x1xf32>
    %342 = vector.broadcast %341 : vector<64x1xf32> to vector<64x32xf32>
    %343 = arith.subf %333, %342 : vector<64x32xf32>
    %344 = arith.mulf %343, %343 : vector<64x32xf32>
    %cst_67 = arith.constant dense<0.000000e+00> : vector<64xf32>
    %345 = vector.multi_reduction <add>, %344, %cst_67 [1] : vector<64x32xf32> to vector<64xf32>
    %346 = vector.shape_cast %345 : vector<64xf32> to vector<64x1xf32>
    %cst_68 = arith.constant 3.200000e+01 : f32
    %347 = vector.broadcast %cst_68 : f32 to vector<64x1xf32>
    %348 = arith.divf %346, %347 : vector<64x1xf32>
    %349 = vector.broadcast %341 : vector<64x1xf32> to vector<64x32xf32>
    %350 = arith.subf %333, %349 : vector<64x32xf32>
    %cst_69 = arith.constant 9.99999974E-6 : f32
    %351 = vector.broadcast %cst_69 : f32 to vector<64x1xf32>
    %352 = arith.addf %348, %351 : vector<64x1xf32>
    %353 = math.rsqrt %352 : vector<64x1xf32>
    %354 = vector.broadcast %353 : vector<64x1xf32> to vector<64x32xf32>
    %355 = arith.mulf %350, %354 : vector<64x32xf32>
    %356 = vector.broadcast %336 : vector<1x32xf32> to vector<64x32xf32>
    %357 = arith.mulf %355, %356 : vector<64x32xf32>
    %358 = vector.broadcast %337 : vector<1x32xf32> to vector<64x32xf32>
    %359 = arith.addf %357, %358 : vector<64x32xf32>
    %360 = arith.addf %359, %335 : vector<64x32xf32>
    %361 = vector.shape_cast %360 : vector<64x32xf32> to vector<8x8x32xf32>
    %c0_70 = arith.constant 0 : index
    %c0_71 = arith.constant 0 : index
    %c0_72 = arith.constant 0 : index
    %362 = vector.load %arg23[%c0_70, %c0_71, %c0_72] : memref<8x8x32xf32, #tpu.memory_space<vmem>>, vector<8x8x32xf32>
    tpu.vector_store %arg23[%c0_70, %c0_71, %c0_72], %361 {strides = array<i32>} : memref<8x8x32xf32, #tpu.memory_space<vmem>>, vector<8x8x32xf32>,
    return
  }
  func.func @transform_0(%arg0: i32) -> (i32, i32, i32) {
    %c0_i32 = arith.constant 0 : i32
    %c0_i32_0 = arith.constant 0 : i32
    %c0_i32_1 = arith.constant 0 : i32
    return %c0_i32, %arg0, %c0_i32_0 : i32, i32, i32
  }
  func.func @transform_1(%arg0: i32) -> (i32, i32, i32) {
    %c0_i32 = arith.constant 0 : i32
    %c0_i32_0 = arith.constant 0 : i32
    %c0_i32_1 = arith.constant 0 : i32
    return %c0_i32, %arg0, %c0_i32_0 : i32, i32, i32
  }
  func.func @transform_2(%arg0: i32) -> (i32, i32) {
    %c0_i32 = arith.constant 0 : i32
    %c0_i32_0 = arith.constant 0 : i32
    %c0_i32_1 = arith.constant 0 : i32
    return %c0_i32, %c0_i32_0 : i32, i32
  }
  func.func @transform_3(%arg0: i32) -> (i32, i32) {
    %c0_i32 = arith.constant 0 : i32
    %c0_i32_0 = arith.constant 0 : i32
    %c0_i32_1 = arith.constant 0 : i32
    return %c0_i32, %c0_i32_0 : i32, i32
  }
  func.func @transform_4(%arg0: i32) -> (i32, i32) {
    %c0_i32 = arith.constant 0 : i32
    %c0_i32_0 = arith.constant 0 : i32
    %c0_i32_1 = arith.constant 0 : i32
    return %c0_i32, %c0_i32_0 : i32, i32
  }
  func.func @transform_5(%arg0: i32) -> (i32, i32) {
    %c0_i32 = arith.constant 0 : i32
    %c0_i32_0 = arith.constant 0 : i32
    %c0_i32_1 = arith.constant 0 : i32
    return %c0_i32, %c0_i32_0 : i32, i32
  }
  func.func @transform_6(%arg0: i32) -> (i32, i32) {
    %c0_i32 = arith.constant 0 : i32
    %c0_i32_0 = arith.constant 0 : i32
    %c0_i32_1 = arith.constant 0 : i32
    return %c0_i32, %c0_i32_0 : i32, i32
  }
  func.func @transform_7(%arg0: i32) -> (i32, i32) {
    %c0_i32 = arith.constant 0 : i32
    %c0_i32_0 = arith.constant 0 : i32
    %c0_i32_1 = arith.constant 0 : i32
    return %c0_i32, %c0_i32_0 : i32, i32
  }
  func.func @transform_8(%arg0: i32) -> (i32, i32) {
    %c0_i32 = arith.constant 0 : i32
    %c0_i32_0 = arith.constant 0 : i32
    %c0_i32_1 = arith.constant 0 : i32
    return %c0_i32, %c0_i32_0 : i32, i32
  }
  func.func @transform_9(%arg0: i32) -> (i32, i32) {
    %c0_i32 = arith.constant 0 : i32
    %c0_i32_0 = arith.constant 0 : i32
    %c0_i32_1 = arith.constant 0 : i32
    return %c0_i32, %c0_i32_0 : i32, i32
  }
  func.func @transform_10(%arg0: i32) -> (i32, i32) {
    %c0_i32 = arith.constant 0 : i32
    %c0_i32_0 = arith.constant 0 : i32
    %c0_i32_1 = arith.constant 0 : i32
    return %c0_i32, %c0_i32_0 : i32, i32
  }
  func.func @transform_11(%arg0: i32) -> (i32, i32) {
    %c0_i32 = arith.constant 0 : i32
    %c0_i32_0 = arith.constant 0 : i32
    %c0_i32_1 = arith.constant 0 : i32
    return %c0_i32, %c0_i32_0 : i32, i32
  }
  func.func @transform_12(%arg0: i32) -> (i32, i32) {
    %c0_i32 = arith.constant 0 : i32
    %c0_i32_0 = arith.constant 0 : i32
    %c0_i32_1 = arith.constant 0 : i32
    return %c0_i32, %c0_i32_0 : i32, i32
  }
  func.func @transform_13(%arg0: i32) -> (i32, i32) {
    %c0_i32 = arith.constant 0 : i32
    %c0_i32_0 = arith.constant 0 : i32
    %c0_i32_1 = arith.constant 0 : i32
    return %c0_i32, %c0_i32_0 : i32, i32
  }
  func.func @transform_14(%arg0: i32) -> (i32, i32) {
    %c0_i32 = arith.constant 0 : i32
    %c0_i32_0 = arith.constant 0 : i32
    %c0_i32_1 = arith.constant 0 : i32
    return %c0_i32, %c0_i32_0 : i32, i32
  }
  func.func @transform_15(%arg0: i32) -> (i32, i32) {
    %c0_i32 = arith.constant 0 : i32
    %c0_i32_0 = arith.constant 0 : i32
    %c0_i32_1 = arith.constant 0 : i32
    return %c0_i32, %c0_i32_0 : i32, i32
  }
  func.func @transform_16(%arg0: i32) -> (i32, i32) {
    %c0_i32 = arith.constant 0 : i32
    %c0_i32_0 = arith.constant 0 : i32
    %c0_i32_1 = arith.constant 0 : i32
    return %c0_i32, %c0_i32_0 : i32, i32
  }
  func.func @transform_17(%arg0: i32) -> (i32, i32) {
    %c0_i32 = arith.constant 0 : i32
    %c0_i32_0 = arith.constant 0 : i32
    %c0_i32_1 = arith.constant 0 : i32
    return %c0_i32, %c0_i32_0 : i32, i32
  }
  func.func @transform_18(%arg0: i32) -> (i32, i32) {
    %c0_i32 = arith.constant 0 : i32
    %c0_i32_0 = arith.constant 0 : i32
    %c0_i32_1 = arith.constant 0 : i32
    return %c0_i32, %c0_i32_0 : i32, i32
  }
  func.func @transform_19(%arg0: i32) -> (i32, i32) {
    %c0_i32 = arith.constant 0 : i32
    %c0_i32_0 = arith.constant 0 : i32
    %c0_i32_1 = arith.constant 0 : i32
    return %c0_i32, %c0_i32_0 : i32, i32
  }
  func.func @transform_20(%arg0: i32) -> (i32, i32) {
    %c0_i32 = arith.constant 0 : i32
    %c0_i32_0 = arith.constant 0 : i32
    %c0_i32_1 = arith.constant 0 : i32
    return %c0_i32, %c0_i32_0 : i32, i32
  }
  func.func @transform_21(%arg0: i32) -> (i32, i32) {
    %c0_i32 = arith.constant 0 : i32
    %c0_i32_0 = arith.constant 0 : i32
    %c0_i32_1 = arith.constant 0 : i32
    return %c0_i32, %c0_i32_0 : i32, i32
  }
  func.func @transform_22(%arg0: i32) -> (i32, i32, i32) {
    %c0_i32 = arith.constant 0 : i32
    %c0_i32_0 = arith.constant 0 : i32
    %c0_i32_1 = arith.constant 0 : i32
    return %c0_i32, %arg0, %c0_i32_0 : i32, i32, i32
  }
}

</mosaic_0001>

<bundles_post_ra>
// kernel: _lambda_.5
= control target key start
LH: loop header
LB: loop body
LE: loop exit
PB: predicated region body
PF: predicated region fallthrough
CT: control target
= control target key end

     0   :  { %s4092_s0 = inlined_call_operand.vmem [shape: f32[8,16,32], index: 0, kind: input, shape index: {}]   ;;  %s4093_s1 = inlined_call_operand.vmem [shape: f32[8,16,32], index: 1, kind: input, shape index: {}]   ;;  %s4094_s2 = inlined_call_operand.vmem [shape: f32[1,32], index: 2, kind: input, shape index: {}, may-alias: {2,14,20}]   ;;  %s4095_s3 = inlined_call_operand.vmem [shape: f32[1,32], index: 3, kind: input, shape index: {}, may-alias: {3,15,21}]   ;;  %s4096_s4 = inlined_call_operand.vmem [shape: bf16[32,64], index: 4, kind: input, shape index: {}]   ;;  %s4097_s5 = inlined_call_operand.vmem [shape: f32[1,64], index: 5, kind: input, shape index: {}]   ;;  %s4098_s6 = inlined_call_operand.vmem [shape: bf16[32,64], index: 6, kind: input, shape index: {}]   ;;  %s4099_s7 = inlined_call_operand.vmem [shape: f32[1,64], index: 7, kind: input, shape index: {}]   ;;  %s4100_s8 = inlined_call_operand.vmem [shape: f32[31,64], index: 8, kind: input, shape index: {}]   ;;  %s4101_s9 = inlined_call_operand.vmem [shape: f32[1,64], index: 9, kind: input, shape index: {}]   ;;  %s4102_s10 = inlined_call_operand.vmem [shape: f32[1,64], index: 10, kind: input, shape index: {}]   ;;  %s4103_s11 = inlined_call_operand.vmem [shape: f32[1,64], index: 11, kind: input, shape index: {}]   ;;  %s4104_s12 = inlined_call_operand.vmem [shape: bf16[64,32], index: 12, kind: input, shape index: {}]   ;;  %s4105_s13 = inlined_call_operand.vmem [shape: f32[1,32], index: 13, kind: input, shape index: {}]   ;;  %s4106_s14 = inlined_call_operand.vmem [shape: f32[1,32], index: 14, kind: input, shape index: {}, may-alias: {2,14,20}]   ;;  %s4107_s15 = inlined_call_operand.vmem [shape: f32[1,32], index: 15, kind: input, shape index: {}, may-alias: {3,15,21}]   ;;  %s4108_s16 = inlined_call_operand.vmem [shape: bf16[32,128], index: 16, kind: input, shape index: {}]   ;;  %s4109_s17 = inlined_call_operand.vmem [shape: f32[1,128], index: 17, kind: input, shape index: {}]   ;;  %s4110_s18 = inlined_call_operand.vmem [shape: bf16[128,32], index: 18, kind: input, shape index: {}]   ;;  %s4111_s19 = inlined_call_operand.vmem [shape: f32[1,32], index: 19, kind: input, shape index: {}]   ;;  %s4112_s20 = inlined_call_operand.vmem [shape: f32[1,32], index: 20, kind: input, shape index: {}, may-alias: {2,14,20}]   ;;  %s4113_s21 = inlined_call_operand.vmem [shape: f32[1,32], index: 21, kind: input, shape index: {}, may-alias: {3,15,21}]   ;;  %s4114_s22 = inlined_call_operand.vmem [shape: f32[8,16,32], index: 22, kind: output, shape index: {}]  }
   0x1   :  { %4131 = sst [smem:[#allocation26_spill]] %s4092_s0 }
   0x2   :  { %4132 = sst [smem:[#allocation27_spill]] %s4093_s1 }
   0x3   :  { %4133 = sst [smem:[#allocation28_spill]] %s4094_s2 }
   0x4   :  { %4134 = sst [smem:[#allocation29_spill]] %s4095_s3 }
   0x5   :  { %4135 = sst [smem:[#allocation30_spill]] %s4096_s4 }
   0x6   :  { %4136 = sst [smem:[#allocation31_spill]] %s4097_s5 }
   0x7   :  { %4137 = sst [smem:[#allocation32_spill]] %s4098_s6 }
   0x8   :  { %s3127_s3 = smov 0   ;;  %s3129_s28 = smov 0  }
   0x9   :  { %s3131_s29 = smov 0  }
   0xa LB: > { %s4117_s30 = sadd.s32 4294967295, %s3010_s29   ;;  %s3144_s4 = sadd.s32 1, %s3010_s29   ;;  %s3010_s29 = sphi %s3131_s29, %s4188_s29   ;;  %s3006_s28 = sphi %s3129_s28, %s4191_s28   ;;  %s3002_s3 = sphi %s3127_s3, %s4190_s3  }
   0xb   : > { %4138 = sst [smem:[#allocation5_spill]] %s3144_s4  ;;  %s36_s0 = ssub.s32 %s3010_s29, %s3144_s4 }
   0xc   : > { %s39_s23 = sadd.s32 1, %s3006_s28  ;;  %p37_p0 = scmp.eq.s32.totalorder %s36_s0, 0 }
   0xd   : > { %p46_p1 = scmp.ne.s32.totalorder %s3006_s28, %s3002_s3  ;;  %p47_p2 = scmp.eq.s32.totalorder %s3010_s29, 0 }
   0xe   : > { %p522_p3 = scmp.eq.s32.totalorder %s4117_s30, 1  ;;  %p2595_p6 = scmp.ge.s32.totalorder %s3010_s29, 2 }
   0xf   : > { %s3155_s1 = scalar_select %p37_p0, %s3006_s28, %s39_s23  }
  0x10   : > { %p3157_p4 = por %p47_p2, %p46_p1  ;;  %p3161_p5 = por %p522_p3, %p46_p1 }
  0x11   : > { %4139 = sst [smem:[#allocation6_spill]] %s3155_s1  ;;  %604 = sbr.rel (%p2595_p6) target bundleno = 50 (0x32), region = 96 }
  0x16   : > { %607 = sbr.rel (!%p3157_p4) target bundleno = 36 (0x24), region = 100  ;;  %s609_s6 = sand.u32 (%p3157_p4), 1, %s3006_s28  }
  0x17   : > { %s2597_s25 = sshll.u32 (%p3157_p4), %s3010_s29, 3  ;;  %s2596_s26 = sshll.u32 (%p3157_p4), %s609_s6, 6 }
  0x18   : > { %s4142_s0 = sld [smem:[#allocation26_spill]] (%p3157_p4)  ;;  %s611_s30 = scalar_lea.vmem (%p3157_p4), [#allocation2], %s2596_s26 }
  0x1e   : > { %s613_s23 = scalar_lea.vmem %s4142_s0, %s2597_s25 }
  0x1f   : > { %v656_v0 = vld [vmem:[%s613_s23] sm:$0xff]  ;;  %v658_v1 = vld [vmem:[%s613_s23 + $0x10] sm:$0xff] }
  0x20   : > { %v660_v2 = vld [vmem:[%s613_s23 + $0x20] sm:$0xff]  ;;  %657 = vst [vmem:[%s611_s30] sm:$0xff] %v656_v0  ;;  %659 = vst [vmem:[%s611_s30 + $0x8] sm:$0xff] %v658_v1  ;;  %v662_v3 = vld [vmem:[%s613_s23 + $0x30] sm:$0xff] }
  0x21   : > { %661 = vst [vmem:[%s611_s30 + $0x10] sm:$0xff] %v660_v2  ;;  %v664_v4 = vld [vmem:[%s613_s23 + $0x40] sm:$0xff]  ;;  %v666_v5 = vld [vmem:[%s613_s23 + $0x50] sm:$0xff]  ;;  %663 = vst [vmem:[%s611_s30 + $0x18] sm:$0xff] %v662_v3 }
  0x22   : > { %665 = vst [vmem:[%s611_s30 + $0x20] sm:$0xff] %v664_v4  ;;  %667 = vst [vmem:[%s611_s30 + $0x28] sm:$0xff] %v666_v5  ;;  %v668_v6 = vld [vmem:[%s613_s23 + $0x60] sm:$0xff]  ;;  %v670_v7 = vld [vmem:[%s613_s23 + $0x70] sm:$0xff] }
  0x23   : > { %669 = vst [vmem:[%s611_s30 + $0x30] sm:$0xff] %v668_v6  ;;  %671 = vst [vmem:[%s611_s30 + $0x38] sm:$0xff] %v670_v7 }
  0x24 PF: > { %677 = sbr.rel (!%p3157_p4) target bundleno = 50 (0x32), region = 138  ;;  %s679_s6 = sand.u32 (%p3157_p4), 1, %s3006_s28  }
  0x25   : > { %s2599_s25 = sshll.u32 (%p3157_p4), %s3010_s29, 3  ;;  %s2598_s26 = sshll.u32 (%p3157_p4), %s679_s6, 6 }
  0x26   : > { %s4143_s0 = sld [smem:[#allocation27_spill]] (%p3157_p4)  ;;  %s681_s4 = scalar_lea.vmem (%p3157_p4), [#allocation3], %s2598_s26 }
  0x2c   : > { %s683_s1 = scalar_lea.vmem %s4143_s0, %s2599_s25 }
  0x2d   : > { %v726_v8 = vld [vmem:[%s683_s1] sm:$0xff]  ;;  %v728_v9 = vld [vmem:[%s683_s1 + $0x10] sm:$0xff] }
  0x2e   : > { %v730_v10 = vld [vmem:[%s683_s1 + $0x20] sm:$0xff]  ;;  %727 = vst [vmem:[%s681_s4] sm:$0xff] %v726_v8  ;;  %729 = vst [vmem:[%s681_s4 + $0x8] sm:$0xff] %v728_v9  ;;  %v732_v11 = vld [vmem:[%s683_s1 + $0x30] sm:$0xff] }
  0x2f   : > { %731 = vst [vmem:[%s681_s4 + $0x10] sm:$0xff] %v730_v10  ;;  %v734_v12 = vld [vmem:[%s683_s1 + $0x40] sm:$0xff]  ;;  %v736_v13 = vld [vmem:[%s683_s1 + $0x50] sm:$0xff]  ;;  %733 = vst [vmem:[%s681_s4 + $0x18] sm:$0xff] %v732_v11 }
  0x30   : > { %735 = vst [vmem:[%s681_s4 + $0x20] sm:$0xff] %v734_v12  ;;  %737 = vst [vmem:[%s681_s4 + $0x28] sm:$0xff] %v736_v13  ;;  %v738_v14 = vld [vmem:[%s683_s1 + $0x60] sm:$0xff]  ;;  %v740_v15 = vld [vmem:[%s683_s1 + $0x70] sm:$0xff] }
  0x31   : > { %739 = vst [vmem:[%s681_s4 + $0x30] sm:$0xff] %v738_v14  ;;  %741 = vst [vmem:[%s681_s4 + $0x38] sm:$0xff] %v740_v15 }
  0x32 PF: > { %p2600_p7 = scmp.ge.s32.totalorder %s3010_s29, 1  ;;  %p746_p8 = scmp.lt.s32.totalorder %s3010_s29, 3 }
  0x34   : > { %p747_p9 = pnand %p2600_p7, %p746_p8 }
  0x36   : > { %750 = sbr.rel (%p747_p9) target bundleno = 2016 (0x7e0), region = 176 }
  0x3b   : > { %s753_s30 = sand.u32 1, %s3002_s3   ;;  %vm835_vm0 = vcmask 261120   ;;  %s4144_s1 = sld [smem:[#allocation30_spill]]  ;;  %vm1754_vm1 = vcmask 523264  }
  0x3c   : > { %s3183_s5 = sshll.u32 %s753_s30, 6  ;;  %s4145_s26 = sld [smem:[#allocation32_spill]] }
  0x3d   : > { %s3186_s23 = scalar_lea.vmem [#allocation2], %s3183_s5  ;;  %s4146_s6 = sld [smem:[#allocation28_spill]] }
  0x3e   : > { %v825_v16 = vld [vmem:[%s3186_s23] sm:$0xff]  ;;  %v827_v17 = vld [vmem:[%s3186_s23 + $0x10] sm:$0xff]  ;;  %v826_v18 = vld [vmem:[%s3186_s23 + $0x8] sm:$0xff]  ;;  %s4147_s27 = sld [smem:[#allocation29_spill]]  ;;  %s4016_s30 = scalar_lea.vmem [#allocation3], %s3183_s5 }
  0x3f   : > { %v836_v19 = vsel %vm835_vm0, %v825_v16, 0.0  ;;  %v842_v20 = vsel %vm835_vm0, %v827_v17, 0.0  ;;  %v828_v21 = vld [vmem:[%s3186_s23 + $0x18] sm:$0xff]  ;;  %v829_v22 = vld [vmem:[%s3186_s23 + $0x20] sm:$0xff]  ;;  %v830_v23 = vld [vmem:[%s3186_s23 + $0x28] sm:$0xff]  ;;  %v839_v24 = vsel %vm835_vm0, %v826_v18, 0.0 }
  0x40   : > { %837 = vadd.xlane.f32.xlu0 %v836_v19  ;;  %843 = vadd.xlane.f32.xlu1 %v842_v20  ;;  %v845_v25 = vsel %vm835_vm0, %v828_v21, 0.0  ;;  %v848_v26 = vsel %vm835_vm0, %v829_v22, 0.0  ;;  %v851_v27 = vsel %vm835_vm0, %v830_v23, 0.0  ;;  %v831_v28 = vld [vmem:[%s3186_s23 + $0x30] sm:$0xff]  ;;  %v832_v29 = vld [vmem:[%s3186_s23 + $0x38] sm:$0xff]  ;;  %s4026_s3 = scalar_lea.vmem [#allocation4], %s3183_s5 }
  0x41   : > { %v854_v30 = vsel %vm835_vm0, %v831_v28, 0.0  ;;  %v857_v31 = vsel %vm835_vm0, %v832_v29, 0.0  ;;  %v2818_v8 = vld [vmem:[%s4144_s1 + $0x8] sm:$0xff]   ;;  %v2820_v10 = vld [vmem:[%s4144_s1] sm:$0xff]   ;;  %s4187_s5 = sadd.s32 (%p3161_p5), 4294967295, %s3010_s29  }
  0x42   : > { %v2819_v9 = vld [vmem:[%s4145_s26 + $0x8] sm:$0xff]   ;;  %2718 = vmatprep.subr.bf16.mxu0 %v2818_v8  ;;  %v2821_v11 = vld [vmem:[%s4145_s26] sm:$0xff]   ;;  %s2677_s4 = sshll.u32 (%p3161_p5), %s4187_s5, 3 }
  0x43   : > { %2730 = vmatprep.subr.bf16.mxu1 %v2819_v9  ;;  %2719 = vmatpush3.bf16.msra.mxu0 %v2818_v8  ;;  %s2456_s25 = scalar_lea.vmem (%p3161_p5), %s4114_s22, %s2677_s4 }
  0x44   : > { %840 = vadd.xlane.f32.xlu0 %v839_v24  ;;  %846 = vadd.xlane.f32.xlu1 %v845_v25 }
  0x45   : > { %2731 = vmatpush3.bf16.msra.mxu1 %v2819_v9  ;;  %2720 = vmatprep.subr.bf16.mxu0 %v2820_v10 }
  0x46   : > { %2732 = vmatprep.subr.bf16.mxu1 %v2821_v11 }
  0x47   : > { %2721 = vmatpush3.bf16.msra.mxu0 %v2820_v10 }
  0x48   : > { %849 = vadd.xlane.f32.xlu0 %v848_v26  ;;  %852 = vadd.xlane.f32.xlu1 %v851_v27 }
  0x49   : > { %2733 = vmatpush3.bf16.msra.mxu1 %v2821_v11  ;;  %v2822_v11 = vld [vmem:[%s4104_s12 + $0x18] sm:$0xff]  }
  0x4a   : > { %2742 = vmatprep.subr.bf16.mxu1 %v2822_v11 }
  0x4c   : > { %855 = vadd.xlane.f32.xlu0 %v854_v30  ;;  %858 = vadd.xlane.f32.xlu1 %v857_v31 }
  0xc9   : > { %v838_v32 = vpop.xlane.xlu0 %837  ;;  %v844_v33 = vpop.xlane.xlu1 %843 }
  0xca   : > { %v861_v34 = vmul.f32 0.03125, %v838_v32  ;;  %v863_v35 = vmul.f32 0.03125, %v844_v33 }
  0xcc   : > { %v3204_v36 = vsub.f32 %v825_v16, %v861_v34  ;;  %v3206_v37 = vsub.f32 %v827_v17, %v863_v35 }
  0xcd   : > { %v841_v38 = vpop.xlane.xlu0 %840  ;;  %v847_v39 = vpop.xlane.xlu1 %846 }
  0xce   : > { %v862_v40 = vmul.f32 0.03125, %v841_v38  ;;  %v864_v41 = vmul.f32 0.03125, %v847_v39  ;;  %v877_v42 = vmul.f32 %v3204_v36, %v3204_v36  ;;  %v879_v43 = vmul.f32 %v3206_v37, %v3206_v37 }
  0xd0   : > { %v3212_v44 = vsub.f32 %v826_v18, %v862_v40  ;;  %v3214_v45 = vsub.f32 %v828_v21, %v864_v41  ;;  %v885_v46 = vsel %vm835_vm0, %v877_v42, 0.0  ;;  %v891_v49 = vsel %vm835_vm0, %v879_v43, 0.0  ;;  %v2604_v40 = vld [vmem:[%s4146_s6] ss:$0 sm:$0xff]  ;;  %s4149_s6 = sld [smem:[#allocation31_spill]] }
  0xd1   : > { %886 = vadd.xlane.f32.xlu0 %v885_v46  ;;  %v850_v47 = vpop.xlane.xlu0 %849  ;;  %v853_v48 = vpop.xlane.xlu1 %852 }
  0xd2   : > { %v865_v50 = vmul.f32 0.03125, %v850_v47  ;;  %v866_v51 = vmul.f32 0.03125, %v853_v48  ;;  %v878_v52 = vmul.f32 %v3212_v44, %v3212_v44  ;;  %v880_v53 = vmul.f32 %v3214_v45, %v3214_v45  ;;  %v2605_v47 = vld [vmem:[%s4147_s27] ss:$0 sm:$0xff] }
  0xd4   : > { %v3222_v54 = vsub.f32 %v829_v22, %v865_v50  ;;  %v3224_v55 = vsub.f32 %v830_v23, %v866_v51  ;;  %v888_v56 = vsel %vm835_vm0, %v878_v52, 0.0  ;;  %v894_v59 = vsel %vm835_vm0, %v880_v53, 0.0 }
  0xd5   : > { %892 = vadd.xlane.f32.xlu0 %v891_v49  ;;  %889 = vadd.xlane.f32.xlu1 %v888_v56  ;;  %v856_v57 = vpop.xlane.xlu0 %855  ;;  %v859_v58 = vpop.xlane.xlu1 %858 }
  0xd6   : > { %v867_v60 = vmul.f32 0.03125, %v856_v57  ;;  %v868_v61 = vmul.f32 0.03125, %v859_v58  ;;  %v881_v62 = vmul.f32 %v3222_v54, %v3222_v54  ;;  %v882_v63 = vmul.f32 %v3224_v55, %v3224_v55 }
  0xd8   : > { %v3232_v0 = vsub.f32 %v831_v28, %v867_v60  ;;  %v3234_v1 = vsub.f32 %v832_v29, %v868_v61  ;;  %v897_v2 = vsel %vm835_vm0, %v881_v62, 0.0  ;;  %v900_v3 = vsel %vm835_vm0, %v882_v63, 0.0 }
  0xd9   : > { %895 = vadd.xlane.f32.xlu1 %v894_v59  ;;  %898 = vadd.xlane.f32.xlu0 %v897_v2 }
  0xda   : > { %v883_v4 = vmul.f32 %v3232_v0, %v3232_v0  ;;  %v884_v5 = vmul.f32 %v3234_v1, %v3234_v1 }
  0xdc   : > { %v903_v6 = vsel %vm835_vm0, %v883_v4, 0.0  ;;  %v906_v7 = vsel %vm835_vm0, %v884_v5, 0.0 }
  0xdd   : > { %901 = vadd.xlane.f32.xlu1 %v900_v3  ;;  %904 = vadd.xlane.f32.xlu0 %v903_v6 }
  0xe1   : > { %907 = vadd.xlane.f32.xlu1 %v906_v7 }
 0x15a   : > { %v887_v12 = vpop.xlane.xlu0 %886 }
 0x15b   : > { %v909_v13 = vmul.f32 0.03125, %v887_v12  ;;  %v2824_v12 = vld [vmem:[%s4104_s12 + $0x8] sm:$0xff]  }
 0x15d   : > { %v917_v14 = vadd.f32 1e-05, %v909_v13  ;;  %v2825_v13 = vld [vmem:[%s4104_s12] sm:$0xff]  }
 0x15e   : > { %v890_v15 = vpop.xlane.xlu1 %889  ;;  %v893_v16 = vpop.xlane.xlu0 %892 }
 0x15f   : > { %2836 = vrsqrt.f32 %v917_v14  ;;  %v910_v17 = vmul.f32 0.03125, %v890_v15  ;;  %v911_v18 = vmul.f32 0.03125, %v893_v16  ;;  %v1221_v14 = vlaneseq }
 0x161   : > { %v918_v19 = vadd.f32 1e-05, %v910_v17  ;;  %v919_v20 = vadd.f32 1e-05, %v911_v18  ;;  %v1222_v15 = vshrl.u32 %v1221_v14, 7  ;;  %v1217_v18 = vld [vmem:[%s4100_s8] sm:$0xff] }
 0x162   : > { %v896_v21 = vpop.xlane.xlu1 %895  ;;  %v899_v22 = vpop.xlane.xlu0 %898 }
 0x163   : > { %2838 = vrsqrt.f32 %v918_v19  ;;  %v912_v23 = vmul.f32 0.03125, %v896_v21  ;;  %v913_v24 = vmul.f32 0.03125, %v899_v22  ;;  %v3290_v16 = vsub.s32 0, %v1222_v15 }
 0x164   : > { %2840 = vrsqrt.f32 %v919_v20  ;;  %v3292_v17 = vsub.s32 1, %v1222_v15  ;;  %v3297_v19 = vsub.s32 2, %v1222_v15  ;;  %v3301_v22 = vsub.s32 3, %v1222_v15 }
 0x165   : > { %v920_v25 = vadd.f32 1e-05, %v912_v23  ;;  %v921_v26 = vadd.f32 1e-05, %v913_v24  ;;  %v1224_v20 = vrot.slane %v1217_v18, %v3290_v16 }
 0x166   : > { %v902_v27 = vpop.xlane.xlu1 %901  ;;  %v905_v28 = vpop.xlane.xlu0 %904  ;;  %v1230_v21 = vrot.slane %v1217_v18, %v3292_v17 }
 0x167   : > { %2842 = vrsqrt.f32 %v920_v25  ;;  %v914_v29 = vmul.f32 0.03125, %v902_v27  ;;  %v915_v30 = vmul.f32 0.03125, %v905_v28  ;;  %v1225_v23 = vmul.f32 0.0, %v1224_v20 }
 0x168   : > { %2844 = vrsqrt.f32 %v921_v26  ;;  %v1231_v24 = vmul.f32 0.0, %v1230_v21  ;;  %v1236_v25 = vrot.slane %v1217_v18, %v3297_v19  ;;  %v3304_v26 = vsub.s32 4, %v1222_v15 }
 0x169   : > { %v922_v31 = vadd.f32 1e-05, %v914_v29  ;;  %v923_v32 = vadd.f32 1e-05, %v915_v30  ;;  %v1242_v29 = vrot.slane %v1217_v18, %v3301_v22 }
 0x16a   : > { %v908_v33 = vpop.xlane.xlu1 %907  ;;  %v1232_v27 = vadd.f32 %v1231_v24, %v1225_v23  ;;  %v1237_v28 = vmul.f32 0.0, %v1236_v25 }
 0x16b   : > { %2846 = vrsqrt.f32 %v922_v31  ;;  %v916_v34 = vmul.f32 0.03125, %v908_v33  ;;  %v1243_v31 = vmul.f32 0.0, %v1242_v29  ;;  %v3308_v33 = vsub.s32 5, %v1222_v15 }
 0x16c   : > { %v2837_v35 = vpop.eup %2836  ;;  %2848 = vrsqrt.f32 %v923_v32  ;;  %v1238_v30 = vadd.f32 %v1237_v28, %v1232_v27  ;;  %v1248_v32 = vrot.slane %v1217_v18, %v3304_v26 }
 0x16d   : > { %v924_v38 = vadd.f32 1e-05, %v916_v34  ;;  %v933_v39 = vmul.f32 %v2837_v35, %v3204_v36 }
 0x16e   : > { %v1244_v34 = vadd.f32 %v1243_v31, %v1238_v30  ;;  %v1249_v35 = vmul.f32 0.0, %v1248_v32 }
 0x16f   : > { %2850 = vrsqrt.f32 %v924_v38  ;;  %v947_v46 = vmul.f32 %v2604_v40, %v933_v39  ;;  %v1254_v38 = vrot.slane %v1217_v18, %v3308_v33  ;;  %v3311_v39 = vsub.s32 6, %v1222_v15 }
 0x170   : > { %v2839_v41 = vpop.eup %2838 }
 0x171   : > { %v2841_v42 = vpop.eup %2840  ;;  %v934_v43 = vmul.f32 %v2839_v41, %v3212_v44  ;;  %v961_v36 = vadd.f32 %v2605_v47, %v947_v46  ;;  %v1250_v41 = vadd.f32 %v1249_v35, %v1244_v34 }
 0x172   : > { %v935_v48 = vmul.f32 %v2841_v42, %v3206_v37  ;;  %v1255_v42 = vmul.f32 0.0, %v1254_v38 }
 0x173   : > { %v948_v49 = vmul.f32 %v2604_v40, %v934_v43  ;;  %v1260_v43 = vrot.slane %v1217_v18, %v3311_v39 }
 0x174   : > { %v2843_v50 = vpop.eup %2842  ;;  %v949_v56 = vmul.f32 %v2604_v40, %v935_v48  ;;  %v1256_v46 = vadd.f32 %v1255_v42, %v1250_v41 }
 0x175   : > { %v2845_v51 = vpop.eup %2844  ;;  %v962_v52 = vadd.f32 %v2605_v47, %v948_v49  ;;  %v936_v53 = vmul.f32 %v2843_v50, %v3214_v45  ;;  %v3320_v49 = vld [vmem:[%s4100_s8 + $0x8] sm:$0xff] }
 0x176   : > { %v937_v57 = vmul.f32 %v2845_v51, %v3222_v54  ;;  %v963_v37 = vadd.f32 %v2605_v47, %v949_v56  ;;  %v3324_v50 = vrot.slane %v3320_v49, %v3290_v16  ;;  %v3332_v56 = vrot.slane %v3320_v49, %v3292_v17 }
 0x177   : > { %v973_v58 = vpack.c.bf16 %v962_v52, %v961_v36  ;;  %v950_v59 = vmul.f32 %v2604_v40, %v936_v53  ;;  %v2613_v52 = vld [vmem:[%s4099_s7] ss:$0 sm:$0xff]  ;;  %v3372_v29 = vrot.slane %v3320_v49, %v3308_v33  ;;  %v3382_v42 = vrot.slane %v3320_v49, %v3311_v39 }
 0x178   : > { %v2847_v44 = vpop.eup %2846  ;;  %v951_v60 = vmul.f32 %v2604_v40, %v937_v57  ;;  %v1273_v53 = vmul.f32 0.0, %v3324_v50 }
 0x179   : > { %v2849_v61 = vpop.eup %2848  ;;  %2722 = vmatprep.mubr.msk.bf16.mxu0 %vm835_vm0, %v973_v58  ;;  %2734 = vmatprep.mubr.msk.bf16.mxu1 %vm835_vm0, %v973_v58  ;;  %v964_v62 = vadd.f32 %v2605_v47, %v950_v59  ;;  %v938_v63 = vmul.f32 %v2847_v44, %v3224_v55  ;;  %v3338_v44 = vrot.slane %v3320_v49, %v3297_v19  ;;  %v1333_v41 = vmul.f32 0.0, %v3372_v29 }
 0x17a   : > { %v939_v2 = vmul.f32 %v2849_v61, %v3232_v0  ;;  %v965_v5 = vadd.f32 %v2605_v47, %v951_v60  ;;  %v1281_v61 = vmul.f32 0.0, %v3332_v56 }
 0x17b   : > { %v974_v3 = vpack.c.bf16 %v964_v62, %v963_v37  ;;  %v952_v45 = vmul.f32 %v2604_v40, %v938_v63 }
 0x17c   : > { %v2851_v4 = vpop.eup %2850  ;;  %v953_v7 = vmul.f32 %v2604_v40, %v939_v2 }
 0x17d   : > { %2723 = vmatmul.mubr.msk.bf16.vlgmr.msra.gmra.mxu0 %vm835_vm0, %v974_v3  ;;  %2735 = vmatmul.mubr.msk.bf16.vlgmr.msra.gmra.mxu1 %vm835_vm0, %v974_v3  ;;  %v966_v54 = vadd.f32 %v2605_v47, %v952_v45  ;;  %v940_v6 = vmul.f32 %v2851_v4, %v3234_v1  ;;  %v2823_v1 = vld [vmem:[%s4104_s12 + $0x10] sm:$0xff]  }
 0x17e   : > { %v967_v55 = vadd.f32 %v2605_v47, %v953_v7  ;;  %2743 = vmatpush3.bf16.msra.mxu1 %v2822_v11  ;;  %v1291_v7 = vmul.f32 0.0, %v3338_v44  ;;  %v3356_v11 = vrot.slane %v3320_v49, %v3304_v26 }
 0x17f   : > { %v975_v8 = vpack.c.bf16 %v966_v54, %v965_v5  ;;  %v954_v9 = vmul.f32 %v2604_v40, %v940_v6  ;;  %2744 = vmatprep.subr.bf16.mxu1 %v2823_v1  ;;  %v3313_v40 = vsub.s32 7, %v1222_v15  ;;  %v3348_v5 = vrot.slane %v3320_v49, %v3301_v22 }
 0x180   : > { %v1317_v28 = vmul.f32 0.0, %v3356_v11 }
 0x181   : > { %2726 = vmatprep.mubr.msk.bf16.mxu0 %vm835_vm0, %v975_v8  ;;  %2738 = vmatprep.mubr.msk.bf16.mxu1 %vm835_vm0, %v975_v8  ;;  %v968_v0 = vadd.f32 %v2605_v47, %v954_v9  ;;  %v1261_v47 = vmul.f32 0.0, %v1260_v43  ;;  %v1266_v48 = vrot.slane %v1217_v18, %v3313_v40  ;;  %v1303_v14 = vmul.f32 0.0, %v3348_v5 }
 0x182   : > { %2745 = vmatpush3.bf16.msra.mxu1 %v2823_v1 }
 0x183   : > { %v976_v10 = vpack.c.bf16 %v968_v0, %v967_v55  ;;  %2746 = vmatprep.subr.bf16.mxu1 %v2824_v12  ;;  %v1262_v51 = vadd.f32 %v1261_v47, %v1256_v46  ;;  %v1267_v36 = vmul.f32 0.0, %v1266_v48  ;;  %v1219_v48 = vld [vmem:[%s4100_s8 + $0x10] sm:$0xff] }
 0x185   : > { %2727 = vmatmul.mubr.msk.bf16.gmra.mxu0 %vm835_vm0, %v976_v10  ;;  %2739 = vmatmul.mubr.msk.bf16.gmra.mxu1 %vm835_vm0, %v976_v10  ;;  %v3334_v57 = vadd.f32 %v1267_v36, %v1262_v51 }
 0x186   : > { %2747 = vmatpush3.bf16.msra.mxu1 %v2824_v12 }
 0x187   : > { %2748 = vmatprep.subr.bf16.mxu1 %v2825_v13  ;;  %v3342_v37 = vadd.f32 %v1273_v53, %v3334_v57  ;;  %v1351_v53 = vmul.f32 0.0, %v3382_v42 }
 0x189   : > { %v3351_v6 = vadd.f32 %v1281_v61, %v3342_v37  ;;  %v3398_v61 = vrot.slane %v1219_v48, %v3290_v16 }
 0x18a   : > { %2749 = vmatpush3.bf16.msra.mxu1 %v2825_v13 }
 0x18b   : > { %v3361_v13 = vadd.f32 %v1291_v7, %v3351_v6  ;;  %v3413_v7 = vrot.slane %v1219_v48, %v3304_v26 }
 0x18d   : > { %v3367_v27 = vadd.f32 %v1303_v14, %v3361_v13 }
 0x18f   : > { %v3377_v38 = vadd.f32 %v1317_v28, %v3367_v27 }
 0x23d   : > { %v2736_v58 = vpop.f32.mrf.mxu1  ;;  %v3344_v4 = vpop.f32.mrf.mxu0 }
 0x23e   : > { %v1139_v59 = vadd.f32 %v2736_v58, %v2613_v52 }
 0x23f   : > { %v1130_v60 = vpop.f32.mrf.mxu1  ;;  %v3358_v1 = vpop.f32.mrf.mxu0 }
 0x240   : > { %v2622_v62 = vmul.f32 -1.442695, %v1139_v59  ;;  %v1131_v63 = vadd.f32 %v2613_v52, %v1130_v60  ;;  %v3395_v60 = vrot.slane %v3320_v49, %v3313_v40 }
 0x241   : > { %v2737_v2 = vpop.f32.mrf.mxu1  ;;  %v3364_v24 = vpop.f32.mrf.mxu0 }
 0x242   : > { %2852 = vpow2.f32 %v2622_v62  ;;  %v2620_v3 = vmul.f32 -1.442695, %v1131_v63  ;;  %v1142_v45 = vadd.f32 %v2737_v2, %v2613_v52  ;;  %v1220_v62 = vld [vmem:[%s4100_s8 + $0x18] sm:$0x7f]  ;;  %v3404_v2 = vrot.slane %v1219_v48, %v3297_v19 }
 0x243   : > { %v1133_v54 = vpop.f32.mrf.mxu1  ;;  %v3374_v35 = vpop.f32.mrf.mxu0  ;;  %v1535_v14 = vrot.slane %v1220_v62, %v3292_v17 }
 0x244   : > { %2854 = vpow2.f32 %v2620_v3  ;;  %v2623_v8 = vmul.f32 -1.442695, %v1142_v45  ;;  %v1134_v9 = vadd.f32 %v2613_v52, %v1133_v54  ;;  %v3407_v3 = vrot.slane %v1219_v48, %v3292_v17 }
 0x245   : > { %v2740_v55 = vpop.f32.mrf.mxu1  ;;  %v3387_v36 = vpop.f32.mrf.mxu0 }
 0x246   : > { %2856 = vpow2.f32 %v2623_v8  ;;  %v2621_v0 = vmul.f32 -1.442695, %v1134_v9  ;;  %v1155_v10 = vadd.f32 %v2740_v55, %v2613_v52  ;;  %v3416_v8 = vrot.slane %v1219_v48, %v3308_v33 }
 0x247   : > { %v1146_v12 = vpop.f32.mrf.mxu1  ;;  %v1058_v54 = vpop.f32.mrf.mxu0  ;;  %v3419_v9 = vrot.slane %v1219_v48, %v3311_v39 }
 0x248   : > { %2858 = vpow2.f32 %v2621_v0  ;;  %v2626_v15 = vmul.f32 -1.442695, %v1155_v10  ;;  %v1147_v18 = vadd.f32 %v2613_v52, %v1146_v12  ;;  %v1509_v0 = vrot.slane %v1219_v48, %v3313_v40 }
 0x249   : > { %v2741_v20 = vpop.f32.mrf.mxu1  ;;  %v1522_v10 = vrot.slane %v1220_v62, %v3290_v16  ;;  %v2606_v16 = vld [vmem:[%s4149_s6] ss:$0 sm:$0xff]  ;;  %v2729_v17 = vpop.f32.mrf.mxu0  ;;  %v3440_v28 = vmul.f32 0.0, %v3419_v9 }
 0x24a   : > { %2860 = vpow2.f32 %v2626_v15  ;;  %v2624_v21 = vmul.f32 -1.442695, %v1147_v18  ;;  %v1158_v23 = vadd.f32 %v2741_v20, %v2613_v52  ;;  %v1548_v15 = vrot.slane %v1220_v62, %v3297_v19 }
 0x24b   : > { %v1149_v25 = vpop.f32.mrf.mxu1  ;;  %v1561_v18 = vrot.slane %v1220_v62, %v3301_v22  ;;  %v1574_v20 = vrot.slane %v1220_v62, %v3304_v26  ;;  %v3437_v19 = vmul.f32 0.0, %v3416_v8  ;;  %v1587_v26 = vrot.slane %v1220_v62, %v3308_v33 }
 0x24c   : > { %2862 = vpow2.f32 %v2624_v21  ;;  %v2627_v30 = vmul.f32 -1.442695, %v1158_v23  ;;  %v1150_v31 = vadd.f32 %v2613_v52, %v1149_v25  ;;  %v3390_v52 = vadd.f32 %v1333_v41, %v3377_v38 }
 0x24d   : > { %v3428_v23 = vrot.slane %v1219_v48, %v3301_v22  ;;  %v3431_v25 = vmul.f32 0.0, %v3413_v7  ;;  %4150 = vst [vmem:[#allocation8_spill] sm:$0xff] %v3437_v19  ;;  %v1600_v22 = vrot.slane %v1220_v62, %v3311_v39  ;;  %v3448_v41 = vmul.f32 0.0, %v1535_v14 }
 0x24e   : > { %2864 = vpow2.f32 %v2627_v30  ;;  %v2625_v32 = vmul.f32 -1.442695, %v1150_v31  ;;  %v3410_v49 = vadd.f32 %v1351_v53, %v3390_v52  ;;  %v3444_v31 = vmul.f32 0.0, %v1509_v0  ;;  %v1061_v53 = vpop.f32.mrf.mxu0 }
 0x24f   : > { %v2853_v34 = vpop.eup %2852  ;;  %4148 = vst [vmem:[#allocation7_spill] sm:$0xff] %v3431_v25  ;;  %4151 = vst [vmem:[#allocation9_spill] sm:$0xff] %v3448_v41  ;;  %v1051_v48 = vadd.f32 %v3344_v4, %v2606_v16  ;;  %v3458_v39 = vmul.f32 0.0, %v3404_v2  ;;  %v3465_v62 = vmul.f32 0.0, %v3428_v23  ;;  %v1043_v4 = vadd.f32 %v2606_v16, %v3358_v1 }
 0x250   : > { %v1187_v43 = vadd.f32 1.0, %v2853_v34  ;;  %2866 = vpow2.f32 %v2625_v32  ;;  %v3446_v32 = vmul.f32 0.0, %v1522_v10  ;;  %v1054_v10 = vadd.f32 %v3364_v24, %v2606_v16 }
 0x251   : > { %v2855_v46 = vpop.eup %2854  ;;  %4155 = vst [vmem:[#allocation13_spill] sm:$0xff] %v3458_v39  ;;  %4158 = vst [vmem:[#allocation16_spill] sm:$0xff] %v3465_v62  ;;  %v1067_v14 = vadd.f32 %v3387_v36, %v2606_v16  ;;  %v1062_v1 = vadd.f32 %v2606_v16, %v1061_v53 }
 0x252   : > { %2868 = vrcp.f32 %v1187_v43  ;;  %v1185_v47 = vadd.f32 1.0, %v2855_v46  ;;  %v3450_v43 = vmul.f32 0.0, %v1548_v15  ;;  %v3452_v46 = vmul.f32 0.0, %v1561_v18 }
 0x253   : > { %v2857_v51 = vpop.eup %2856  ;;  %v1059_v15 = vadd.f32 %v2606_v16, %v1058_v54 }
 0x254   : > { %2870 = vrcp.f32 %v1185_v47  ;;  %v1188_v58 = vadd.f32 1.0, %v2857_v51  ;;  %4152 = vst [vmem:[#allocation10_spill] sm:$0xff] %v3450_v43  ;;  %4153 = vst [vmem:[#allocation11_spill] sm:$0xff] %v3452_v46  ;;  %v3454_v47 = vmul.f32 0.0, %v1574_v20 }
 0x255   : > { %v2859_v59 = vpop.eup %2858 }
 0x256   : > { %2872 = vrcp.f32 %v1188_v58  ;;  %v1186_v63 = vadd.f32 1.0, %v2859_v59  ;;  %4154 = vst [vmem:[#allocation12_spill] sm:$0xff] %v3454_v47  ;;  %v3460_v58 = vmul.f32 0.0, %v1587_v26  ;;  %v3462_v59 = vmul.f32 0.0, %v1600_v22 }
 0x257   : > { %v2861_v45 = vpop.eup %2860 }
 0x258   : > { %2874 = vrcp.f32 %v1186_v63  ;;  %v1191_v55 = vadd.f32 1.0, %v2861_v45  ;;  %4156 = vst [vmem:[#allocation14_spill] sm:$0xff] %v3460_v58  ;;  %4157 = vst [vmem:[#allocation15_spill] sm:$0xff] %v3462_v59  ;;  %v3468_v63 = vmul.f32 0.0, %v3398_v61 }
 0x259   : > { %v2863_v12 = vpop.eup %2862 }
 0x25a   : > { %2876 = vrcp.f32 %v1191_v55  ;;  %v1189_v21 = vadd.f32 1.0, %v2863_v12  ;;  %4159 = vst [vmem:[#allocation17_spill] sm:$0xff] %v3468_v63  ;;  %v3472_v55 = vmul.f32 0.0, %v3407_v3  ;;  %v1046_v12 = vadd.f32 %v2606_v16, %v3374_v35 }
 0x25b   : > { %v2865_v40 = vpop.eup %2864 }
 0x25c   : > { %2878 = vrcp.f32 %v1189_v21  ;;  %v1192_v30 = vadd.f32 1.0, %v2865_v40  ;;  %4160 = vst [vmem:[#allocation18_spill] sm:$0xff] %v3472_v55  ;;  %v1070_v21 = vadd.f32 %v2729_v17, %v2606_v16 }
 0x25d   : > { %v2867_v34 = vpop.eup %2866 }
 0x25e   : > { %2880 = vrcp.f32 %v1192_v30  ;;  %v1190_v33 = vadd.f32 1.0, %v2867_v34 }
 0x25f   : > { %v2869_v51 = vpop.eup %2868 }
 0x260   : > { %v1211_v45 = vmul.f32 %v2869_v51, %v1051_v48  ;;  %2882 = vrcp.f32 %v1190_v33 }
 0x261   : > { %v2871_v0 = vpop.eup %2870 }
 0x262   : > { %v3478_v18 = vmul.f32 %v3338_v44, %v1211_v45  ;;  %v3481_v20 = vmul.f32 %v3348_v5, %v1211_v45  ;;  %v3484_v26 = vmul.f32 %v3356_v11, %v1211_v45  ;;  %v3487_v22 = vmul.f32 %v3395_v60, %v1211_v45 }
 0x263   : > { %v2873_v40 = vpop.eup %2872  ;;  %v1209_v24 = vmul.f32 %v2871_v0, %v1043_v4  ;;  %v1392_v35 = vmul.f32 %v3398_v61, %v1211_v45  ;;  %v1411_v54 = vmul.f32 %v3407_v3, %v1211_v45  ;;  %v3494_v30 = vmul.f32 %v3382_v42, %v1211_v45 }
 0x264   : > { %4161 = vst [vmem:[#allocation19_spill] sm:$0xff] %v3478_v18  ;;  %4162 = vst [vmem:[#allocation20_spill] sm:$0xff] %v3481_v20  ;;  %v3490_v36 = vmul.f32 %v2873_v40, %v1054_v10  ;;  %v3497_v17 = vmul.f32 %v3372_v29, %v1211_v45 }
 0x265   : > { %v2875_v16 = vpop.eup %2874  ;;  %v1274_v34 = vmul.f32 %v3324_v50, %v1209_v24  ;;  %v3501_v48 = vmul.f32 %v3332_v56, %v1209_v24  ;;  %v1292_v33 = vmul.f32 %v3338_v44, %v1209_v24  ;;  %v1304_v51 = vmul.f32 %v3348_v5, %v1209_v24 }
 0x266   : > { %v1318_v53 = vmul.f32 %v3356_v11, %v1209_v24  ;;  %v3508_v4 = vmul.f32 %v3348_v5, %v3490_v36  ;;  %v3512_v45 = vmul.f32 %v3356_v11, %v3490_v36  ;;  %v3516_v50 = vmul.f32 %v3395_v60, %v3490_v36 }
 0x267   : > { %v2877_v0 = vpop.eup %2876  ;;  %v3520_v10 = vmul.f32 %v3398_v61, %v3490_v36  ;;  %v1210_v40 = vmul.f32 %v2875_v16, %v1046_v12  ;;  %v3523_v55 = vadd.f32 %v1274_v34, %v3334_v57  ;;  %v1352_v63 = vmul.f32 %v3382_v42, %v1209_v24 }
 0x268   : > { %4163 = vst [vmem:[#allocation21_spill] sm:$0xff] %v3508_v4  ;;  %4164 = vst [vmem:[#allocation22_spill] sm:$0xff] %v3512_v45  ;;  %v3526_v59 = vmul.f32 %v2877_v0, %v1067_v14  ;;  %v1371_v58 = vmul.f32 %v3395_v60, %v1209_v24  ;;  %v1412_v47 = vmul.f32 %v3407_v3, %v3490_v36 }
 0x269   : > { %v1430_v45 = vmul.f32 %v3404_v2, %v3490_v36  ;;  %v2879_v62 = vpop.eup %2878  ;;  %v3534_v39 = vmul.f32 %v3332_v56, %v1210_v40  ;;  %v3537_v12 = vmul.f32 %v3338_v44, %v1210_v40  ;;  %v1305_v57 = vmul.f32 %v3348_v5, %v1210_v40 }
 0x26a   : > { %v1319_v14 = vmul.f32 %v3356_v11, %v1210_v40  ;;  %v3543_v16 = vmul.f32 %v3404_v2, %v3526_v59  ;;  %v3545_v34 = vmul.f32 %v2879_v62, %v1059_v15  ;;  %v1360_v0 = vadd.f32 %v1352_v63, %v3390_v52 }
 0x26b   : > { %4165 = vst [vmem:[#allocation23_spill] sm:$0xff] %v3534_v39  ;;  %4166 = vst [vmem:[#allocation24_spill] sm:$0xff] %v3537_v12  ;;  %v1372_v46 = vmul.f32 %v3395_v60, %v1210_v40  ;;  %v2881_v4 = vpop.eup %2880  ;;  %v1379_v56 = vadd.f32 %v1371_v58, %v3410_v49  ;;  %v1391_v44 = vmul.f32 %v3398_v61, %v1210_v40 }
 0x26c   : > { %v1466_v5 = vmul.f32 %v3413_v7, %v3526_v59  ;;  %v1481_v20 = vmul.f32 %v3416_v8, %v3526_v59  ;;  %v3557_v19 = vmul.f32 %v3356_v11, %v3545_v34  ;;  %v1394_v52 = vmul.f32 %v3398_v61, %v3545_v34 }
 0x26d   : > { %v1413_v62 = vmul.f32 %v3407_v3, %v3545_v34  ;;  %v3563_v63 = vmul.f32 %v2881_v4, %v1070_v21  ;;  %v2883_v49 = vpop.eup %2882  ;;  %v1380_v58 = vadd.f32 %v1372_v46, %v1360_v0  ;;  %v1399_v15 = vadd.f32 %v1391_v44, %v1379_v56 }
 0x26e   : > { %4167 = vst [vmem:[#allocation25_spill] sm:$0xff] %v3557_v19  ;;  %v1431_v43 = vmul.f32 %v3404_v2, %v3545_v34  ;;  %v1448_v18 = vmul.f32 %v3428_v23, %v3545_v34  ;;  %v3569_v12 = vmul.f32 %v2883_v49, %v1062_v1  ;;  %v1324_v21 = vadd.f32 %v1318_v53, %v3367_v27 }
 0x26f   : > { %v1482_v11 = vmul.f32 %v3416_v8, %v3563_v63  ;;  %v1496_v19 = vmul.f32 %v3419_v9, %v3563_v63  ;;  %v1400_v4 = vadd.f32 %v1392_v35, %v1380_v58  ;;  %v1418_v25 = vadd.f32 %v1411_v54, %v1399_v15 }
 0x270   : > { %v1334_v46 = vmul.f32 %v3372_v29, %v1209_v24  ;;  %v1335_v0 = vmul.f32 %v3372_v29, %v1210_v40  ;;  %v1414_v56 = vmul.f32 %v3407_v3, %v3569_v12  ;;  %v1432_v1 = vmul.f32 %v3404_v2, %v3569_v12 }
 0x271   : > { %v1449_v8 = vmul.f32 %v3428_v23, %v3569_v12  ;;  %v1465_v9 = vmul.f32 %v3413_v7, %v3569_v12  ;;  %v1419_v44 = vadd.f32 %v1412_v47, %v1400_v4  ;;  %v1436_v27 = vadd.f32 %v1430_v45, %v1418_v25 }
 0x272   : > { %v1341_v35 = vadd.f32 %v1334_v46, %v3377_v38  ;;  %v1342_v54 = vadd.f32 %v1335_v0, %v1324_v21  ;;  %v1353_v24 = vmul.f32 %v3382_v42, %v1210_v40  ;;  %v1450_v53 = vmul.f32 %v3428_v23, %v3526_v59 }
 0x273   : > { %v1451_v49 = vmul.f32 %v3428_v23, %v3563_v63  ;;  %v1467_v58 = vmul.f32 %v3413_v7, %v3563_v63  ;;  %v1437_v15 = vadd.f32 %v1431_v43, %v1419_v44  ;;  %v1453_v41 = vadd.f32 %v1448_v18, %v1436_v27 }
 0x274   : > { %v1362_v39 = vadd.f32 %v3494_v30, %v1342_v54  ;;  %v1296_v25 = vadd.f32 %v1292_v33, %v3351_v6  ;;  %v1361_v47 = vadd.f32 %v1353_v24, %v1341_v35  ;;  %v1309_v38 = vadd.f32 %v1304_v51, %v3361_v13 }
 0x275   : > { %v1337_v45 = vmul.f32 %v3372_v29, %v3490_v36  ;;  %v1355_v40 = vmul.f32 %v3382_v42, %v3490_v36  ;;  %v1454_v21 = vadd.f32 %v1449_v8, %v1437_v15  ;;  %v1469_v23 = vadd.f32 %v1465_v9, %v1453_v41 }
 0x276   : > { %v1382_v4 = vadd.f32 %v3516_v50, %v1362_v39  ;;  %v1310_v7 = vadd.f32 %v1305_v57, %v1296_v25  ;;  %v1381_v43 = vadd.f32 %v3487_v22, %v1361_v47  ;;  %v1325_v18 = vadd.f32 %v1319_v14, %v1309_v38 }
 0x277   : > { %v1356_v6 = vmul.f32 %v3382_v42, %v3545_v34  ;;  %v1375_v13 = vmul.f32 %v3395_v60, %v3545_v34  ;;  %v1470_v30 = vadd.f32 %v1466_v5, %v1454_v21  ;;  %v1484_v33 = vadd.f32 %v1481_v20, %v1469_v23 }
 0x278   : > { %v1402_v51 = vadd.f32 %v1394_v52, %v1382_v4  ;;  %v1326_v46 = vadd.f32 %v3484_v26, %v1310_v7  ;;  %v1401_v36 = vadd.f32 %v3520_v10, %v1381_v43  ;;  %v1343_v41 = vadd.f32 %v3497_v17, %v1325_v18  ;;  %v4171_v4 = vld [vmem:[#allocation24_spill] sm:$0xff]  ;;  %v4172_v7 = vld [vmem:[#allocation19_spill] sm:$0xff]  ;;  %v4173_v18 = vld [vmem:[#allocation10_spill] sm:$0xff] }
 0x279   : > { %v1376_v39 = vmul.f32 %v3395_v60, %v3569_v12  ;;  %v1395_v22 = vmul.f32 %v3398_v61, %v3569_v12  ;;  %v1485_v50 = vadd.f32 %v1482_v11, %v1470_v30  ;;  %v1498_v57 = vadd.f32 %v1496_v19, %v1484_v33  ;;  %v4175_v33 = vld [vmem:[#allocation20_spill] sm:$0xff] }
 0x27a   : > { %v1421_v14 = vadd.f32 %v1414_v56, %v1402_v51  ;;  %v1344_v0 = vadd.f32 %v1337_v45, %v1326_v46  ;;  %v1420_v8 = vadd.f32 %v1413_v62, %v1401_v36  ;;  %v1363_v5 = vadd.f32 %v1355_v40, %v1343_v41  ;;  %v4170_v45 = vld [vmem:[#allocation7_spill] sm:$0xff]  ;;  %v4176_v46 = vld [vmem:[#allocation21_spill] sm:$0xff] }
 0x27b   : > { %v1396_v20 = vmul.f32 %v3398_v61, %v3526_v59  ;;  %v1415_v26 = vmul.f32 %v3407_v3, %v3526_v59  ;;  %v1499_v17 = vadd.f32 %v3440_v28, %v1485_v50  ;;  %v1511_v10 = vadd.f32 %v3444_v31, %v1498_v57  ;;  %v4177_v41 = vld [vmem:[#allocation11_spill] sm:$0xff]  ;;  %v4178_v50 = vld [vmem:[#allocation13_spill] sm:$0xff] }
 0x27c   : > { %v1439_v52 = vadd.f32 %v3543_v16, %v1421_v14  ;;  %v1364_v9 = vadd.f32 %v1356_v6, %v1344_v0  ;;  %v1438_v44 = vadd.f32 %v1432_v1, %v1420_v8  ;;  %v1383_v11 = vadd.f32 %v1375_v13, %v1363_v5  ;;  %v4168_v1 = vld [vmem:[#allocation23_spill] sm:$0xff]  ;;  %v4179_v0 = vld [vmem:[#allocation16_spill] sm:$0xff]  ;;  %v4180_v5 = vld [vmem:[#allocation22_spill] sm:$0xff] }
 0x27d   : > { %v1416_v19 = vmul.f32 %v3407_v3, %v3563_v63  ;;  %v1434_v62 = vmul.f32 %v3404_v2, %v3563_v63  ;;  %v1512_v56 = vadd.f32 %v3444_v31, %v1499_v17  ;;  %v1524_v27 = vadd.f32 %v3446_v32, %v1511_v10  ;;  %v4169_v3 = vld [vmem:[#allocation9_spill] sm:$0xff] }
 0x27e   : > { %v1456_v35 = vadd.f32 %v1451_v49, %v1439_v52  ;;  %v1384_v54 = vadd.f32 %v1376_v39, %v1364_v9  ;;  %v1455_v24 = vadd.f32 %v1450_v53, %v1438_v44  ;;  %v1403_v15 = vadd.f32 %v1395_v22, %v1383_v11  ;;  %v4182_v52 = vld [vmem:[#allocation12_spill] sm:$0xff] }
 0x27f   : > { %v1285_v16 = vadd.f32 %v3501_v48, %v3342_v37  ;;  %v1286_v25 = vadd.f32 %v4168_v1, %v3523_v55  ;;  %v1525_v47 = vadd.f32 %v3446_v32, %v1512_v56  ;;  %v1537_v38 = vadd.f32 %v4169_v3, %v1524_v27  ;;  %v4174_v48 = vld [vmem:[#allocation8_spill] sm:$0xff]  ;;  %v3667_v1 = vld [vmem:[%s4101_s9] ss:$0 sm:$0xff] }
 0x280   : > { %v1472_v2 = vadd.f32 %v4170_v45, %v1456_v35  ;;  %v1404_v40 = vadd.f32 %v1396_v20, %v1384_v54  ;;  %v1471_v21 = vadd.f32 %v1467_v58, %v1455_v24  ;;  %v1422_v23 = vadd.f32 %v1415_v26, %v1403_v15  ;;  %v4181_v26 = vld [vmem:[#allocation25_spill] sm:$0xff]  ;;  %v4183_v54 = vld [vmem:[#allocation14_spill] sm:$0xff] }
 0x281   : > { %v1297_v49 = vadd.f32 %v4171_v4, %v1285_v16  ;;  %v1298_v53 = vadd.f32 %v4172_v7, %v1286_v25  ;;  %v1538_v43 = vadd.f32 %v4169_v3, %v1525_v47  ;;  %v1550_v37 = vadd.f32 %v4173_v18, %v1537_v38  ;;  %v3678_v4 = vld [vmem:[%s4102_s10] ss:$0 sm:$0xff] }
 0x282   : > { %v1487_v6 = vadd.f32 %v4174_v48, %v1472_v2  ;;  %v1423_v55 = vadd.f32 %v1416_v19, %v1404_v40  ;;  %v1486_v13 = vadd.f32 %v4174_v48, %v1471_v21  ;;  %v1440_v30 = vadd.f32 %v1434_v62, %v1422_v23  ;;  %v4184_v2 = vld [vmem:[#allocation15_spill] sm:$0xff] }
 0x283   : > { %v1311_v51 = vadd.f32 %v4175_v33, %v1297_v49  ;;  %v1312_v36 = vadd.f32 %v4176_v46, %v1298_v53  ;;  %v1551_v58 = vadd.f32 %v4173_v18, %v1538_v43  ;;  %v1563_v39 = vadd.f32 %v4177_v41, %v1550_v37 }
 0x284   : > { %v1501_v22 = vadd.f32 %v3440_v28, %v1487_v6  ;;  %v1441_v57 = vadd.f32 %v4178_v50, %v1423_v55  ;;  %v1500_v14 = vadd.f32 %v3440_v28, %v1486_v13  ;;  %v1457_v8 = vadd.f32 %v4179_v0, %v1440_v30  ;;  %v3693_v30 = vld [vmem:[%s4103_s11] ss:$0 sm:$0xff] }
 0x285   : > { %v1327_v20 = vadd.f32 %v4180_v5, %v1311_v51  ;;  %v1328_v17 = vadd.f32 %v4181_v26, %v1312_v36  ;;  %v1564_v10 = vadd.f32 %v4177_v41, %v1551_v58  ;;  %v1576_v9 = vadd.f32 %v4182_v52, %v1563_v39 }
 0x286   : > { %v1514_v44 = vadd.f32 %v3444_v31, %v1501_v22  ;;  %v1458_v11 = vadd.f32 %v4179_v0, %v1441_v57  ;;  %v1513_v19 = vadd.f32 %v3444_v31, %v1500_v14  ;;  %v1473_v62 = vadd.f32 %v4170_v45, %v1457_v8 }
 0x287   : > { %v1338_v56 = vmul.f32 %v3372_v29, %v3545_v34  ;;  %v1339_v27 = vmul.f32 %v3372_v29, %v3569_v12  ;;  %v1577_v35 = vadd.f32 %v4182_v52, %v1564_v10  ;;  %v1589_v24 = vadd.f32 %v4183_v54, %v1576_v9 }
 0x288   : > { %v1527_v15 = vadd.f32 %v3446_v32, %v1514_v44  ;;  %v1474_v16 = vadd.f32 %v4170_v45, %v1458_v11  ;;  %v1526_v25 = vadd.f32 %v3446_v32, %v1513_v19  ;;  %v1488_v34 = vadd.f32 %v4174_v48, %v1473_v62 }
 0x289   : > { %v1345_v47 = vadd.f32 %v1338_v56, %v1327_v20  ;;  %v1346_v38 = vadd.f32 %v1339_v27, %v1328_v17  ;;  %v1590_v29 = vadd.f32 %v4183_v54, %v1577_v35  ;;  %v1602_v40 = vadd.f32 %v4184_v2, %v1589_v24  ;;  %v4185_v24 = vld [vmem:[#allocation17_spill] sm:$0xff] }
 0x28a   : > { %v1540_v21 = vadd.f32 %v4169_v3, %v1527_v15  ;;  %v1489_v23 = vadd.f32 %v4174_v48, %v1474_v16  ;;  %v1539_v49 = vadd.f32 %v4169_v3, %v1526_v25  ;;  %v1502_v7 = vadd.f32 %v3440_v28, %v1488_v34 }
 0x28b   : > { %v1357_v53 = vmul.f32 %v3382_v42, %v3569_v12  ;;  %v1358_v43 = vmul.f32 %v3382_v42, %v3526_v59  ;;  %v1603_v37 = vadd.f32 %v4184_v2, %v1590_v29  ;;  %v1617_v6 = vadd.f32 %v3667_v1, %v1602_v40  ;;  %v4186_v40 = vld [vmem:[#allocation18_spill] sm:$0xff] }
 0x28c   : > { %v1553_v55 = vadd.f32 %v4173_v18, %v1540_v21  ;;  %v1503_v13 = vadd.f32 %v3440_v28, %v1489_v23  ;;  %v1552_v33 = vadd.f32 %v4173_v18, %v1539_v49  ;;  %v1515_v12 = vadd.f32 %v3444_v31, %v1502_v7 }
 0x28d   : > { %v1365_v51 = vadd.f32 %v1357_v53, %v1345_v47  ;;  %v1366_v46 = vadd.f32 %v1358_v43, %v1346_v38  ;;  %v1618_v42 = vadd.f32 %v3667_v1, %v1603_v37  ;;  %v1632_v36 = vmul.f32 %v3678_v4, %v1617_v6 }
 0x28e   : > { %v1566_v58 = vadd.f32 %v4177_v41, %v1553_v55  ;;  %v1516_v39 = vadd.f32 %v3444_v31, %v1503_v13  ;;  %v1565_v22 = vadd.f32 %v4177_v41, %v1552_v33  ;;  %v1528_v57 = vadd.f32 %v3446_v32, %v1515_v12 }
 0x28f   : > { %v1377_v14 = vmul.f32 %v3395_v60, %v3526_v59  ;;  %v1378_v8 = vmul.f32 %v3395_v60, %v3563_v63  ;;  %v1633_v5 = vmul.f32 %v3678_v4, %v1618_v42  ;;  %v3709_v20 = vadd.f32 %v3693_v30, %v1632_v36 }
 0x290   : > { %v1579_v26 = vadd.f32 %v4182_v52, %v1566_v58  ;;  %v1529_v17 = vadd.f32 %v3446_v32, %v1516_v39  ;;  %v1578_v10 = vadd.f32 %v4182_v52, %v1565_v22  ;;  %v1541_v9 = vadd.f32 %v4169_v3, %v1528_v57 }
 0x291   : > { %v1385_v44 = vadd.f32 %v1377_v14, %v1365_v51  ;;  %v1386_v11 = vadd.f32 %v1378_v8, %v1366_v46  ;;  %v3716_v59 = vadd.f32 %v3693_v30, %v1633_v5  ;;  %v2631_v60 = vmul.f32 -1.442695, %v3709_v20 }
 0x292   : > { %v1592_v19 = vadd.f32 %v4183_v54, %v1579_v26  ;;  %v1542_v62 = vadd.f32 %v4169_v3, %v1529_v17  ;;  %v1591_v56 = vadd.f32 %v4183_v54, %v1578_v10  ;;  %v1554_v27 = vadd.f32 %v4173_v18, %v1541_v9 }
 0x293   : > { %v1397_v35 = vmul.f32 %v3398_v61, %v3563_v63  ;;  %v1406_v15 = vadd.f32 %v4185_v24, %v1386_v11  ;;  %2884 = vpow2.f32 %v2631_v60  ;;  %v2632_v16 = vmul.f32 -1.442695, %v3716_v59 }
 0x294   : > { %v1605_v25 = vadd.f32 %v4184_v2, %v1592_v19  ;;  %v1555_v34 = vadd.f32 %v4173_v18, %v1542_v62  ;;  %v1604_v47 = vadd.f32 %v4184_v2, %v1591_v56  ;;  %v1567_v38 = vadd.f32 %v4177_v41, %v1554_v27 }
 0x295   : > { %v1405_v29 = vadd.f32 %v1397_v35, %v1385_v44  ;;  %v1425_v21 = vadd.f32 %v4186_v40, %v1406_v15  ;;  %2886 = vpow2.f32 %v2632_v16 }
 0x296   : > { %v1620_v23 = vadd.f32 %v3667_v1, %v1605_v25  ;;  %v1568_v61 = vadd.f32 %v4177_v41, %v1555_v34  ;;  %v1619_v63 = vadd.f32 %v3667_v1, %v1604_v47  ;;  %v1580_v49 = vadd.f32 %v4182_v52, %v1567_v38 }
 0x297   : > { %v1424_v7 = vadd.f32 %v4186_v40, %v1405_v29  ;;  %v1443_v53 = vadd.f32 %v4178_v50, %v1425_v21 }
 0x298   : > { %v1635_v43 = vmul.f32 %v3678_v4, %v1620_v23  ;;  %v1581_v37 = vadd.f32 %v4182_v52, %v1568_v61  ;;  %v1634_v6 = vmul.f32 %v3678_v4, %v1619_v63  ;;  %v1593_v55 = vadd.f32 %v4183_v54, %v1580_v49 }
 0x299   : > { %v1442_v13 = vadd.f32 %v4178_v50, %v1424_v7  ;;  %v1460_v33 = vadd.f32 %v4179_v0, %v1443_v53 }
 0x29a   : > { %v3745_v12 = vadd.f32 %v3693_v30, %v1635_v43  ;;  %v1594_v51 = vadd.f32 %v4183_v54, %v1581_v37  ;;  %v3749_v46 = vadd.f32 %v3693_v30, %v1634_v6  ;;  %v1606_v42 = vadd.f32 %v4184_v2, %v1593_v55 }
 0x29b   : > { %v1459_v36 = vadd.f32 %v4179_v0, %v1442_v13  ;;  %v1476_v58 = vadd.f32 %v4170_v45, %v1460_v33 }
 0x29c   : > { %v2634_v39 = vmul.f32 -1.442695, %v3745_v12  ;;  %v1607_v50 = vadd.f32 %v4184_v2, %v1594_v51  ;;  %v2633_v22 = vmul.f32 -1.442695, %v3749_v46  ;;  %v1621_v57 = vadd.f32 %v3667_v1, %v1606_v42 }
 0x29d   : > { %v1475_v14 = vadd.f32 %v4170_v45, %v1459_v36  ;;  %v1491_v8 = vadd.f32 %v4174_v48, %v1476_v58 }
 0x29e   : > { %2888 = vpow2.f32 %v2634_v39  ;;  %v1622_v5 = vadd.f32 %v3667_v1, %v1607_v50  ;;  %v1636_v0 = vmul.f32 %v3678_v4, %v1621_v57 }
 0x29f   : > { %2890 = vpow2.f32 %v2633_v22  ;;  %v1490_v26 = vadd.f32 %v4174_v48, %v1475_v14  ;;  %v1505_v17 = vadd.f32 %v3440_v28, %v1491_v8 }
 0x2a0   : > { %v1637_v10 = vmul.f32 %v3678_v4, %v1622_v5  ;;  %v2885_v9 = vpop.eup %2884  ;;  %v3766_v44 = vadd.f32 %v3693_v30, %v1636_v0 }
 0x2a1   : > { %v1504_v45 = vadd.f32 %v3440_v28, %v1490_v26  ;;  %v1518_v11 = vadd.f32 %v3444_v31, %v1505_v17  ;;  %v1679_v60 = vadd.f32 1.0, %v2885_v9 }
 0x2a2   : > { %v1652_v19 = vadd.f32 %v3693_v30, %v1637_v10  ;;  %v2887_v62 = vpop.eup %2886  ;;  %v2635_v56 = vmul.f32 -1.442695, %v3766_v44 }
 0x2a3   : > { %v1517_v48 = vadd.f32 %v3444_v31, %v1504_v45  ;;  %v1531_v27 = vadd.f32 %v3446_v32, %v1518_v11  ;;  %v1680_v35 = vadd.f32 1.0, %v2887_v62  ;;  %2892 = vrcp.f32 %v1679_v60  ;;  %v2639_v45 = vld [vmem:[%s4105_s13] ss:$0 sm:$0xff] }
 0x2a4   : > { %v2636_v24 = vmul.f32 -1.442695, %v1652_v19  ;;  %2894 = vpow2.f32 %v2635_v56  ;;  %v2980_v56 = vld [vmem:[%s3186_s23] sm:$0xff] }
 0x2a5   : > { %v1530_v15 = vadd.f32 %v3446_v32, %v1517_v48  ;;  %v1544_v28 = vadd.f32 %v4169_v3, %v1531_v27  ;;  %2896 = vrcp.f32 %v1680_v35  ;;  %v2981_v35 = vld [vmem:[%s3186_s23 + $0x10] sm:$0xff] }
 0x2a6   : > { %2898 = vpow2.f32 %v2636_v24 }
 0x2a7   : > { %v1543_v16 = vadd.f32 %v4169_v3, %v1530_v15  ;;  %v1557_v25 = vadd.f32 %v4173_v18, %v1544_v28 }
 0x2a9   : > { %v1556_v34 = vadd.f32 %v4173_v18, %v1543_v16  ;;  %v1570_v31 = vadd.f32 %v4177_v41, %v1557_v25  ;;  %v2982_v25 = vld [vmem:[%s3186_s23 + $0x8] sm:$0xff] }
 0x2ab   : > { %v2889_v47 = vpop.eup %2888  ;;  %v1569_v38 = vadd.f32 %v4177_v41, %v1556_v34  ;;  %v1583_v29 = vadd.f32 %v4182_v52, %v1570_v31  ;;  %v2983_v31 = vld [vmem:[%s3186_s23 + $0x18] sm:$0xff] }
 0x2ac   : > { %v2891_v40 = vpop.eup %2890  ;;  %v1682_v21 = vadd.f32 1.0, %v2889_v47 }
 0x2ad   : > { %v1681_v32 = vadd.f32 1.0, %v2891_v40  ;;  %v1582_v23 = vadd.f32 %v4182_v52, %v1569_v38  ;;  %v1596_v61 = vadd.f32 %v4183_v54, %v1583_v29 }
 0x2ae   : > { %2900 = vrcp.f32 %v1682_v21 }
 0x2af   : > { %2902 = vrcp.f32 %v1681_v32  ;;  %v1595_v3 = vadd.f32 %v4183_v54, %v1582_v23  ;;  %v1609_v18 = vadd.f32 %v4184_v2, %v1596_v61 }
 0x2b0   : > { %v2893_v63 = vpop.eup %2892 }
 0x2b1   : > { %v1608_v49 = vadd.f32 %v4184_v2, %v1595_v3  ;;  %v1624_v41 = vadd.f32 %v3667_v1, %v1609_v18  ;;  %v2895_v7 = vpop.eup %2894  ;;  %v1703_v55 = vmul.f32 %v2893_v63, %v3709_v20  ;;  %v2984_v18 = vld [vmem:[%s3186_s23 + $0x20] sm:$0xff] }
 0x2b2   : > { %v2897_v53 = vpop.eup %2896  ;;  %v1683_v43 = vadd.f32 1.0, %v2895_v7 }
 0x2b3   : > { %v1623_v37 = vadd.f32 %v3667_v1, %v1608_v49  ;;  %v1639_v52 = vmul.f32 %v3678_v4, %v1624_v41  ;;  %v2899_v6 = vpop.eup %2898  ;;  %v1704_v13 = vmul.f32 %v2897_v53, %v3716_v59  ;;  %v2985_v41 = vld [vmem:[%s3186_s23 + $0x30] sm:$0xff] }
 0x2b4   : > { %v1684_v54 = vadd.f32 1.0, %v2899_v6  ;;  %2904 = vrcp.f32 %v1683_v43 }
 0x2b5   : > { %v1638_v33 = vmul.f32 %v3678_v4, %v1623_v37  ;;  %v1654_v2 = vadd.f32 %v3693_v30, %v1639_v52  ;;  %v1719_v51 = vpack.c.bf16 %v1704_v13, %v1703_v55  ;;  %v2986_v52 = vld [vmem:[%s3186_s23 + $0x28] sm:$0xff]  ;;  %v2987_v55 = vld [vmem:[%s3186_s23 + $0x38] sm:$0xff] }
 0x2b6   : > { %2906 = vrcp.f32 %v1684_v54 }
 0x2b7   : > { %v1653_v42 = vadd.f32 %v3693_v30, %v1638_v33  ;;  %v2638_v36 = vmul.f32 -1.442695, %v1654_v2  ;;  %2750 = vmatprep.mubr.msk.bf16.mxu1 %vm1754_vm1, %v1719_v51 }
 0x2b9   : > { %v2637_v1 = vmul.f32 -1.442695, %v1653_v42  ;;  %2908 = vpow2.f32 %v2638_v36 }
 0x2bb   : > { %v2901_v58 = vpop.eup %2900  ;;  %2910 = vpow2.f32 %v2637_v1 }
 0x2bc   : > { %v2903_v20 = vpop.eup %2902  ;;  %v1706_v59 = vmul.f32 %v2901_v58, %v3745_v12 }
 0x2bd   : > { %v1705_v39 = vmul.f32 %v2903_v20, %v3749_v46 }
 0x2bf   : > { %v1720_v50 = vpack.c.bf16 %v1706_v59, %v1705_v39 }
 0x2c1   : > { %2751 = vmatmul.mubr.msk.bf16.vlgmr.msra.gmra.mxu1 %vm1754_vm1, %v1720_v50  ;;  %v2905_v4 = vpop.eup %2904 }
 0x2c2   : > { %v1707_v57 = vmul.f32 %v2905_v4, %v3766_v44 }
 0x2c3   : > { %v2907_v22 = vpop.eup %2906 }
 0x2c4   : > { %v1708_v30 = vmul.f32 %v2907_v22, %v1652_v19 }
 0x2c6   : > { %v2909_v14 = vpop.eup %2908  ;;  %v1721_v8 = vpack.c.bf16 %v1708_v30, %v1707_v57 }
 0x2c7   : > { %v1686_v5 = vadd.f32 1.0, %v2909_v14 }
 0x2c8   : > { %v2911_v0 = vpop.eup %2910  ;;  %2754 = vmatprep.mubr.msk.bf16.mxu1 %vm1754_vm1, %v1721_v8 }
 0x2c9   : > { %v1685_v26 = vadd.f32 1.0, %v2911_v0  ;;  %2912 = vrcp.f32 %v1686_v5 }
 0x2cb   : > { %2914 = vrcp.f32 %v1685_v26 }
 0x2d6   : > { %v2913_v12 = vpop.eup %2912 }
 0x2d7   : > { %v1710_v46 = vmul.f32 %v2913_v12, %v1654_v2 }
 0x2d8   : > { %v2915_v17 = vpop.eup %2914 }
 0x2d9   : > { %v1709_v10 = vmul.f32 %v2915_v17, %v1653_v42 }
 0x2db   : > { %v1722_v9 = vpack.c.bf16 %v1710_v46, %v1709_v10 }
 0x2dd   : > { %2755 = vmatmul.mubr.msk.bf16.gmra.mxu1 %vm1754_vm1, %v1722_v9 }
 0x381   : > { %v2752_v44 = vpop.f32.mrf.mxu1 }
 0x382   : > { %v1810_v60 = vadd.f32 %v2752_v44, %v2639_v45 }
 0x383   : > { %v1801_v11 = vpop.f32.mrf.mxu1 }
 0x384   : > { %v1802_v19 = vadd.f32 %v2639_v45, %v1801_v11  ;;  %v3809_v24 = vadd.f32 %v2981_v35, %v1810_v60 }
 0x385   : > { %v2753_v62 = vpop.f32.mrf.mxu1 }
 0x386   : > { %v3806_v48 = vadd.f32 %v2980_v56, %v1802_v19  ;;  %v1813_v15 = vadd.f32 %v2753_v62, %v2639_v45  ;;  %v1848_v29 = vsel %vm835_vm0, %v3809_v24, 0.0 }
 0x387   : > { %v1804_v27 = vpop.f32.mrf.mxu1 }
 0x388   : > { %v1805_v28 = vadd.f32 %v2639_v45, %v1804_v27  ;;  %v1842_v16 = vsel %vm835_vm0, %v3806_v48, 0.0  ;;  %v3817_v47 = vadd.f32 %v2983_v31, %v1813_v15 }
 0x389   : > { %1843 = vadd.xlane.f32.xlu0 %v1842_v16 }
 0x38a   : > { %v3814_v34 = vadd.f32 %v2982_v25, %v1805_v28  ;;  %v1851_v40 = vsel %vm835_vm0, %v3817_v47, 0.0 }
 0x38c   : > { %v1845_v38 = vsel %vm835_vm0, %v3814_v34, 0.0 }
 0x38d   : > { %1846 = vadd.xlane.f32.xlu1 %v1845_v38  ;;  %1849 = vadd.xlane.f32.xlu0 %v1848_v29 }
 0x391   : > { %1852 = vadd.xlane.f32.xlu1 %v1851_v40 }
 0x39d   : > { %v2756_v21 = vpop.f32.mrf.mxu1 }
 0x39e   : > { %v1826_v23 = vadd.f32 %v2756_v21, %v2639_v45  ;;  %v2826_v21 = vld [vmem:[%s4108_s16 + $0x8] sm:$0xff]  }
 0x39f   : > { %v1817_v32 = vpop.f32.mrf.mxu1  ;;  %2758 = vmatprep.subr.bf16.mxu1 %v2826_v21 }
 0x3a0   : > { %v1818_v61 = vadd.f32 %v2639_v45, %v1817_v32  ;;  %v3829_v7 = vadd.f32 %v2985_v41, %v1826_v23  ;;  %v2827_v32 = vld [vmem:[%s4108_s16] sm:$0xff]   ;;  %2759 = vmatpush3.bf16.msra.mxu1 %v2826_v21 }
 0x3a1   : > { %v2757_v3 = vpop.f32.mrf.mxu1  ;;  %2760 = vmatprep.subr.bf16.mxu1 %v2827_v32 }
 0x3a2   : > { %v3826_v63 = vadd.f32 %v2984_v18, %v1818_v61  ;;  %v1829_v53 = vadd.f32 %v2757_v3, %v2639_v45  ;;  %v1860_v33 = vsel %vm835_vm0, %v3829_v7, 0.0 }
 0x3a3   : > { %v1820_v49 = vpop.f32.mrf.mxu1 }
 0x3a4   : > { %v1821_v43 = vadd.f32 %v2639_v45, %v1820_v49  ;;  %v1854_v37 = vsel %vm835_vm0, %v3826_v63, 0.0  ;;  %v3837_v13 = vadd.f32 %v2987_v55, %v1829_v53  ;;  %2761 = vmatpush3.bf16.msra.mxu1 %v2827_v32 }
 0x3a5   : > { %1855 = vadd.xlane.f32.xlu0 %v1854_v37 }
 0x3a6   : > { %v3834_v6 = vadd.f32 %v2986_v52, %v1821_v43  ;;  %v1863_v2 = vsel %vm835_vm0, %v3837_v13, 0.0 }
 0x3a8   : > { %v1857_v54 = vsel %vm835_vm0, %v3834_v6, 0.0 }
 0x3a9   : > { %1858 = vadd.xlane.f32.xlu1 %v1857_v54  ;;  %1861 = vadd.xlane.f32.xlu0 %v1860_v33 }
 0x3ad   : > { %1864 = vadd.xlane.f32.xlu1 %v1863_v2 }
 0x412   : > { %v1844_v51 = vpop.xlane.xlu0 %1843 }
 0x413   : > { %v1866_v42 = vmul.f32 0.03125, %v1844_v51  ;;  %v2648_v51 = vld [vmem:[%s4106_s14] ss:$0 sm:$0xff] }
 0x415   : > { %v3846_v36 = vsub.f32 %v3806_v48, %v1866_v42 }
 0x416   : > { %v1847_v1 = vpop.xlane.xlu1 %1846  ;;  %v1850_v58 = vpop.xlane.xlu0 %1849 }
 0x417   : > { %v1867_v20 = vmul.f32 0.03125, %v1847_v1  ;;  %v1868_v59 = vmul.f32 0.03125, %v1850_v58  ;;  %v1882_v39 = vmul.f32 %v3846_v36, %v3846_v36 }
 0x419   : > { %v3851_v50 = vsub.f32 %v3814_v34, %v1867_v20  ;;  %v3854_v4 = vsub.f32 %v3809_v24, %v1868_v59  ;;  %v1890_v22 = vsel %vm835_vm0, %v1882_v39, 0.0  ;;  %v2649_v39 = vld [vmem:[%s4107_s15] ss:$0 sm:$0xff] }
 0x41a   : > { %v1853_v57 = vpop.xlane.xlu1 %1852  ;;  %1891 = vadd.xlane.f32.xlu0 %v1890_v22 }
 0x41b   : > { %v1869_v30 = vmul.f32 0.03125, %v1853_v57  ;;  %v1883_v14 = vmul.f32 %v3851_v50, %v3851_v50  ;;  %v1884_v8 = vmul.f32 %v3854_v4, %v3854_v4 }
 0x41d   : > { %v3862_v5 = vsub.f32 %v3817_v47, %v1869_v30  ;;  %v1893_v0 = vsel %vm835_vm0, %v1883_v14, 0.0  ;;  %v1896_v26 = vsel %vm835_vm0, %v1884_v8, 0.0 }
 0x41e   : > { %1894 = vadd.xlane.f32.xlu1 %v1893_v0  ;;  %1897 = vadd.xlane.f32.xlu0 %v1896_v26 }
 0x41f   : > { %v1885_v12 = vmul.f32 %v3862_v5, %v3862_v5 }
 0x421   : > { %v1899_v46 = vsel %vm835_vm0, %v1885_v12, 0.0 }
 0x422   : > { %1900 = vadd.xlane.f32.xlu1 %v1899_v46 }
 0x42e   : > { %v1856_v17 = vpop.xlane.xlu0 %1855 }
 0x42f   : > { %v1870_v10 = vmul.f32 0.03125, %v1856_v17 }
 0x431   : > { %v3870_v9 = vsub.f32 %v3826_v63, %v1870_v10 }
 0x432   : > { %v1859_v44 = vpop.xlane.xlu1 %1858  ;;  %v1862_v45 = vpop.xlane.xlu0 %1861 }
 0x433   : > { %v1871_v11 = vmul.f32 0.03125, %v1859_v44  ;;  %v1872_v60 = vmul.f32 0.03125, %v1862_v45  ;;  %v1886_v19 = vmul.f32 %v3870_v9, %v3870_v9 }
 0x435   : > { %v3875_v62 = vsub.f32 %v3834_v6, %v1871_v11  ;;  %v3878_v56 = vsub.f32 %v3829_v7, %v1872_v60  ;;  %v1902_v27 = vsel %vm835_vm0, %v1886_v19, 0.0 }
 0x436   : > { %v1865_v35 = vpop.xlane.xlu1 %1864  ;;  %1903 = vadd.xlane.f32.xlu0 %v1902_v27 }
 0x437   : > { %v1873_v15 = vmul.f32 0.03125, %v1865_v35  ;;  %v1887_v28 = vmul.f32 %v3875_v62, %v3875_v62  ;;  %v1888_v16 = vmul.f32 %v3878_v56, %v3878_v56 }
 0x439   : > { %v3886_v25 = vsub.f32 %v3837_v13, %v1873_v15  ;;  %v1905_v31 = vsel %vm835_vm0, %v1887_v28, 0.0  ;;  %v1908_v38 = vsel %vm835_vm0, %v1888_v16, 0.0 }
 0x43a   : > { %1906 = vadd.xlane.f32.xlu1 %v1905_v31  ;;  %1909 = vadd.xlane.f32.xlu0 %v1908_v38 }
 0x43b   : > { %v1889_v29 = vmul.f32 %v3886_v25, %v3886_v25 }
 0x43d   : > { %v1911_v40 = vsel %vm835_vm0, %v1889_v29, 0.0 }
 0x43e   : > { %1912 = vadd.xlane.f32.xlu1 %v1911_v40 }
 0x4a3   : > { %v1892_v23 = vpop.xlane.xlu0 %1891 }
 0x4a4   : > { %v1914_v61 = vmul.f32 0.03125, %v1892_v23 }
 0x4a6   : > { %v1922_v3 = vadd.f32 1e-05, %v1914_v61 }
 0x4a7   : > { %v1895_v18 = vpop.xlane.xlu1 %1894  ;;  %v1898_v49 = vpop.xlane.xlu0 %1897 }
 0x4a8   : > { %2916 = vrsqrt.f32 %v1922_v3  ;;  %v1915_v41 = vmul.f32 0.03125, %v1895_v18  ;;  %v1916_v53 = vmul.f32 0.03125, %v1898_v49 }
 0x4aa   : > { %v1923_v43 = vadd.f32 1e-05, %v1915_v41  ;;  %v1924_v37 = vadd.f32 1e-05, %v1916_v53 }
 0x4ab   : > { %v1901_v52 = vpop.xlane.xlu1 %1900 }
 0x4ac   : > { %2918 = vrsqrt.f32 %v1923_v43  ;;  %v1917_v55 = vmul.f32 0.03125, %v1901_v52  ;;  %v2831_v52 = vld [vmem:[%s4110_s18 + $0x20] sm:$0xff]  }
 0x4ad   : > { %2920 = vrsqrt.f32 %v1924_v37 }
 0x4ae   : > { %v1925_v54 = vadd.f32 1e-05, %v1917_v55  ;;  %v2832_v55 = vld [vmem:[%s4110_s18 + $0x18] sm:$0xff]  }
 0x4b0   : > { %2922 = vrsqrt.f32 %v1925_v54  ;;  %v2833_v54 = vld [vmem:[%s4110_s18 + $0x10] sm:$0xff]  }
 0x4b5   : > { %v2917_v33 = vpop.eup %2916 }
 0x4b6   : > { %v1938_v2 = vmul.f32 %v2917_v33, %v3846_v36  ;;  %v2834_v33 = vld [vmem:[%s4110_s18 + $0x8] sm:$0xff]  }
 0x4b8   : > { %v1952_v20 = vmul.f32 %v2648_v51, %v1938_v2  ;;  %v2835_v2 = vld [vmem:[%s4110_s18] sm:$0xff]  }
 0x4b9   : > { %v2919_v42 = vpop.eup %2918 }
 0x4ba   : > { %v2921_v1 = vpop.eup %2920  ;;  %v1939_v58 = vmul.f32 %v2919_v42, %v3851_v50  ;;  %v1966_v14 = vadd.f32 %v2649_v39, %v1952_v20 }
 0x4bb   : > { %v1940_v59 = vmul.f32 %v2921_v1, %v3854_v4 }
 0x4bc   : > { %v1953_v22 = vmul.f32 %v2648_v51, %v1939_v58 }
 0x4bd   : > { %v2923_v57 = vpop.eup %2922  ;;  %v1954_v30 = vmul.f32 %v2648_v51, %v1940_v59 }
 0x4be   : > { %v1941_v36 = vmul.f32 %v2923_v57, %v3862_v5  ;;  %v1967_v8 = vadd.f32 %v2649_v39, %v1953_v22 }
 0x4bf   : > { %v1904_v0 = vpop.xlane.xlu0 %1903  ;;  %v1968_v50 = vadd.f32 %v2649_v39, %v1954_v30 }
 0x4c0   : > { %v1955_v26 = vmul.f32 %v2648_v51, %v1941_v36  ;;  %v1918_v12 = vmul.f32 0.03125, %v1904_v0  ;;  %v1978_v46 = vpack.c.bf16 %v1967_v8, %v1966_v14 }
 0x4c2   : > { %v1926_v17 = vadd.f32 1e-05, %v1918_v12  ;;  %2762 = vmatprep.mubr.msk.bf16.mxu1 %vm835_vm0, %v1978_v46  ;;  %v1969_v4 = vadd.f32 %v2649_v39, %v1955_v26 }
 0x4c3   : > { %v1907_v10 = vpop.xlane.xlu1 %1906  ;;  %v1910_v44 = vpop.xlane.xlu0 %1909 }
 0x4c4   : > { %2924 = vrsqrt.f32 %v1926_v17  ;;  %v1919_v45 = vmul.f32 0.03125, %v1907_v10  ;;  %v1920_v11 = vmul.f32 0.03125, %v1910_v44  ;;  %v1979_v60 = vpack.c.bf16 %v1969_v4, %v1968_v50 }
 0x4c6   : > { %v1927_v19 = vadd.f32 1e-05, %v1919_v45  ;;  %v1928_v27 = vadd.f32 1e-05, %v1920_v11  ;;  %2763 = vmatmul.mubr.msk.bf16.vlgmr.msra.gmra.mxu1 %vm835_vm0, %v1979_v60 }
 0x4c7   : > { %v1913_v5 = vpop.xlane.xlu1 %1912 }
 0x4c8   : > { %2926 = vrsqrt.f32 %v1927_v19  ;;  %v1921_v35 = vmul.f32 0.03125, %v1913_v5 }
 0x4c9   : > { %2928 = vrsqrt.f32 %v1928_v27 }
 0x4ca   : > { %v1929_v15 = vadd.f32 1e-05, %v1921_v35 }
 0x4cc   : > { %2930 = vrsqrt.f32 %v1929_v15 }
 0x4d1   : > { %v2925_v28 = vpop.eup %2924 }
 0x4d2   : > { %v1942_v16 = vmul.f32 %v2925_v28, %v3870_v9 }
 0x4d4   : > { %v1956_v40 = vmul.f32 %v2648_v51, %v1942_v16 }
 0x4d5   : > { %v2927_v31 = vpop.eup %2926 }
 0x4d6   : > { %v2929_v38 = vpop.eup %2928  ;;  %v1943_v29 = vmul.f32 %v2927_v31, %v3875_v62  ;;  %v1970_v61 = vadd.f32 %v2649_v39, %v1956_v40  ;;  %v2828_v62 = vld [vmem:[%s4110_s18 + $0x38] sm:$0xff]  }
 0x4d7   : > { %v1944_v21 = vmul.f32 %v2929_v38, %v3878_v56  ;;  %2770 = vmatprep.subr.bf16.mxu0 %v2828_v62  ;;  %v2829_v56 = vld [vmem:[%s4110_s18 + $0x30] sm:$0xff]  }
 0x4d8   : > { %v1957_v32 = vmul.f32 %v2648_v51, %v1943_v29  ;;  %2771 = vmatpush3.bf16.msra.mxu0 %v2828_v62 }
 0x4d9   : > { %v2931_v23 = vpop.eup %2930  ;;  %v1958_v49 = vmul.f32 %v2648_v51, %v1944_v21  ;;  %2772 = vmatprep.subr.bf16.mxu0 %v2829_v56 }
 0x4da   : > { %v1971_v3 = vadd.f32 %v2649_v39, %v1957_v32  ;;  %v1945_v18 = vmul.f32 %v2931_v23, %v3886_v25  ;;  %v2830_v25 = vld [vmem:[%s4110_s18 + $0x28] sm:$0xff]  }
 0x4db   : > { %v1972_v43 = vadd.f32 %v2649_v39, %v1958_v49 }
 0x4dc   : > { %v1980_v41 = vpack.c.bf16 %v1971_v3, %v1970_v61  ;;  %v1959_v53 = vmul.f32 %v2648_v51, %v1945_v18  ;;  %2773 = vmatpush3.bf16.msra.mxu0 %v2829_v56  ;;  %v2650_v51 = vld [vmem:[%s4109_s17] ss:$0 sm:$0xff] }
 0x4dd   : > { %2774 = vmatprep.subr.bf16.mxu0 %v2830_v25 }
 0x4de   : > { %2766 = vmatprep.mubr.msk.bf16.mxu1 %vm835_vm0, %v1980_v41  ;;  %v1973_v9 = vadd.f32 %v2649_v39, %v1959_v53 }
 0x4e0   : > { %v1981_v37 = vpack.c.bf16 %v1973_v9, %v1972_v43  ;;  %2775 = vmatpush3.bf16.msra.mxu0 %v2830_v25 }
 0x4e1   : > { %2776 = vmatprep.subr.bf16.mxu0 %v2831_v52 }
 0x4e2   : > { %2767 = vmatmul.mubr.msk.bf16.gmra.mxu1 %vm835_vm0, %v1981_v37 }
 0x4e4   : > { %2777 = vmatpush3.bf16.msra.mxu0 %v2831_v52 }
 0x4e5   : > { %2778 = vmatprep.subr.bf16.mxu0 %v2832_v55 }
 0x4e8   : > { %2779 = vmatpush3.bf16.msra.mxu0 %v2832_v55 }
 0x4e9   : > { %2780 = vmatprep.subr.bf16.mxu0 %v2833_v54 }
 0x4ec   : > { %2781 = vmatpush3.bf16.msra.mxu0 %v2833_v54 }
 0x4ed   : > { %2782 = vmatprep.subr.bf16.mxu0 %v2834_v33 }
 0x4f0   : > { %2783 = vmatpush3.bf16.msra.mxu0 %v2834_v33 }
 0x4f1   : > { %2784 = vmatprep.subr.bf16.mxu0 %v2835_v2 }
 0x4f4   : > { %2785 = vmatpush3.bf16.msra.mxu0 %v2835_v2 }
 0x586   : > { %v2764_v42 = vpop.f32.mrf.mxu1 }
 0x587   : > { %v2056_v1 = vadd.f32 %v2764_v42, %v2650_v51 }
 0x588   : > { %v2047_v58 = vpop.f32.mrf.mxu1 }
 0x589   : > { %v2659_v20 = vmul.f32 -1.442695, %v2056_v1  ;;  %v2048_v59 = vadd.f32 %v2650_v51, %v2047_v58 }
 0x58a   : > { %v2765_v39 = vpop.f32.mrf.mxu1 }
 0x58b   : > { %v2657_v22 = vmul.f32 -1.442695, %v2048_v59  ;;  %v2059_v57 = vadd.f32 %v2765_v39, %v2650_v51  ;;  %2932 = vpow2.f32 %v2659_v20 }
 0x58c   : > { %v2050_v30 = vpop.f32.mrf.mxu1 }
 0x58d   : > { %2934 = vpow2.f32 %v2657_v22  ;;  %v2660_v36 = vmul.f32 -1.442695, %v2059_v57  ;;  %v2051_v14 = vadd.f32 %v2650_v51, %v2050_v30 }
 0x58f   : > { %2936 = vpow2.f32 %v2660_v36  ;;  %v2658_v8 = vmul.f32 -1.442695, %v2051_v14 }
 0x591   : > { %2938 = vpow2.f32 %v2658_v8 }
 0x598   : > { %v2933_v0 = vpop.eup %2932 }
 0x599   : > { %v2104_v17 = vadd.f32 1.0, %v2933_v0 }
 0x59a   : > { %v2935_v26 = vpop.eup %2934 }
 0x59b   : > { %v2102_v12 = vadd.f32 1.0, %v2935_v26 }
 0x59c   : > { %v2937_v46 = vpop.eup %2936 }
 0x59d   : > { %v2105_v50 = vadd.f32 1.0, %v2937_v46  ;;  %2940 = vrcp.f32 %v2102_v12 }
 0x59e   : > { %v2939_v4 = vpop.eup %2938 }
 0x59f   : > { %2942 = vrcp.f32 %v2105_v50  ;;  %v2103_v10 = vadd.f32 1.0, %v2939_v4 }
 0x5a0   : > { %2944 = vrcp.f32 %v2104_v17 }
 0x5a1   : > { %2946 = vrcp.f32 %v2103_v10 }
 0x5a2   : > { %v2768_v44 = vpop.f32.mrf.mxu1 }
 0x5a3   : > { %v2072_v45 = vadd.f32 %v2768_v44, %v2650_v51 }
 0x5a4   : > { %v2063_v11 = vpop.f32.mrf.mxu1 }
 0x5a5   : > { %v2663_v60 = vmul.f32 -1.442695, %v2072_v45  ;;  %v2064_v19 = vadd.f32 %v2650_v51, %v2063_v11 }
 0x5a6   : > { %v2769_v27 = vpop.f32.mrf.mxu1 }
 0x5a7   : > { %v2661_v5 = vmul.f32 -1.442695, %v2064_v19  ;;  %v2075_v35 = vadd.f32 %v2769_v27, %v2650_v51  ;;  %2948 = vpow2.f32 %v2663_v60 }
 0x5a8   : > { %v2066_v15 = vpop.f32.mrf.mxu1 }
 0x5a9   : > { %2950 = vpow2.f32 %v2661_v5  ;;  %v2664_v28 = vmul.f32 -1.442695, %v2075_v35  ;;  %v2067_v16 = vadd.f32 %v2650_v51, %v2066_v15 }
 0x5aa   : > { %v2941_v31 = vpop.eup %2940 }
 0x5ab   : > { %2952 = vpow2.f32 %v2664_v28  ;;  %v2662_v38 = vmul.f32 -1.442695, %v2067_v16  ;;  %v2126_v23 = vmul.f32 %v2941_v31, %v2048_v59  ;;  %v2665_v59 = vld [vmem:[%s4111_s19] ss:$0 sm:$0xff] }
 0x5ac   : > { %v2943_v29 = vpop.eup %2942 }
 0x5ad   : > { %v2945_v40 = vpop.eup %2944  ;;  %2954 = vpow2.f32 %v2662_v38  ;;  %v2129_v32 = vmul.f32 %v2943_v29, %v2059_v57 }
 0x5ae   : > { %v2947_v21 = vpop.eup %2946  ;;  %v2128_v3 = vmul.f32 %v2945_v40, %v2056_v1 }
 0x5af   : > { %v2127_v61 = vmul.f32 %v2947_v21, %v2051_v14 }
 0x5b0   : > { %v2151_v49 = vpack.c.bf16 %v2129_v32, %v2128_v3 }
 0x5b1   : > { %v2150_v18 = vpack.c.bf16 %v2127_v61, %v2126_v23 }
 0x5b3   : > { %2786 = vmatprep.mubr.bf16.mxu0 %v2150_v18 }
 0x5b4   : > { %2787 = vmatmul.mubr.bf16.vlgmr.msra.gmra.mxu0 %v2151_v49  ;;  %v2949_v41 = vpop.eup %2948 }
 0x5b5   : > { %v2108_v37 = vadd.f32 1.0, %v2949_v41 }
 0x5b6   : > { %v2951_v53 = vpop.eup %2950 }
 0x5b7   : > { %v2106_v43 = vadd.f32 1.0, %v2951_v53 }
 0x5b8   : > { %v2953_v9 = vpop.eup %2952 }
 0x5b9   : > { %v2109_v62 = vadd.f32 1.0, %v2953_v9  ;;  %2956 = vrcp.f32 %v2106_v43 }
 0x5ba   : > { %v2955_v56 = vpop.eup %2954 }
 0x5bb   : > { %2958 = vrcp.f32 %v2109_v62  ;;  %v2107_v25 = vadd.f32 1.0, %v2955_v56 }
 0x5bc   : > { %2960 = vrcp.f32 %v2108_v37 }
 0x5bd   : > { %2962 = vrcp.f32 %v2107_v25 }
 0x5c6   : > { %v2957_v52 = vpop.eup %2956 }
 0x5c7   : > { %v2130_v51 = vmul.f32 %v2957_v52, %v2064_v19 }
 0x5c8   : > { %v2959_v55 = vpop.eup %2958 }
 0x5c9   : > { %v2961_v54 = vpop.eup %2960  ;;  %v2133_v2 = vmul.f32 %v2959_v55, %v2075_v35 }
 0x5ca   : > { %v2963_v33 = vpop.eup %2962  ;;  %v2132_v1 = vmul.f32 %v2961_v54, %v2072_v45 }
 0x5cb   : > { %v2131_v42 = vmul.f32 %v2963_v33, %v2067_v16 }
 0x5cc   : > { %v2153_v20 = vpack.c.bf16 %v2133_v2, %v2132_v1 }
 0x5cd   : > { %v2152_v58 = vpack.c.bf16 %v2131_v42, %v2130_v51 }
 0x5cf   : > { %2790 = vmatprep.mubr.bf16.mxu0 %v2152_v58 }
 0x5d0   : > { %2791 = vmatmul.mubr.bf16.gmra.mxu0 %v2153_v20 }
 0x674   : > { %v2788_v39 = vpop.f32.mrf.mxu0 }
 0x675   : > { %v2252_v22 = vadd.f32 %v2788_v39, %v2665_v59 }
 0x676   : > { %v2243_v57 = vpop.f32.mrf.mxu0 }
 0x677   : > { %v2276_v30 = vmul.f32 0.5, %v2252_v22  ;;  %v2244_v36 = vadd.f32 %v2665_v59, %v2243_v57 }
 0x678   : > { %v2789_v14 = vpop.f32.mrf.mxu0 }
 0x679   : > { %v2274_v8 = vmul.f32 0.5, %v2244_v36  ;;  %v2255_v0 = vadd.f32 %v2789_v14, %v2665_v59  ;;  %v2284_v26 = vadd.f32 %v2276_v30, %v3809_v24 }
 0x67a   : > { %v2246_v12 = vpop.f32.mrf.mxu0 }
 0x67b   : > { %v2277_v46 = vmul.f32 0.5, %v2255_v0  ;;  %v2247_v17 = vadd.f32 %v2665_v59, %v2246_v12  ;;  %v2306_v50 = vsel %vm835_vm0, %v2284_v26, 0.0  ;;  %v2282_v4 = vadd.f32 %v2274_v8, %v3806_v48 }
 0x67c   : > { %2307 = vadd.xlane.f32.xlu0 %v2306_v50 }
 0x67d   : > { %v2275_v10 = vmul.f32 0.5, %v2247_v17  ;;  %v2285_v44 = vadd.f32 %v2277_v46, %v3817_v47  ;;  %v2300_v11 = vsel %vm835_vm0, %v2282_v4, 0.0 }
 0x67f   : > { %v2309_v45 = vsel %vm835_vm0, %v2285_v44, 0.0  ;;  %v2283_v60 = vadd.f32 %v2275_v10, %v3814_v34 }
 0x680   : > { %2310 = vadd.xlane.f32.xlu1 %v2309_v45  ;;  %2301 = vadd.xlane.f32.xlu0 %v2300_v11 }
 0x681   : > { %v2303_v24 = vsel %vm835_vm0, %v2283_v60, 0.0 }
 0x684   : > { %2304 = vadd.xlane.f32.xlu1 %v2303_v24 }
 0x690   : > { %v2792_v19 = vpop.f32.mrf.mxu0 }
 0x691   : > { %v2268_v27 = vadd.f32 %v2792_v19, %v2665_v59 }
 0x692   : > { %v2259_v5 = vpop.f32.mrf.mxu0 }
 0x693   : > { %v2260_v35 = vadd.f32 %v2665_v59, %v2259_v5  ;;  %v2280_v15 = vmul.f32 0.5, %v2268_v27 }
 0x694   : > { %v2793_v48 = vpop.f32.mrf.mxu0 }
 0x695   : > { %v2278_v28 = vmul.f32 0.5, %v2260_v35  ;;  %v2271_v16 = vadd.f32 %v2793_v48, %v2665_v59  ;;  %v2288_v21 = vadd.f32 %v2280_v15, %v3829_v7 }
 0x696   : > { %v2262_v47 = vpop.f32.mrf.mxu0 }
 0x697   : > { %v2263_v31 = vadd.f32 %v2665_v59, %v2262_v47  ;;  %v2286_v38 = vadd.f32 %v2278_v28, %v3826_v63  ;;  %v2281_v29 = vmul.f32 0.5, %v2271_v16  ;;  %v2318_v61 = vsel %vm835_vm0, %v2288_v21, 0.0 }
 0x699   : > { %v2279_v40 = vmul.f32 0.5, %v2263_v31  ;;  %v2312_v34 = vsel %vm835_vm0, %v2286_v38, 0.0  ;;  %v2289_v3 = vadd.f32 %v2281_v29, %v3837_v13  ;;  %v4006_v31 = vld [vmem:[%s4112_s20] ss:$0 sm:$0xff] }
 0x69a   : > { %2313 = vadd.xlane.f32.xlu0 %v2312_v34  ;;  %v4012_v29 = vld [vmem:[%s4113_s21] ss:$0 sm:$0xff] }
 0x69b   : > { %v2287_v32 = vadd.f32 %v2279_v40, %v3834_v6  ;;  %v2321_v18 = vsel %vm835_vm0, %v2289_v3, 0.0 }
 0x69d   : > { %v2315_v23 = vsel %vm835_vm0, %v2287_v32, 0.0 }
 0x69e   : > { %2316 = vadd.xlane.f32.xlu1 %v2315_v23  ;;  %2319 = vadd.xlane.f32.xlu0 %v2318_v61 }
 0x6a2   : > { %2322 = vadd.xlane.f32.xlu1 %v2321_v18 }
 0x705   : > { %v2308_v63 = vpop.xlane.xlu0 %2307 }
 0x706   : > { %v2326_v49 = vmul.f32 0.03125, %v2308_v63 }
 0x708   : > { %v3963_v41 = vsub.f32 %v2284_v26, %v2326_v49 }
 0x709   : > { %v2311_v53 = vpop.xlane.xlu1 %2310  ;;  %v2302_v7 = vpop.xlane.xlu0 %2301 }
 0x70a   : > { %v2327_v43 = vmul.f32 0.03125, %v2311_v53  ;;  %v2324_v9 = vmul.f32 0.03125, %v2302_v7  ;;  %v2342_v6 = vmul.f32 %v3963_v41, %v3963_v41 }
 0x70c   : > { %v3967_v37 = vsub.f32 %v2285_v44, %v2327_v43  ;;  %v3969_v62 = vsub.f32 %v2282_v4, %v2324_v9  ;;  %v2354_v13 = vsel %vm835_vm0, %v2342_v6, 0.0  ;;  %v2290_v43 = vld [vmem:[%s4016_s30] sm:$0xff] }
 0x70d   : > { %v2305_v56 = vpop.xlane.xlu1 %2304  ;;  %2355 = vadd.xlane.f32.xlu0 %v2354_v13 }
 0x70e   : > { %v2325_v25 = vmul.f32 0.03125, %v2305_v56  ;;  %v2343_v52 = vmul.f32 %v3967_v37, %v3967_v37  ;;  %v2340_v55 = vmul.f32 %v3969_v62, %v3969_v62  ;;  %v2291_v56 = vld [vmem:[%s4016_s30 + $0x8] sm:$0xff] }
 0x710   : > { %v3976_v54 = vsub.f32 %v2283_v60, %v2325_v25  ;;  %v2357_v33 = vsel %vm835_vm0, %v2343_v52, 0.0  ;;  %v2348_v2 = vsel %vm835_vm0, %v2340_v55, 0.0 }
 0x711   : > { %2358 = vadd.xlane.f32.xlu1 %v2357_v33  ;;  %2349 = vadd.xlane.f32.xlu0 %v2348_v2 }
 0x712   : > { %v2341_v51 = vmul.f32 %v3976_v54, %v3976_v54 }
 0x714   : > { %v2351_v42 = vsel %vm835_vm0, %v2341_v51, 0.0 }
 0x715   : > { %2352 = vadd.xlane.f32.xlu1 %v2351_v42 }
 0x723   : > { %v2314_v1 = vpop.xlane.xlu0 %2313 }
 0x724   : > { %v2328_v58 = vmul.f32 0.03125, %v2314_v1 }
 0x726   : > { %v3983_v20 = vsub.f32 %v2286_v38, %v2328_v58 }
 0x727   : > { %v2317_v59 = vpop.xlane.xlu1 %2316  ;;  %v2320_v39 = vpop.xlane.xlu0 %2319 }
 0x728   : > { %v2329_v22 = vmul.f32 0.03125, %v2317_v59  ;;  %v2330_v57 = vmul.f32 0.03125, %v2320_v39  ;;  %v2344_v30 = vmul.f32 %v3983_v20, %v3983_v20 }
 0x72a   : > { %v3987_v36 = vsub.f32 %v2287_v32, %v2329_v22  ;;  %v3989_v14 = vsub.f32 %v2288_v21, %v2330_v57  ;;  %v2360_v8 = vsel %vm835_vm0, %v2344_v30, 0.0  ;;  %v2292_v21 = vld [vmem:[%s4016_s30 + $0x10] sm:$0xff] }
 0x72b   : > { %v2323_v0 = vpop.xlane.xlu1 %2322  ;;  %2361 = vadd.xlane.f32.xlu0 %v2360_v8 }
 0x72c   : > { %v2331_v26 = vmul.f32 0.03125, %v2323_v0  ;;  %v2345_v12 = vmul.f32 %v3987_v36, %v3987_v36  ;;  %v2346_v46 = vmul.f32 %v3989_v14, %v3989_v14 }
 0x72e   : > { %v3996_v17 = vsub.f32 %v2289_v3, %v2331_v26  ;;  %v2363_v50 = vsel %vm835_vm0, %v2345_v12, 0.0  ;;  %v2366_v4 = vsel %vm835_vm0, %v2346_v46, 0.0  ;;  %v2294_v12 = vld [vmem:[%s4016_s30 + $0x20] sm:$0xff] }
 0x72f   : > { %2364 = vadd.xlane.f32.xlu1 %v2363_v50  ;;  %2367 = vadd.xlane.f32.xlu0 %v2366_v4 }
 0x730   : > { %v2347_v10 = vmul.f32 %v3996_v17, %v3996_v17 }
 0x732   : > { %v2369_v44 = vsel %vm835_vm0, %v2347_v10, 0.0 }
 0x733   : > { %2370 = vadd.xlane.f32.xlu1 %v2369_v44 }
 0x796   : > { %v2356_v45 = vpop.xlane.xlu0 %2355 }
 0x797   : > { %v2374_v11 = vmul.f32 0.03125, %v2356_v45 }
 0x799   : > { %v2382_v60 = vadd.f32 1e-05, %v2374_v11 }
 0x79a   : > { %v2359_v24 = vpop.xlane.xlu1 %2358  ;;  %v2350_v19 = vpop.xlane.xlu0 %2349 }
 0x79b   : > { %2964 = vrsqrt.f32 %v2382_v60  ;;  %v2375_v27 = vmul.f32 0.03125, %v2359_v24  ;;  %v2372_v5 = vmul.f32 0.03125, %v2350_v19  ;;  %v2296_v19 = vld [vmem:[%s4016_s30 + $0x30] sm:$0xff] }
 0x79d   : > { %v2383_v35 = vadd.f32 1e-05, %v2375_v27  ;;  %v2380_v48 = vadd.f32 1e-05, %v2372_v5 }
 0x79e   : > { %v2353_v15 = vpop.xlane.xlu1 %2352 }
 0x79f   : > { %2966 = vrsqrt.f32 %v2383_v35  ;;  %v2373_v28 = vmul.f32 0.03125, %v2353_v15 }
 0x7a0   : > { %2968 = vrsqrt.f32 %v2380_v48  ;;  %v2297_v48 = vld [vmem:[%s4016_s30 + $0x38] sm:$0xff] }
 0x7a1   : > { %v2381_v16 = vadd.f32 1e-05, %v2373_v28 }
 0x7a3   : > { %2970 = vrsqrt.f32 %v2381_v16 }
 0x7a8   : > { %v2965_v47 = vpop.eup %2964 }
 0x7a9   : > { %v2398_v38 = vmul.f32 %v2965_v47, %v3963_v41  ;;  %v2293_v41 = vld [vmem:[%s4016_s30 + $0x18] sm:$0xff] }
 0x7ab   : > { %v2412_v40 = vmul.f32 %v4006_v31, %v2398_v38 }
 0x7ac   : > { %v2967_v34 = vpop.eup %2966 }
 0x7ad   : > { %v2969_v32 = vpop.eup %2968  ;;  %v2426_v23 = vadd.f32 %v4012_v29, %v2412_v40  ;;  %v2399_v61 = vmul.f32 %v2967_v34, %v3967_v37 }
 0x7ae   : > { %v2396_v3 = vmul.f32 %v2969_v32, %v3969_v62 }
 0x7af   : > { %v2434_v18 = vadd.f32 %v2426_v23, %v2292_v21  ;;  %v2413_v63 = vmul.f32 %v4006_v31, %v2399_v61 }
 0x7b0   : > { %v2971_v49 = vpop.eup %2970  ;;  %v2410_v53 = vmul.f32 %v4006_v31, %v2396_v3 }
 0x7b1   : > { %2442 = vst.msk [vmem:[%s4026_s3 + $0x10] sm:$0xff] %vm835_vm0, %v2434_v18  ;;  %v2427_v7 = vadd.f32 %v4012_v29, %v2413_v63  ;;  %v2397_v9 = vmul.f32 %v2971_v49, %v3976_v54 }
 0x7b2   : > { %v2424_v6 = vadd.f32 %v4012_v29, %v2410_v53 }
 0x7b3   : > { %v2435_v37 = vadd.f32 %v2427_v7, %v2293_v41  ;;  %v2411_v62 = vmul.f32 %v4006_v31, %v2397_v9 }
 0x7b4   : > { %v2432_v13 = vadd.f32 %v2424_v6, %v2290_v43  ;;  %v2362_v25 = vpop.xlane.xlu0 %2361 }
 0x7b5   : > { %2443 = vst.msk [vmem:[%s4026_s3 + $0x18] sm:$0xff] %vm835_vm0, %v2435_v37  ;;  %v2425_v52 = vadd.f32 %v4012_v29, %v2411_v62  ;;  %v2376_v55 = vmul.f32 0.03125, %v2362_v25 }
 0x7b6   : > { %2440 = vst.msk [vmem:[%s4026_s3] sm:$0xff] %vm835_vm0, %v2432_v13 }
 0x7b7   : > { %v2433_v33 = vadd.f32 %v2425_v52, %v2291_v56  ;;  %v2384_v2 = vadd.f32 1e-05, %v2376_v55 }
 0x7b8   : > { %v2365_v51 = vpop.xlane.xlu1 %2364  ;;  %v2368_v42 = vpop.xlane.xlu0 %2367  ;;  %v2503_v47 = vld [vmem:[%s4026_s3 + $0x10] sm:$0xff] (%p3161_p5) }
 0x7b9   : > { %2441 = vst.msk [vmem:[%s4026_s3 + $0x8] sm:$0xff] %vm835_vm0, %v2433_v33  ;;  %2972 = vrsqrt.f32 %v2384_v2  ;;  %v2377_v54 = vmul.f32 0.03125, %v2365_v51  ;;  %v2378_v1 = vmul.f32 0.03125, %v2368_v42  ;;  %2504 = vst [vmem:[%s2456_s25 + $0x20] sm:$0xff] (%p3161_p5), %v2503_v47 }
 0x7bb   : > { %v2385_v58 = vadd.f32 1e-05, %v2377_v54  ;;  %v2386_v59 = vadd.f32 1e-05, %v2378_v1 }
 0x7bc   : > { %v2371_v39 = vpop.xlane.xlu1 %2370 }
 0x7bd   : > { %2974 = vrsqrt.f32 %v2385_v58  ;;  %v2379_v22 = vmul.f32 0.03125, %v2371_v39 }
 0x7be   : > { %2976 = vrsqrt.f32 %v2386_v59 }
 0x7bf   : > { %v2387_v57 = vadd.f32 1e-05, %v2379_v22 }
 0x7c0   : > { %v2501_v16 = vld [vmem:[%s4026_s3 + $0x8] sm:$0xff] (%p3161_p5) }
 0x7c1   : > { %2978 = vrsqrt.f32 %v2387_v57  ;;  %2502 = vst [vmem:[%s2456_s25 + $0x10] sm:$0xff] (%p3161_p5), %v2501_v16 }
 0x7c6   : > { %v2973_v30 = vpop.eup %2972 }
 0x7c7   : > { %v2400_v8 = vmul.f32 %v2973_v30, %v3983_v20  ;;  %v2295_v20 = vld [vmem:[%s4016_s30 + $0x28] sm:$0xff] }
 0x7c9   : > { %v2414_v0 = vmul.f32 %v4006_v31, %v2400_v8 }
 0x7ca   : > { %v2975_v26 = vpop.eup %2974 }
 0x7cb   : > { %v2977_v46 = vpop.eup %2976  ;;  %v2428_v50 = vadd.f32 %v4012_v29, %v2414_v0  ;;  %v2401_v4 = vmul.f32 %v2975_v26, %v3987_v36 }
 0x7cc   : > { %v2402_v10 = vmul.f32 %v2977_v46, %v3989_v14 }
 0x7cd   : > { %v2436_v44 = vadd.f32 %v2428_v50, %v2294_v12  ;;  %v2415_v45 = vmul.f32 %v4006_v31, %v2401_v4 }
 0x7ce   : > { %v2979_v11 = vpop.eup %2978  ;;  %v2416_v60 = vmul.f32 %v4006_v31, %v2402_v10 }
 0x7cf   : > { %2444 = vst.msk [vmem:[%s4026_s3 + $0x20] sm:$0xff] %vm835_vm0, %v2436_v44  ;;  %v2429_v24 = vadd.f32 %v4012_v29, %v2415_v45  ;;  %v2403_v27 = vmul.f32 %v2979_v11, %v3996_v17  ;;  %v2499_v17 = vld [vmem:[%s4026_s3] sm:$0xff] (%p3161_p5) }
 0x7d0   : > { %v2430_v36 = vadd.f32 %v4012_v29, %v2416_v60  ;;  %2500 = vst [vmem:[%s2456_s25] sm:$0xff] (%p3161_p5), %v2499_v17 }
 0x7d1   : > { %v2437_v5 = vadd.f32 %v2429_v24, %v2295_v20  ;;  %v2417_v14 = vmul.f32 %v4006_v31, %v2403_v27  ;;  %v2505_v31 = vld [vmem:[%s4026_s3 + $0x18] sm:$0xff] (%p3161_p5) }
 0x7d2   : > { %v2438_v35 = vadd.f32 %v2430_v36, %v2296_v19  ;;  %2506 = vst [vmem:[%s2456_s25 + $0x30] sm:$0xff] (%p3161_p5), %v2505_v31 }
 0x7d3   : > { %2445 = vst.msk [vmem:[%s4026_s3 + $0x28] sm:$0xff] %vm835_vm0, %v2437_v5  ;;  %v2431_v15 = vadd.f32 %v4012_v29, %v2417_v14  ;;  %2454 = sbr.rel (!%p3161_p5) target bundleno = 2016 (0x7e0), region = 188 }
 0x7d4   : > { %2446 = vst.msk [vmem:[%s4026_s3 + $0x30] sm:$0xff] %vm835_vm0, %v2438_v35 }
 0x7d5   : > { %v2439_v28 = vadd.f32 %v2431_v15, %v2297_v48 }
 0x7d6   : > { %v2507_v38 = vld [vmem:[%s4026_s3 + $0x20] sm:$0xff] (%p3161_p5) }
 0x7d7   : > { %2447 = vst.msk [vmem:[%s4026_s3 + $0x38] sm:$0xff] %vm835_vm0, %v2439_v28  ;;  %2508 = vst [vmem:[%s2456_s25 + $0x40] sm:$0xff] (%p3161_p5), %v2507_v38 }
 0x7da   : > { %v2509_v29 = vld [vmem:[%s4026_s3 + $0x28] sm:$0xff] }
 0x7db   : > { %2510 = vst [vmem:[%s2456_s25 + $0x50] sm:$0xff] %v2509_v29  ;;  %v2511_v40 = vld [vmem:[%s4026_s3 + $0x30] sm:$0xff] }
 0x7dc   : > { %2512 = vst [vmem:[%s2456_s25 + $0x60] sm:$0xff] %v2511_v40 }
 0x7de   : > { %v2513_v34 = vld [vmem:[%s4026_s3 + $0x38] sm:$0xff] }
 0x7df   : > { %2514 = vst [vmem:[%s2456_s25 + $0x70] sm:$0xff] %v2513_v34 }
 0x7e0 PF: > { %s4188_s29 = sld [smem:[#allocation5_spill]]  ;;  %s4190_s3 = smov %s3006_s28 }
 0x7e1   : > { %s4189_s24 = sld [smem:[#allocation6_spill]] }
 0x7e6   : > { %p29_p10 = scmp.ge.s32.totalorder %s4188_s29, 4  }
 0x7e7   : > { %s4191_s28 = smov %s4189_s24 }
 0x7e8   :  { %31 = sbr.rel (!%p29_p10) target bundleno = 10 (0xa), region = 265 }

// kernel: _lambda_.4
= control target key start
LH: loop header
LB: loop body
LE: loop exit
PB: predicated region body
PF: predicated region fallthrough
CT: control target
= control target key end

     0   :  { %s4355_s25 = smov 0   ;;  %s5153_s0 = inlined_call_operand.vmem [shape: f32[8,16,32], index: 0, kind: input, shape index: {}]   ;;  %s5154_s1 = inlined_call_operand.vmem [shape: f32[1,32], index: 1, kind: input, shape index: {}, may-alias: {1,7}]   ;;  %s5155_s2 = inlined_call_operand.vmem [shape: f32[1,32], index: 2, kind: input, shape index: {}, may-alias: {2,8}]   ;;  %s5156_s3 = inlined_call_operand.vmem [shape: bf16[32,128], index: 3, kind: input, shape index: {}]   ;;  %s5157_s4 = inlined_call_operand.vmem [shape: f32[1,128], index: 4, kind: input, shape index: {}]   ;;  %s5158_s5 = inlined_call_operand.vmem [shape: bf16[128,32], index: 5, kind: input, shape index: {}]   ;;  %s5159_s6 = inlined_call_operand.vmem [shape: f32[1,32], index: 6, kind: input, shape index: {}]   ;;  %s5160_s7 = inlined_call_operand.vmem [shape: f32[1,32], index: 7, kind: input, shape index: {}, may-alias: {1,7}]   ;;  %s5161_s8 = inlined_call_operand.vmem [shape: f32[1,32], index: 8, kind: input, shape index: {}, may-alias: {2,8}]   ;;  %s5162_s9 = inlined_call_operand.vmem [shape: bf16[32,96], index: 9, kind: input, shape index: {}]   ;;  %s5163_s10 = inlined_call_operand.vmem [shape: f32[1,96], index: 10, kind: input, shape index: {}]   ;;  %s5164_s11 = inlined_call_operand.vmem [shape: bf16[32,32], index: 11, kind: input, shape index: {}]   ;;  %s5165_s12 = inlined_call_operand.vmem [shape: f32[1,32], index: 12, kind: input, shape index: {}]   ;;  %s5166_s13 = inlined_call_operand.vmem [shape: f32[8,16,32], index: 13, kind: output, shape index: {}]  }
   0x1 LB: > { %s3548_s26 = sadd.s32 4294967295, %s4270_s25   ;;  %p3552_p0 = scmp.ge.s32.totalorder %s4270_s25, 1  ;;  %s4270_s25 = sphi %s4355_s25, %s23_s25  }
   0x2   : > { %p389_p1 = scmp.lt.s32.totalorder %s4270_s25, 3 }
   0x4   : > { %p390_p2 = pnand %p3552_p0, %p389_p1 }
   0x5   : > { %s3553_s27 = sshll.u32 (!%p390_p2), %s3548_s26, 2  ;;  %s4274_s26 = smov (!%p390_p2), 96  }
   0x6   : > { %393 = sbr.rel (%p390_p2) target bundleno = 4550 (0x11c6), region = 72  ;;  %p436_p3 = scmp.lt.s32.totalorder (!%p390_p2), %s3553_s27, 7 }
   0x7   : > { %s4275_s29 = smov (!%p390_p2), 64   ;;  %s4276_s30 = smov (!%p390_p2), 88  }
   0x8   : > { %s4278_s15 = smov (!%p390_p2), 56   ;;  %s4279_s16 = smov (!%p390_p2), 80  }
   0x9   : > { %s4280_s17 = smov (!%p390_p2), 112   ;;  %s4281_s22 = smov (!%p390_p2), 48  }
   0xa   : > { %s4282_s23 = smov (!%p390_p2), 72   ;;  %s4283_s24 = smov (!%p390_p2), 104  }
   0xb   : > { %s5168_s27 = smov (!%p436_p3, %s3553_s27), 7  ;;  %vm460_vm0 = vcmask 261120   ;;  %v4060_v56 = vld [vmem:[%s5156_s3 + $0x8] sm:$0xff]   ;;  %v4061_v57 = vld [vmem:[%s5156_s3] sm:$0xff]   ;;  %vm4273_vm1 = vmmov 0   ;;  %vm1171_vm2 = vcmask 64512  }
   0xc   : > { %s3645_s28 = sshll.u32 %s5168_s27, 4  ;;  %3755 = vmatprep.subr.bf16.mxu0 %v4060_v56  ;;  %vm1369_vm3 = vcmask 130048   ;;  %vm2158_vm4 = vcmask 1043456  }
   0xd   : > { %s440_s14 = scalar_lea.vmem %s5153_s0, %s3645_s28  ;;  %3756 = vmatpush3.bf16.msra.mxu0 %v4060_v56  ;;  %s5121_s20 = scalar_lea.vmem %s5166_s13, %s3645_s28 }
   0xe   : > { %v4371_v0 = vld [vmem:[%s440_s14] sm:$0xff]  ;;  %v4373_v1 = vld [vmem:[%s440_s14 + $0x10] sm:$0xff]  ;;  %v4375_v2 = vld [vmem:[%s440_s14 + $0x8] sm:$0xff]  ;;  %3757 = vmatprep.subr.bf16.mxu0 %v4061_v57 }
   0xf   : > { %v461_v3 = vsel %vm460_vm0, %v4371_v0, 0.0  ;;  %v467_v4 = vsel %vm460_vm0, %v4373_v1, 0.0  ;;  %v4381_v5 = vld [vmem:[%s440_s14 + $0x18] sm:$0xff]  ;;  %v464_v6 = vsel %vm460_vm0, %v4375_v2, 0.0  ;;  %v4385_v7 = vld [vmem:[%s440_s14 + $0x20] sm:$0xff]  ;;  %v4389_v9 = vld [vmem:[%s440_s14 + $0x28] sm:$0xff] }
  0x10   : > { %462 = vadd.xlane.f32.xlu0 %v461_v3  ;;  %468 = vadd.xlane.f32.xlu1 %v467_v4  ;;  %v470_v8 = vsel %vm460_vm0, %v4381_v5, 0.0  ;;  %v473_v10 = vsel %vm460_vm0, %v4385_v7, 0.0  ;;  %v476_v11 = vsel %vm460_vm0, %v4389_v9, 0.0  ;;  %v4395_v12 = vld [vmem:[%s440_s14 + $0x30] sm:$0xff]  ;;  %v4397_v13 = vld [vmem:[%s440_s14 + $0x38] sm:$0xff]  ;;  %s4277_s14 = smov 120  }
  0x11   : > { %v479_v14 = vsel %vm460_vm0, %v4395_v12, 0.0  ;;  %v482_v15 = vsel %vm460_vm0, %v4397_v13, 0.0  ;;  %3758 = vmatpush3.bf16.msra.mxu0 %v4061_v57 }
  0x14   : > { %465 = vadd.xlane.f32.xlu0 %v464_v6  ;;  %471 = vadd.xlane.f32.xlu1 %v470_v8 }
  0x18   : > { %474 = vadd.xlane.f32.xlu0 %v473_v10  ;;  %477 = vadd.xlane.f32.xlu1 %v476_v11 }
  0x1c   : > { %480 = vadd.xlane.f32.xlu0 %v479_v14  ;;  %483 = vadd.xlane.f32.xlu1 %v482_v15 }
  0x99   : > { %v463_v16 = vpop.xlane.xlu0 %462  ;;  %v469_v17 = vpop.xlane.xlu1 %468 }
  0x9a   : > { %v486_v18 = vmul.f32 0.03125, %v463_v16  ;;  %v488_v19 = vmul.f32 0.03125, %v469_v17 }
  0x9c   : > { %v4404_v20 = vsub.f32 %v4371_v0, %v486_v18  ;;  %v4407_v21 = vsub.f32 %v4373_v1, %v488_v19 }
  0x9d   : > { %v466_v22 = vpop.xlane.xlu0 %465  ;;  %v472_v23 = vpop.xlane.xlu1 %471 }
  0x9e   : > { %v487_v24 = vmul.f32 0.03125, %v466_v22  ;;  %v489_v25 = vmul.f32 0.03125, %v472_v23  ;;  %v502_v26 = vmul.f32 %v4404_v20, %v4404_v20  ;;  %v504_v27 = vmul.f32 %v4407_v21, %v4407_v21 }
  0xa0   : > { %v4414_v28 = vsub.f32 %v4375_v2, %v487_v24  ;;  %v4417_v29 = vsub.f32 %v4381_v5, %v489_v25  ;;  %v510_v30 = vsel %vm460_vm0, %v502_v26, 0.0  ;;  %v516_v33 = vsel %vm460_vm0, %v504_v27, 0.0 }
  0xa1   : > { %511 = vadd.xlane.f32.xlu0 %v510_v30  ;;  %v475_v31 = vpop.xlane.xlu0 %474  ;;  %v478_v32 = vpop.xlane.xlu1 %477 }
  0xa2   : > { %v490_v34 = vmul.f32 0.03125, %v475_v31  ;;  %v491_v35 = vmul.f32 0.03125, %v478_v32  ;;  %v503_v36 = vmul.f32 %v4414_v28, %v4414_v28  ;;  %v505_v37 = vmul.f32 %v4417_v29, %v4417_v29  ;;  %v3559_v32 = vld [vmem:[%s5154_s1] ss:$0 sm:$0xff] }
  0xa4   : > { %v4426_v38 = vsub.f32 %v4385_v7, %v490_v34  ;;  %v4429_v39 = vsub.f32 %v4389_v9, %v491_v35  ;;  %v513_v40 = vsel %vm460_vm0, %v503_v36, 0.0  ;;  %v519_v43 = vsel %vm460_vm0, %v505_v37, 0.0  ;;  %v3560_v37 = vld [vmem:[%s5155_s2] ss:$0 sm:$0xff] }
  0xa5   : > { %517 = vadd.xlane.f32.xlu0 %v516_v33  ;;  %514 = vadd.xlane.f32.xlu1 %v513_v40  ;;  %v481_v41 = vpop.xlane.xlu0 %480  ;;  %v484_v42 = vpop.xlane.xlu1 %483 }
  0xa6   : > { %v492_v44 = vmul.f32 0.03125, %v481_v41  ;;  %v493_v45 = vmul.f32 0.03125, %v484_v42  ;;  %v506_v46 = vmul.f32 %v4426_v38, %v4426_v38  ;;  %v507_v47 = vmul.f32 %v4429_v39, %v4429_v39 }
  0xa8   : > { %v4438_v48 = vsub.f32 %v4395_v12, %v492_v44  ;;  %v4441_v49 = vsub.f32 %v4397_v13, %v493_v45  ;;  %v522_v50 = vsel %vm460_vm0, %v506_v46, 0.0  ;;  %v525_v51 = vsel %vm460_vm0, %v507_v47, 0.0 }
  0xa9   : > { %520 = vadd.xlane.f32.xlu1 %v519_v43  ;;  %523 = vadd.xlane.f32.xlu0 %v522_v50 }
  0xaa   : > { %v508_v52 = vmul.f32 %v4438_v48, %v4438_v48  ;;  %v509_v53 = vmul.f32 %v4441_v49, %v4441_v49 }
  0xac   : > { %v528_v54 = vsel %vm460_vm0, %v508_v52, 0.0  ;;  %v531_v55 = vsel %vm460_vm0, %v509_v53, 0.0 }
  0xad   : > { %526 = vadd.xlane.f32.xlu1 %v525_v51  ;;  %529 = vadd.xlane.f32.xlu0 %v528_v54 }
  0xb1   : > { %532 = vadd.xlane.f32.xlu1 %v531_v55 }
 0x12a   : > { %v512_v58 = vpop.xlane.xlu0 %511 }
 0x12b   : > { %v534_v59 = vmul.f32 0.03125, %v512_v58 }
 0x12d   : > { %v542_v60 = vadd.f32 1e-05, %v534_v59 }
 0x12e   : > { %v515_v61 = vpop.xlane.xlu1 %514  ;;  %v518_v62 = vpop.xlane.xlu0 %517 }
 0x12f   : > { %4072 = vrsqrt.f32 %v542_v60  ;;  %v535_v63 = vmul.f32 0.03125, %v515_v61  ;;  %v536_v3 = vmul.f32 0.03125, %v518_v62 }
 0x131   : > { %v543_v4 = vadd.f32 1e-05, %v535_v63  ;;  %v544_v6 = vadd.f32 1e-05, %v536_v3 }
 0x132   : > { %v521_v8 = vpop.xlane.xlu1 %520  ;;  %v524_v10 = vpop.xlane.xlu0 %523 }
 0x133   : > { %4074 = vrsqrt.f32 %v543_v4  ;;  %v537_v11 = vmul.f32 0.03125, %v521_v8  ;;  %v538_v14 = vmul.f32 0.03125, %v524_v10  ;;  %v4065_v8 = vld [vmem:[%s5158_s5 + $0x20] sm:$0xff]   ;;  %v4066_v10 = vld [vmem:[%s5158_s5 + $0x18] sm:$0xff]  }
 0x134   : > { %4076 = vrsqrt.f32 %v544_v6  ;;  %v4064_v6 = vld [vmem:[%s5158_s5 + $0x28] sm:$0xff]  }
 0x135   : > { %v545_v15 = vadd.f32 1e-05, %v537_v11  ;;  %v546_v16 = vadd.f32 1e-05, %v538_v14  ;;  %v4067_v11 = vld [vmem:[%s5158_s5 + $0x10] sm:$0xff]   ;;  %v4068_v14 = vld [vmem:[%s5158_s5 + $0x8] sm:$0xff]  }
 0x136   : > { %v527_v17 = vpop.xlane.xlu1 %526  ;;  %v530_v18 = vpop.xlane.xlu0 %529 }
 0x137   : > { %4078 = vrsqrt.f32 %v545_v15  ;;  %v539_v19 = vmul.f32 0.03125, %v527_v17  ;;  %v540_v22 = vmul.f32 0.03125, %v530_v18  ;;  %v4069_v15 = vld [vmem:[%s5158_s5] sm:$0xff]  }
 0x138   : > { %4080 = vrsqrt.f32 %v546_v16  ;;  %v3561_v16 = vld [vmem:[%s5157_s4] ss:$0 sm:$0xff] }
 0x139   : > { %v547_v23 = vadd.f32 1e-05, %v539_v19  ;;  %v548_v24 = vadd.f32 1e-05, %v540_v22 }
 0x13a   : > { %v533_v25 = vpop.xlane.xlu1 %532 }
 0x13b   : > { %4082 = vrsqrt.f32 %v547_v23  ;;  %v541_v26 = vmul.f32 0.03125, %v533_v25 }
 0x13c   : > { %v4073_v27 = vpop.eup %4072  ;;  %4084 = vrsqrt.f32 %v548_v24 }
 0x13d   : > { %v549_v30 = vadd.f32 1e-05, %v541_v26  ;;  %v558_v31 = vmul.f32 %v4073_v27, %v4404_v20 }
 0x13f   : > { %4086 = vrsqrt.f32 %v549_v30  ;;  %v572_v36 = vmul.f32 %v3559_v32, %v558_v31 }
 0x140   : > { %v4075_v33 = vpop.eup %4074 }
 0x141   : > { %v4077_v34 = vpop.eup %4076  ;;  %v559_v35 = vmul.f32 %v4075_v33, %v4414_v28  ;;  %v586_v20 = vadd.f32 %v3560_v37, %v572_v36 }
 0x142   : > { %v560_v40 = vmul.f32 %v4077_v34, %v4407_v21 }
 0x143   : > { %v573_v41 = vmul.f32 %v3559_v32, %v559_v35 }
 0x144   : > { %v4079_v42 = vpop.eup %4078  ;;  %v574_v46 = vmul.f32 %v3559_v32, %v560_v40 }
 0x145   : > { %v4081_v43 = vpop.eup %4080  ;;  %v587_v44 = vadd.f32 %v3560_v37, %v573_v41  ;;  %v561_v45 = vmul.f32 %v4079_v42, %v4417_v29 }
 0x146   : > { %v562_v47 = vmul.f32 %v4081_v43, %v4426_v38  ;;  %v588_v53 = vadd.f32 %v3560_v37, %v574_v46 }
 0x147   : > { %v598_v50 = vpack.c.bf16 %v587_v44, %v586_v20  ;;  %v575_v51 = vmul.f32 %v3559_v32, %v561_v45 }
 0x148   : > { %v4083_v28 = vpop.eup %4082  ;;  %v576_v55 = vmul.f32 %v3559_v32, %v562_v47 }
 0x149   : > { %v4085_v52 = vpop.eup %4084  ;;  %3759 = vmatprep.mubr.msk.bf16.mxu0 %vm460_vm0, %v598_v50  ;;  %v589_v54 = vadd.f32 %v3560_v37, %v575_v51  ;;  %v563_v21 = vmul.f32 %v4083_v28, %v4429_v39 }
 0x14a   : > { %v564_v56 = vmul.f32 %v4085_v52, %v4438_v48  ;;  %v590_v29 = vadd.f32 %v3560_v37, %v576_v55  ;;  %v4062_v48 = vld [vmem:[%s5158_s5 + $0x38] sm:$0xff]  }
 0x14b   : > { %v599_v57 = vpack.c.bf16 %v589_v54, %v588_v53  ;;  %v577_v58 = vmul.f32 %v3559_v32, %v563_v21  ;;  %3767 = vmatprep.subr.bf16.mxu1 %v4062_v48 }
 0x14c   : > { %v4087_v59 = vpop.eup %4086  ;;  %v578_v61 = vmul.f32 %v3559_v32, %v564_v56  ;;  %3768 = vmatpush3.bf16.msra.mxu1 %v4062_v48 }
 0x14d   : > { %3760 = vmatmul.mubr.msk.bf16.vlgmr.msra.gmra.mxu0 %vm460_vm0, %v599_v57  ;;  %v591_v38 = vadd.f32 %v3560_v37, %v577_v58  ;;  %v565_v60 = vmul.f32 %v4087_v59, %v4441_v49  ;;  %v4063_v49 = vld [vmem:[%s5158_s5 + $0x30] sm:$0xff]  }
 0x14e   : > { %v592_v3 = vadd.f32 %v3560_v37, %v578_v61  ;;  %3769 = vmatprep.subr.bf16.mxu1 %v4063_v49 }
 0x14f   : > { %v600_v62 = vpack.c.bf16 %v591_v38, %v590_v29  ;;  %v579_v63 = vmul.f32 %v3559_v32, %v565_v60 }
 0x150   : > { %3770 = vmatpush3.bf16.msra.mxu1 %v4063_v49 }
 0x151   : > { %3763 = vmatprep.mubr.msk.bf16.mxu0 %vm460_vm0, %v600_v62  ;;  %v593_v4 = vadd.f32 %v3560_v37, %v579_v63  ;;  %3771 = vmatprep.subr.bf16.mxu1 %v4064_v6 }
 0x153   : > { %v601_v39 = vpack.c.bf16 %v593_v4, %v592_v3 }
 0x154   : > { %3772 = vmatpush3.bf16.msra.mxu1 %v4064_v6 }
 0x155   : > { %3764 = vmatmul.mubr.msk.bf16.gmra.mxu0 %vm460_vm0, %v601_v39  ;;  %3773 = vmatprep.subr.bf16.mxu1 %v4065_v8 }
 0x158   : > { %3774 = vmatpush3.bf16.msra.mxu1 %v4065_v8 }
 0x159   : > { %3775 = vmatprep.subr.bf16.mxu1 %v4066_v10 }
 0x15c   : > { %3776 = vmatpush3.bf16.msra.mxu1 %v4066_v10 }
 0x15d   : > { %3777 = vmatprep.subr.bf16.mxu1 %v4067_v11 }
 0x160   : > { %3778 = vmatpush3.bf16.msra.mxu1 %v4067_v11 }
 0x161   : > { %3779 = vmatprep.subr.bf16.mxu1 %v4068_v14 }
 0x164   : > { %3780 = vmatpush3.bf16.msra.mxu1 %v4068_v14 }
 0x165   : > { %3781 = vmatprep.subr.bf16.mxu1 %v4069_v15 }
 0x168   : > { %3782 = vmatpush3.bf16.msra.mxu1 %v4069_v15 }
 0x20d   : > { %v3761_v17 = vpop.f32.mrf.mxu0 }
 0x20e   : > { %v676_v18 = vadd.f32 %v3761_v17, %v3561_v16 }
 0x20f   : > { %v667_v19 = vpop.f32.mrf.mxu0 }
 0x210   : > { %v3570_v22 = vmul.f32 -1.442695, %v676_v18  ;;  %v668_v23 = vadd.f32 %v3561_v16, %v667_v19 }
 0x211   : > { %v3762_v24 = vpop.f32.mrf.mxu0 }
 0x212   : > { %v3568_v25 = vmul.f32 -1.442695, %v668_v23  ;;  %v679_v26 = vadd.f32 %v3762_v24, %v3561_v16  ;;  %4088 = vpow2.f32 %v3570_v22 }
 0x213   : > { %v670_v27 = vpop.f32.mrf.mxu0 }
 0x214   : > { %4090 = vpow2.f32 %v3568_v25  ;;  %v3571_v30 = vmul.f32 -1.442695, %v679_v26  ;;  %v671_v31 = vadd.f32 %v3561_v16, %v670_v27 }
 0x215   : > { %v3765_v32 = vpop.f32.mrf.mxu0 }
 0x216   : > { %4092 = vpow2.f32 %v3571_v30  ;;  %v3569_v33 = vmul.f32 -1.442695, %v671_v31  ;;  %v692_v34 = vadd.f32 %v3765_v32, %v3561_v16 }
 0x217   : > { %v683_v35 = vpop.f32.mrf.mxu0 }
 0x218   : > { %4094 = vpow2.f32 %v3569_v33  ;;  %v3574_v36 = vmul.f32 -1.442695, %v692_v34  ;;  %v684_v37 = vadd.f32 %v3561_v16, %v683_v35 }
 0x219   : > { %v3766_v40 = vpop.f32.mrf.mxu0 }
 0x21a   : > { %v3572_v41 = vmul.f32 -1.442695, %v684_v37  ;;  %v695_v42 = vadd.f32 %v3766_v40, %v3561_v16  ;;  %4096 = vpow2.f32 %v3574_v36 }
 0x21b   : > { %v686_v43 = vpop.f32.mrf.mxu0 }
 0x21c   : > { %4098 = vpow2.f32 %v3572_v41  ;;  %v3575_v20 = vmul.f32 -1.442695, %v695_v42  ;;  %v687_v44 = vadd.f32 %v3561_v16, %v686_v43 }
 0x21e   : > { %4100 = vpow2.f32 %v3575_v20  ;;  %v3573_v45 = vmul.f32 -1.442695, %v687_v44 }
 0x21f   : > { %v4089_v46 = vpop.eup %4088 }
 0x220   : > { %4102 = vpow2.f32 %v3573_v45  ;;  %v724_v28 = vadd.f32 1.0, %v4089_v46 }
 0x221   : > { %v4091_v47 = vpop.eup %4090 }
 0x222   : > { %v722_v50 = vadd.f32 1.0, %v4091_v47 }
 0x223   : > { %v4093_v51 = vpop.eup %4092 }
 0x224   : > { %v725_v52 = vadd.f32 1.0, %v4093_v51  ;;  %4104 = vrcp.f32 %v722_v50 }
 0x225   : > { %v4095_v53 = vpop.eup %4094 }
 0x226   : > { %4106 = vrcp.f32 %v725_v52  ;;  %v723_v54 = vadd.f32 1.0, %v4095_v53 }
 0x227   : > { %4108 = vrcp.f32 %v724_v28  ;;  %v4097_v21 = vpop.eup %4096 }
 0x228   : > { %4110 = vrcp.f32 %v723_v54  ;;  %v728_v58 = vadd.f32 1.0, %v4097_v21 }
 0x229   : > { %v4099_v55 = vpop.eup %4098 }
 0x22a   : > { %v726_v56 = vadd.f32 1.0, %v4099_v55 }
 0x22b   : > { %v4101_v57 = vpop.eup %4100 }
 0x22c   : > { %v729_v59 = vadd.f32 1.0, %v4101_v57  ;;  %4112 = vrcp.f32 %v726_v56 }
 0x22d   : > { %v4103_v29 = vpop.eup %4102 }
 0x22e   : > { %4114 = vrcp.f32 %v729_v59  ;;  %v727_v38 = vadd.f32 1.0, %v4103_v29 }
 0x22f   : > { %4116 = vrcp.f32 %v728_v58 }
 0x230   : > { %4118 = vrcp.f32 %v727_v38 }
 0x231   : > { %v4105_v60 = vpop.eup %4104 }
 0x232   : > { %v746_v4 = vmul.f32 %v4105_v60, %v668_v23 }
 0x233   : > { %v4107_v61 = vpop.eup %4106 }
 0x234   : > { %v4109_v62 = vpop.eup %4108  ;;  %v749_v3 = vmul.f32 %v4107_v61, %v679_v26 }
 0x235   : > { %v4111_v63 = vpop.eup %4110  ;;  %v748_v48 = vmul.f32 %v4109_v62, %v676_v18  ;;  %v3576_v18 = vld [vmem:[%s5159_s6] ss:$0 sm:$0xff] }
 0x236   : > { %v747_v39 = vmul.f32 %v4111_v63, %v671_v31 }
 0x237   : > { %v771_v6 = vpack.c.bf16 %v749_v3, %v748_v48 }
 0x238   : > { %v770_v49 = vpack.c.bf16 %v747_v39, %v746_v4 }
 0x239   : > { %v4113_v8 = vpop.eup %4112 }
 0x23a   : > { %3783 = vmatprep.mubr.bf16.mxu1 %v770_v49  ;;  %v750_v16 = vmul.f32 %v4113_v8, %v684_v37 }
 0x23b   : > { %v4115_v10 = vpop.eup %4114  ;;  %3784 = vmatmul.mubr.bf16.vlgmr.msra.gmra.mxu1 %v771_v6 }
 0x23c   : > { %v4117_v11 = vpop.eup %4116  ;;  %v753_v15 = vmul.f32 %v4115_v10, %v695_v42 }
 0x23d   : > { %v4119_v14 = vpop.eup %4118  ;;  %v752_v19 = vmul.f32 %v4117_v11, %v692_v34 }
 0x23e   : > { %v751_v17 = vmul.f32 %v4119_v14, %v687_v44 }
 0x23f   : > { %v773_v24 = vpack.c.bf16 %v753_v15, %v752_v19 }
 0x240   : > { %v772_v22 = vpack.c.bf16 %v751_v17, %v750_v16 }
 0x242   : > { %3787 = vmatprep.mubr.bf16.mxu1 %v772_v22 }
 0x243   : > { %3788 = vmatmul.mubr.bf16.gmra.mxu1 %v773_v24 }
 0x2fb   : > { %v3785_v23 = vpop.f32.mrf.mxu1 }
 0x2fc   : > { %v872_v25 = vadd.f32 %v3785_v23, %v3576_v18 }
 0x2fd   : > { %v863_v26 = vpop.f32.mrf.mxu1 }
 0x2fe   : > { %v864_v27 = vadd.f32 %v3576_v18, %v863_v26  ;;  %v896_v30 = vmul.f32 0.5, %v872_v25 }
 0x2ff   : > { %v3786_v31 = vpop.f32.mrf.mxu1 }
 0x300   : > { %v894_v32 = vmul.f32 0.5, %v864_v27  ;;  %v875_v33 = vadd.f32 %v3786_v31, %v3576_v18  ;;  %v4509_v37 = vadd.f32 %v896_v30, %v4373_v1 }
 0x301   : > { %v866_v35 = vpop.f32.mrf.mxu1 }
 0x302   : > { %v4506_v36 = vadd.f32 %v894_v32, %v4371_v0  ;;  %v867_v34 = vadd.f32 %v3576_v18, %v866_v35  ;;  %v897_v40 = vmul.f32 0.5, %v875_v33  ;;  %v918_v1 = vsel %vm460_vm0, %v4509_v37, 0.0 }
 0x303   : > { %v3789_v41 = vpop.f32.mrf.mxu1 }
 0x304   : > { %v895_v42 = vmul.f32 0.5, %v867_v34  ;;  %v888_v43 = vadd.f32 %v3789_v41, %v3576_v18  ;;  %v912_v20 = vsel %vm460_vm0, %v4506_v36, 0.0  ;;  %v4517_v0 = vadd.f32 %v897_v40, %v4381_v5 }
 0x305   : > { %913 = vadd.xlane.f32.xlu0 %v912_v20  ;;  %v879_v44 = vpop.f32.mrf.mxu1 }
 0x306   : > { %v4514_v45 = vadd.f32 %v895_v42, %v4375_v2  ;;  %v880_v46 = vadd.f32 %v3576_v18, %v879_v44  ;;  %v900_v50 = vmul.f32 0.5, %v888_v43  ;;  %v921_v5 = vsel %vm460_vm0, %v4517_v0, 0.0 }
 0x307   : > { %v3790_v47 = vpop.f32.mrf.mxu1 }
 0x308   : > { %v898_v51 = vmul.f32 0.5, %v880_v46  ;;  %v891_v28 = vadd.f32 %v3790_v47, %v3576_v18  ;;  %v915_v52 = vsel %vm460_vm0, %v4514_v45, 0.0  ;;  %v4529_v21 = vadd.f32 %v900_v50, %v4395_v12  ;;  %v4070_v46 = vld [vmem:[%s5162_s9 + $0x8] sm:$0xff]   ;;  %v4071_v47 = vld [vmem:[%s5162_s9] sm:$0xff]  }
 0x309   : > { %916 = vadd.xlane.f32.xlu1 %v915_v52  ;;  %919 = vadd.xlane.f32.xlu0 %v918_v1  ;;  %v882_v53 = vpop.f32.mrf.mxu1 }
 0x30a   : > { %v4524_v2 = vadd.f32 %v898_v51, %v4385_v7  ;;  %v883_v54 = vadd.f32 %v3576_v18, %v882_v53  ;;  %v901_v55 = vmul.f32 0.5, %v891_v28  ;;  %v930_v12 = vsel %vm460_vm0, %v4529_v21, 0.0  ;;  %3791 = vmatprep.subr.bf16.mxu0 %v4070_v46 }
 0x30b   : > { %3792 = vmatpush3.bf16.msra.mxu0 %v4070_v46 }
 0x30c   : > { %v899_v56 = vmul.f32 0.5, %v883_v54  ;;  %v924_v57 = vsel %vm460_vm0, %v4524_v2, 0.0  ;;  %v4537_v7 = vadd.f32 %v901_v55, %v4397_v13  ;;  %3793 = vmatprep.subr.bf16.mxu0 %v4071_v47 }
 0x30d   : > { %922 = vadd.xlane.f32.xlu1 %v921_v5  ;;  %925 = vadd.xlane.f32.xlu0 %v924_v57 }
 0x30e   : > { %v4534_v58 = vadd.f32 %v899_v56, %v4389_v9  ;;  %v933_v29 = vsel %vm460_vm0, %v4537_v7, 0.0 }
 0x30f   : > { %3794 = vmatpush3.bf16.msra.mxu0 %v4071_v47 }
 0x310   : > { %v927_v59 = vsel %vm460_vm0, %v4534_v58, 0.0 }
 0x311   : > { %928 = vadd.xlane.f32.xlu1 %v927_v59  ;;  %931 = vadd.xlane.f32.xlu0 %v930_v12 }
 0x315   : > { %934 = vadd.xlane.f32.xlu1 %v933_v29 }
 0x38e   : > { %v914_v38 = vpop.xlane.xlu0 %913 }
 0x38f   : > { %v936_v60 = vmul.f32 0.03125, %v914_v38 }
 0x391   : > { %v4546_v9 = vsub.f32 %v4506_v36, %v936_v60 }
 0x392   : > { %v917_v61 = vpop.xlane.xlu1 %916  ;;  %v920_v13 = vpop.xlane.xlu0 %919 }
 0x393   : > { %v937_v62 = vmul.f32 0.03125, %v917_v61  ;;  %v938_v63 = vmul.f32 0.03125, %v920_v13  ;;  %v952_v3 = vmul.f32 %v4546_v9, %v4546_v9 }
 0x395   : > { %v4551_v4 = vsub.f32 %v4514_v45, %v937_v62  ;;  %v4554_v39 = vsub.f32 %v4509_v37, %v938_v63  ;;  %v960_v48 = vsel %vm460_vm0, %v952_v3, 0.0 }
 0x396   : > { %v923_v49 = vpop.xlane.xlu1 %922  ;;  %961 = vadd.xlane.f32.xlu0 %v960_v48  ;;  %v926_v6 = vpop.xlane.xlu0 %925 }
 0x397   : > { %v939_v8 = vmul.f32 0.03125, %v923_v49  ;;  %v940_v10 = vmul.f32 0.03125, %v926_v6  ;;  %v953_v11 = vmul.f32 %v4551_v4, %v4551_v4  ;;  %v954_v14 = vmul.f32 %v4554_v39, %v4554_v39 }
 0x399   : > { %v4562_v15 = vsub.f32 %v4517_v0, %v939_v8  ;;  %v4565_v16 = vsub.f32 %v4524_v2, %v940_v10  ;;  %v963_v17 = vsel %vm460_vm0, %v953_v11, 0.0  ;;  %v966_v19 = vsel %vm460_vm0, %v954_v14, 0.0  ;;  %v3585_v11 = vld [vmem:[%s5160_s7] ss:$0 sm:$0xff] }
 0x39a   : > { %964 = vadd.xlane.f32.xlu1 %v963_v17  ;;  %v929_v22 = vpop.xlane.xlu1 %928  ;;  %967 = vadd.xlane.f32.xlu0 %v966_v19  ;;  %v932_v24 = vpop.xlane.xlu0 %931 }
 0x39b   : > { %v941_v18 = vmul.f32 0.03125, %v929_v22  ;;  %v942_v23 = vmul.f32 0.03125, %v932_v24  ;;  %v955_v25 = vmul.f32 %v4562_v15, %v4562_v15  ;;  %v956_v26 = vmul.f32 %v4565_v16, %v4565_v16 }
 0x39d   : > { %v4574_v27 = vsub.f32 %v4534_v58, %v941_v18  ;;  %v4577_v30 = vsub.f32 %v4529_v21, %v942_v23  ;;  %v969_v31 = vsel %vm460_vm0, %v955_v25, 0.0  ;;  %v972_v32 = vsel %vm460_vm0, %v956_v26, 0.0  ;;  %v3586_v18 = vld [vmem:[%s5161_s8] ss:$0 sm:$0xff] }
 0x39e   : > { %970 = vadd.xlane.f32.xlu1 %v969_v31  ;;  %v935_v33 = vpop.xlane.xlu1 %934  ;;  %973 = vadd.xlane.f32.xlu0 %v972_v32 }
 0x39f   : > { %v943_v35 = vmul.f32 0.03125, %v935_v33  ;;  %v957_v34 = vmul.f32 %v4574_v27, %v4574_v27  ;;  %v958_v40 = vmul.f32 %v4577_v30, %v4577_v30 }
 0x3a1   : > { %v4586_v41 = vsub.f32 %v4537_v7, %v943_v35  ;;  %v975_v42 = vsel %vm460_vm0, %v957_v34, 0.0  ;;  %v978_v43 = vsel %vm460_vm0, %v958_v40, 0.0 }
 0x3a2   : > { %976 = vadd.xlane.f32.xlu1 %v975_v42  ;;  %979 = vadd.xlane.f32.xlu0 %v978_v43 }
 0x3a3   : > { %v959_v20 = vmul.f32 %v4586_v41, %v4586_v41 }
 0x3a5   : > { %v981_v44 = vsel %vm460_vm0, %v959_v20, 0.0 }
 0x3a6   : > { %982 = vadd.xlane.f32.xlu1 %v981_v44 }
 0x41f   : > { %v962_v1 = vpop.xlane.xlu0 %961 }
 0x420   : > { %v984_v50 = vmul.f32 0.03125, %v962_v1 }
 0x422   : > { %v992_v51 = vadd.f32 1e-05, %v984_v50 }
 0x423   : > { %v965_v28 = vpop.xlane.xlu1 %964  ;;  %v968_v52 = vpop.xlane.xlu0 %967 }
 0x424   : > { %4120 = vrsqrt.f32 %v992_v51  ;;  %v985_v53 = vmul.f32 0.03125, %v965_v28  ;;  %v986_v54 = vmul.f32 0.03125, %v968_v52 }
 0x426   : > { %v993_v5 = vadd.f32 1e-05, %v985_v53  ;;  %v994_v55 = vadd.f32 1e-05, %v986_v54 }
 0x427   : > { %v971_v56 = vpop.xlane.xlu1 %970  ;;  %v974_v57 = vpop.xlane.xlu0 %973 }
 0x428   : > { %4122 = vrsqrt.f32 %v993_v5  ;;  %v987_v59 = vmul.f32 0.03125, %v971_v56  ;;  %v988_v12 = vmul.f32 0.03125, %v974_v57 }
 0x429   : > { %4124 = vrsqrt.f32 %v994_v55 }
 0x42a   : > { %v995_v29 = vadd.f32 1e-05, %v987_v59  ;;  %v996_v38 = vadd.f32 1e-05, %v988_v12 }
 0x42b   : > { %v977_v60 = vpop.xlane.xlu1 %976  ;;  %v980_v61 = vpop.xlane.xlu0 %979 }
 0x42c   : > { %4126 = vrsqrt.f32 %v995_v29  ;;  %v989_v13 = vmul.f32 0.03125, %v977_v60  ;;  %v990_v62 = vmul.f32 0.03125, %v980_v61 }
 0x42d   : > { %4128 = vrsqrt.f32 %v996_v38 }
 0x42e   : > { %v997_v63 = vadd.f32 1e-05, %v989_v13  ;;  %v998_v3 = vadd.f32 1e-05, %v990_v62 }
 0x42f   : > { %v983_v48 = vpop.xlane.xlu1 %982 }
 0x430   : > { %4130 = vrsqrt.f32 %v997_v63  ;;  %v991_v49 = vmul.f32 0.03125, %v983_v48 }
 0x431   : > { %v4121_v6 = vpop.eup %4120  ;;  %4132 = vrsqrt.f32 %v998_v3 }
 0x432   : > { %v999_v8 = vadd.f32 1e-05, %v991_v49  ;;  %v1008_v10 = vmul.f32 %v4121_v6, %v4546_v9 }
 0x434   : > { %4134 = vrsqrt.f32 %v999_v8  ;;  %v1022_v22 = vmul.f32 %v3585_v11, %v1008_v10 }
 0x435   : > { %v4123_v14 = vpop.eup %4122 }
 0x436   : > { %v4125_v17 = vpop.eup %4124  ;;  %v1009_v19 = vmul.f32 %v4123_v14, %v4551_v4  ;;  %v1036_v32 = vadd.f32 %v3586_v18, %v1022_v22 }
 0x437   : > { %v1010_v24 = vmul.f32 %v4125_v17, %v4554_v39 }
 0x438   : > { %v1023_v23 = vmul.f32 %v3585_v11, %v1009_v19 }
 0x439   : > { %v4127_v25 = vpop.eup %4126  ;;  %v1024_v9 = vmul.f32 %v3585_v11, %v1010_v24 }
 0x43a   : > { %v4129_v26 = vpop.eup %4128  ;;  %v1011_v31 = vmul.f32 %v4127_v25, %v4562_v15  ;;  %v1037_v33 = vadd.f32 %v3586_v18, %v1023_v23 }
 0x43b   : > { %v1012_v35 = vmul.f32 %v4129_v26, %v4565_v16  ;;  %v1038_v39 = vadd.f32 %v3586_v18, %v1024_v9 }
 0x43c   : > { %v1025_v34 = vmul.f32 %v3585_v11, %v1011_v31  ;;  %v1048_v40 = vpack.c.bf16 %v1037_v33, %v1036_v32 }
 0x43d   : > { %v4131_v4 = vpop.eup %4130  ;;  %v1026_v44 = vmul.f32 %v3585_v11, %v1012_v35 }
 0x43e   : > { %v4133_v42 = vpop.eup %4132  ;;  %3795 = vmatprep.mubr.msk.bf16.mxu0 %vm460_vm0, %v1048_v40  ;;  %v1039_v43 = vadd.f32 %v3586_v18, %v1025_v34  ;;  %v1013_v20 = vmul.f32 %v4131_v4, %v4574_v27 }
 0x43f   : > { %v1014_v46 = vmul.f32 %v4133_v42, %v4577_v30  ;;  %v1040_v50 = vadd.f32 %v3586_v18, %v1026_v44  ;;  %v4272_v30 = vmov 0.0  }
 0x440   : > { %v1049_v47 = vpack.c.bf16 %v1039_v43, %v1038_v39  ;;  %v1027_v1 = vmul.f32 %v3585_v11, %v1013_v20  ;;  %3803 = vmatprep.subr.bf16.mxu0 %v4272_v30  ;;  %3815 = vmatprep.subr.bf16.mxu1 %v4272_v30 }
 0x441   : > { %v4135_v15 = vpop.eup %4134  ;;  %v1028_v28 = vmul.f32 %v3585_v11, %v1014_v46  ;;  %3817 = vmatprep.mubr.msk.bf16.mxu1 %vm4273_vm1, %v4272_v30 }
 0x442   : > { %3796 = vmatmul.mubr.msk.bf16.vlgmr.msra.gmra.mxu0 %vm460_vm0, %v1049_v47  ;;  %v1041_v16 = vadd.f32 %v3586_v18, %v1027_v1  ;;  %v1015_v51 = vmul.f32 %v4135_v15, %v4586_v41  ;;  %v3587_v41 = vld [vmem:[%s5163_s10] ss:$0 sm:$0xff] }
 0x443   : > { %v1042_v54 = vadd.f32 %v3586_v18, %v1028_v28 }
 0x444   : > { %v1050_v52 = vpack.c.bf16 %v1041_v16, %v1040_v50  ;;  %v1029_v53 = vmul.f32 %v3585_v11, %v1015_v51 }
 0x446   : > { %3799 = vmatprep.mubr.msk.bf16.mxu0 %vm460_vm0, %v1050_v52  ;;  %v1043_v5 = vadd.f32 %v3586_v18, %v1029_v53 }
 0x448   : > { %v1051_v27 = vpack.c.bf16 %v1043_v5, %v1042_v54 }
 0x44a   : > { %3800 = vmatmul.mubr.msk.bf16.gmra.mxu0 %vm460_vm0, %v1051_v27 }
 0x44b   : > { %3805 = vmatprep.mubr.msk.bf16.mxu0 %vm4273_vm1, %v4272_v30 }
 0x502   : > { %v3797_v55 = vpop.f32.mrf.mxu0 }
 0x503   : > { %v1126_v57 = vadd.f32 %v3797_v55, %v3587_v41 }
 0x504   : > { %v1117_v56 = vpop.f32.mrf.mxu0 }
 0x505   : > { %v1118_v12 = vadd.f32 %v3587_v41, %v1117_v56  ;;  %v1154_v60 = vmul.f32 0.35355338, %v1126_v57 }
 0x506   : > { %v3798_v59 = vpop.f32.mrf.mxu0 }
 0x507   : > { %v1129_v29 = vadd.f32 %v3798_v59, %v3587_v41  ;;  %v1152_v3 = vmul.f32 0.35355338, %v1118_v12 }
 0x508   : > { %v1120_v38 = vpop.f32.mrf.mxu0 }
 0x509   : > { %v1155_v61 = vmul.f32 0.35355338, %v1129_v29  ;;  %v4626_v13 = vpack.c.bf16 %v1129_v29, %v1126_v57  ;;  %v1121_v62 = vadd.f32 %v3587_v41, %v1120_v38 }
 0x50a   : > { %v3801_v63 = vpop.f32.mrf.mxu0 }
 0x50b   : > { %v4628_v48 = vpack.c.bf16 %v1155_v61, %v1154_v60  ;;  %v1153_v49 = vmul.f32 0.35355338, %v1121_v62  ;;  %v4630_v6 = vpack.c.bf16 %v1121_v62, %v1118_v12  ;;  %1220 = vrot.lane.b32.xlu1 %v4626_v13, %s4274_s26  ;;  %v1142_v11 = vadd.f32 %v3801_v63, %v3587_v41 }
 0x50c   : > { %v1133_v8 = vpop.f32.mrf.mxu0 }
 0x50d   : > { %v4633_v10 = vpack.c.bf16 %v1153_v49, %v1152_v3  ;;  %1169 = vrot.lane.b32.xlu0 %v4630_v6, %s4274_s26  ;;  %v1134_v17 = vadd.f32 %v3587_v41, %v1133_v8  ;;  %v1158_v24 = vmul.f32 0.35355338, %v1142_v11 }
 0x50e   : > { %v3802_v14 = vpop.f32.mrf.mxu0 }
 0x50f   : > { %v1145_v19 = vadd.f32 %v3802_v14, %v3587_v41  ;;  %v1156_v25 = vmul.f32 0.35355338, %v1134_v17 }
 0x510   : > { %v1136_v22 = vpop.f32.mrf.mxu0 }
 0x511   : > { %v1159_v18 = vmul.f32 0.35355338, %v1145_v19  ;;  %v1137_v23 = vadd.f32 %v3587_v41, %v1136_v22  ;;  %v4643_v33 = vpack.c.bf16 %v1145_v19, %v1142_v11 }
 0x513   : > { %v4636_v26 = vpack.c.bf16 %v1159_v18, %v1158_v24  ;;  %v1157_v9 = vmul.f32 0.35355338, %v1137_v23  ;;  %v4638_v31 = vpack.c.bf16 %v1137_v23, %v1134_v17 }
 0x515   : > { %v4640_v32 = vpack.c.bf16 %v1157_v9, %v1156_v25  ;;  %1270 = vrot.lane.b32.xlu1 %v4638_v31, %s4274_s26 }
 0x519   : > { %1320 = vrot.lane.b32.xlu1 %v4643_v33, %s4274_s26 }
 0x57d   : > { %v1221_v40 = vpop.permute.xlu1 %1220 }
 0x57e   : > { %v1226_v42 = vsel %vm1171_vm2, %v1221_v40, 0 }
 0x57f   : > { %v1170_v35 = vpop.permute.xlu0 %1169 }
 0x580   : > { %v1176_v34 = vsel %vm1171_vm2, %v1170_v35, 0 }
 0x581   : > { %3804 = vmatpush3.bf16.xpose.msra.mxu0 %v1176_v34 }
 0x582   : > { %3809 = vmatprep.subr.bf16.mxu0 %v4272_v30 }
 0x587   : > { %v1271_v4 = vpop.permute.xlu1 %1270 }
 0x588   : > { %v1276_v39 = vsel %vm1171_vm2, %v1271_v4, 0  ;;  %3806 = vmatmul.mubr.msk.bf16.vlgmr.msra.gmra.mxu0 %vm1171_vm2, %v4633_v10 }
 0x589   : > { %3810 = vmatpush3.bf16.xpose.msra.mxu0 %v1226_v42  ;;  %3816 = vmatpush3.bf16.xpose.msra.mxu1 %v1276_v39 }
 0x58a   : > { %3811 = vmatprep.mubr.msk.bf16.mxu0 %vm4273_vm1, %v4272_v30  ;;  %3821 = vmatprep.subr.bf16.mxu0 %v4272_v30 }
 0x58b   : > { %3827 = vmatprep.subr.bf16.mxu1 %v4272_v30  ;;  %v1321_v43 = vpop.permute.xlu1 %1320 }
 0x58c   : > { %v1326_v20 = vsel %vm1171_vm2, %v1321_v43, 0 }
 0x590   : > { %3812 = vmatmul.mubr.msk.bf16.vlgmr.msra.gmra.mxu0 %vm1171_vm2, %v4628_v48  ;;  %3818 = vmatmul.mubr.msk.bf16.vlgmr.msra.gmra.mxu1 %vm1171_vm2, %v4640_v32 }
 0x591   : > { %3822 = vmatpush3.bf16.xpose.msra.mxu0 %v1326_v20  ;;  %3823 = vmatprep.mubr.msk.bf16.mxu0 %vm4273_vm1, %v4272_v30 }
 0x592   : > { %3833 = vmatprep.subr.bf16.mxu0 %v4272_v30  ;;  %3829 = vmatprep.mubr.msk.bf16.mxu1 %vm4273_vm1, %v4272_v30 }
 0x598   : > { %3824 = vmatmul.mubr.msk.bf16.vlgmr.msra.gmra.mxu0 %vm1171_vm2, %v4636_v26 }
 0x599   : > { %3835 = vmatprep.mubr.msk.bf16.mxu0 %vm4273_vm1, %v4272_v30 }
 0x648   : > { %v1212_v44 = vpop.f32.mrf.mxu0 }
 0x649   : > { %v1370_v46 = vsel %vm1369_vm3, %v1212_v44, -inf }
 0x64a   : > { %1371 = vmax.xlane.f32.xlu0 %v1370_v46  ;;  %v3807_v47 = vpop.f32.mrf.mxu0 }
 0x64c   : > { %v1215_v1 = vpop.f32.mrf.mxu0 }
 0x64d   : > { %v1373_v15 = vsel %vm1369_vm3, %v1215_v1, -inf }
 0x64e   : > { %1374 = vmax.xlane.f32.xlu1 %v1373_v15  ;;  %v3808_v50 = vpop.f32.mrf.mxu0 }
 0x650   : > { %v1262_v16 = vpop.f32.mrf.mxu0  ;;  %v1312_v51 = vpop.f32.mrf.mxu1 }
 0x651   : > { %v1376_v28 = vsel %vm1369_vm3, %v1262_v16, -inf  ;;  %v1382_v59 = vsel %vm1369_vm3, %v1312_v51, -inf }
 0x652   : > { %v3819_v52 = vpop.f32.mrf.mxu1  ;;  %1377 = vmax.xlane.f32.xlu0 %v1376_v28  ;;  %v3813_v53 = vpop.f32.mrf.mxu0 }
 0x654   : > { %v1265_v54 = vpop.f32.mrf.mxu0  ;;  %v1315_v5 = vpop.f32.mrf.mxu1 }
 0x655   : > { %v1385_v27 = vsel %vm1369_vm3, %v1315_v5, -inf  ;;  %v1379_v55 = vsel %vm1369_vm3, %v1265_v54, -inf }
 0x656   : > { %v3820_v41 = vpop.f32.mrf.mxu1  ;;  %1386 = vmax.xlane.f32.xlu1 %v1385_v27  ;;  %1380 = vmax.xlane.f32.xlu0 %v1379_v55  ;;  %v3814_v56 = vpop.f32.mrf.mxu0 }
 0x658   : > { %v1362_v57 = vpop.f32.mrf.mxu0 }
 0x659   : > { %v1388_v38 = vsel %vm1369_vm3, %v1362_v57, -inf }
 0x65a   : > { %1383 = vmax.xlane.f32.xlu0 %v1382_v59  ;;  %v3825_v12 = vpop.f32.mrf.mxu0 }
 0x65c   : > { %v4676_v29 = vpop.f32.mrf.mxu0 }
 0x65d   : > { %v1391_v61 = vsel %vm1369_vm3, %v4676_v29, -inf }
 0x65e   : > { %1389 = vmax.xlane.f32.xlu0 %v1388_v38  ;;  %v3826_v60 = vpop.f32.mrf.mxu0 }
 0x667   : > { %1509 = vrot.lane.b32.xlu1 %v4626_v13, %s4275_s29 }
 0x66b   : > { %1556 = vrot.lane.b32.xlu1 %v4638_v31, %s4275_s29 }
 0x674   : > { %1462 = vrot.lane.b32.xlu0 %v4630_v6, %s4275_s29 }
 0x68f   : > { %1392 = vmax.xlane.f32.xlu1 %v1391_v61 }
 0x6a0   : > { %1603 = vrot.lane.b32.xlu1 %v4643_v33, %s4275_s29 }
 0x6d3   : > { %v1372_v62 = vpop.xlane.xlu0 %1371 }
 0x6d4   : > { %v1394_v63 = vsub.f32 %v1212_v44, %v1372_v62 }
 0x6d6   : > { %v1402_v3 = vmul.f32 1.442695, %v1394_v63 }
 0x6d7   : > { %v1375_v49 = vpop.xlane.xlu1 %1374 }
 0x6d8   : > { %4136 = vpow2.f32 %v1402_v3  ;;  %v1395_v8 = vsub.f32 %v1215_v1, %v1375_v49 }
 0x6da   : > { %v1404_v11 = vmul.f32 1.442695, %v1395_v8 }
 0x6db   : > { %v1378_v14 = vpop.xlane.xlu0 %1377 }
 0x6dc   : > { %4138 = vpow2.f32 %v1404_v11  ;;  %v1396_v17 = vsub.f32 %v1262_v16, %v1378_v14 }
 0x6de   : > { %v1406_v19 = vmul.f32 1.442695, %v1396_v17 }
 0x6df   : > { %v1387_v22 = vpop.xlane.xlu1 %1386  ;;  %v1381_v24 = vpop.xlane.xlu0 %1380 }
 0x6e0   : > { %4140 = vpow2.f32 %v1406_v19  ;;  %v1399_v18 = vsub.f32 %v1315_v5, %v1387_v22  ;;  %v1397_v23 = vsub.f32 %v1265_v54, %v1381_v24 }
 0x6e2   : > { %v1408_v25 = vmul.f32 1.442695, %v1397_v23  ;;  %v1412_v9 = vmul.f32 1.442695, %v1399_v18 }
 0x6e3   : > { %v1510_v35 = vpop.permute.xlu1 %1509  ;;  %v1384_v34 = vpop.xlane.xlu0 %1383 }
 0x6e4   : > { %v1398_v40 = vsub.f32 %v1312_v51, %v1384_v34  ;;  %3834 = vmatpush3.bf16.msra.mxu0 %v1510_v35  ;;  %4142 = vpow2.f32 %v1408_v25 }
 0x6e5   : > { %v4685_v4 = vpop.eup %4136  ;;  %3845 = vmatprep.subr.bf16.mxu0 %v4272_v30  ;;  %4144 = vpow2.f32 %v1412_v9 }
 0x6e6   : > { %v1410_v42 = vmul.f32 1.442695, %v1398_v40  ;;  %v1418_v39 = vsel %vm1369_vm3, %v4685_v4, 0.0 }
 0x6e7   : > { %1419 = vadd.xlane.f32.xlu0 %v1418_v39  ;;  %v1390_v43 = vpop.xlane.xlu0 %1389  ;;  %v1557_v55 = vpop.permute.xlu1 %1556 }
 0x6e8   : > { %4146 = vpow2.f32 %v1410_v42  ;;  %v1400_v20 = vsub.f32 %v1362_v57, %v1390_v43 }
 0x6e9   : > { %v4139_v44 = vpop.eup %4138 }
 0x6ea   : > { %v1414_v46 = vmul.f32 1.442695, %v1400_v20  ;;  %v1421_v47 = vsel %vm1369_vm3, %v4139_v44, 0.0 }
 0x6eb   : > { %v1463_v1 = vpop.permute.xlu0 %1462  ;;  %1422 = vadd.xlane.f32.xlu1 %v1421_v47 }
 0x6ec   : > { %4148 = vpow2.f32 %v1414_v46  ;;  %3828 = vmatpush3.bf16.msra.mxu1 %v1463_v1 }
 0x6ed   : > { %v4141_v15 = vpop.eup %4140  ;;  %3839 = vmatprep.subr.bf16.mxu1 %v4272_v30 }
 0x6ee   : > { %v1424_v50 = vsel %vm1369_vm3, %v4141_v15, 0.0 }
 0x6ef   : > { %1425 = vadd.xlane.f32.xlu0 %v1424_v50 }
 0x6f1   : > { %v4143_v16 = vpop.eup %4142 }
 0x6f2   : > { %v1427_v51 = vsel %vm1369_vm3, %v4143_v16, 0.0  ;;  %v4145_v28 = vpop.eup %4144 }
 0x6f3   : > { %1428 = vadd.xlane.f32.xlu1 %v1427_v51  ;;  %v1433_v54 = vsel %vm1369_vm3, %v4145_v28, 0.0 }
 0x6f5   : > { %v4147_v52 = vpop.eup %4146 }
 0x6f6   : > { %v1430_v53 = vsel %vm1369_vm3, %v4147_v52, 0.0 }
 0x6f7   : > { %1431 = vadd.xlane.f32.xlu0 %v1430_v53  ;;  %1434 = vadd.xlane.f32.xlu1 %v1433_v54 }
 0x6f9   : > { %v4696_v5 = vpop.eup %4148 }
 0x6fa   : > { %v1436_v27 = vsel %vm1369_vm3, %v4696_v5, 0.0 }
 0x6fb   : > { %1437 = vadd.xlane.f32.xlu0 %v1436_v27 }
 0x708   : > { %1709 = vrot.lane.b32.xlu1 %v4626_v13, %s4276_s30 }
 0x711   : > { %1657 = vrot.lane.b32.xlu0 %v4630_v6, %s4276_s30 }
 0x715   : > { %1655 = vrot.lane.b32.xlu0 %v4633_v10, %s4277_s14 }
 0x718   : > { %v1393_v41 = vpop.xlane.xlu1 %1392 }
 0x719   : > { %v1401_v56 = vsub.f32 %v4676_v29, %v1393_v41  ;;  %1707 = vrot.lane.b32.xlu0 %v4628_v48, %s4277_s14 }
 0x71b   : > { %v1416_v57 = vmul.f32 1.442695, %v1401_v56 }
 0x71c   : > { %v1604_v38 = vpop.permute.xlu1 %1603 }
 0x71d   : > { %4150 = vpow2.f32 %v1416_v57  ;;  %1759 = vrot.lane.b32.xlu0 %v4640_v32, %s4277_s14 }
 0x72a   : > { %v4706_v59 = vpop.eup %4150 }
 0x72b   : > { %v1439_v12 = vsel %vm1369_vm3, %v4706_v59, 0.0 }
 0x72c   : > { %1440 = vadd.xlane.f32.xlu1 %v1439_v12 }
 0x73d   : > { %1761 = vrot.lane.b32.xlu1 %v4638_v31, %s4276_s30 }
 0x741   : > { %1813 = vrot.lane.b32.xlu1 %v4643_v33, %s4276_s30  ;;  %s4284_s30 = smov 40  }
 0x745   : > { %1811 = vrot.lane.b32.xlu1 %v4636_v26, %s4277_s14 }
 0x770   : > { %v1420_v29 = vpop.xlane.xlu0 %1419 }
 0x771   : > { %4152 = vrcp.f32 %v1420_v29 }
 0x774   : > { %v1423_v60 = vpop.xlane.xlu1 %1422 }
 0x775   : > { %4154 = vrcp.f32 %v1423_v60 }
 0x778   : > { %v1426_v61 = vpop.xlane.xlu0 %1425 }
 0x779   : > { %4156 = vrcp.f32 %v1426_v61 }
 0x77c   : > { %v1429_v62 = vpop.xlane.xlu1 %1428 }
 0x77d   : > { %4158 = vrcp.f32 %v1429_v62 }
 0x77e   : > { %v4153_v63 = vpop.eup %4152 }
 0x77f   : > { %v1450_v11 = vmul.f32 %v4153_v63, %v4685_v4 }
 0x780   : > { %v1432_v3 = vpop.xlane.xlu0 %1431  ;;  %v1435_v49 = vpop.xlane.xlu1 %1434 }
 0x781   : > { %4160 = vrcp.f32 %v1432_v3 }
 0x782   : > { %v4155_v8 = vpop.eup %4154  ;;  %4162 = vrcp.f32 %v1435_v49 }
 0x783   : > { %v1451_v14 = vmul.f32 %v4155_v8, %v4139_v44 }
 0x784   : > { %v1438_v24 = vpop.xlane.xlu0 %1437  ;;  %v1710_v20 = vpop.permute.xlu1 %1709 }
 0x785   : > { %v1458_v17 = vpack.c.bf16 %v1451_v14, %v1450_v11  ;;  %4164 = vrcp.f32 %v1438_v24  ;;  %v1715_v53 = vsel %vm1171_vm2, %v1710_v20, 0 }
 0x786   : > { %v4157_v19 = vpop.eup %4156 }
 0x787   : > { %3830 = vmatmul.mubr.msk.bf16.vlgmr.msra.gmra.mxu1 %vm1369_vm3, %v1458_v17  ;;  %v1452_v18 = vmul.f32 %v4157_v19, %v4141_v15 }
 0x788   : > { %3840 = vmatpush3.bf16.msra.mxu1 %v1557_v55  ;;  %3841 = vmatprep.mubr.msk.bf16.mxu1 %vm4273_vm1, %v4272_v30  ;;  %v1658_v4 = vpop.permute.xlu0 %1657 }
 0x789   : > { %3851 = vmatprep.subr.bf16.mxu1 %v4272_v30  ;;  %v1663_v39 = vsel %vm1171_vm2, %v1658_v4, 0 }
 0x78a   : > { %v4159_v22 = vpop.eup %4158 }
 0x78b   : > { %v1453_v23 = vmul.f32 %v4159_v22, %v4143_v16 }
 0x78c   : > { %v1656_v43 = vpop.permute.xlu0 %1655 }
 0x78d   : > { %v1459_v9 = vpack.c.bf16 %v1453_v23, %v1452_v18 }
 0x78e   : > { %v4161_v25 = vpop.eup %4160 }
 0x78f   : > { %v4163_v35 = vpop.eup %4162  ;;  %v1454_v34 = vmul.f32 %v4161_v25, %v4147_v52  ;;  %3836 = vmatmul.mubr.msk.bf16.vlgmr.msra.gmra.mxu0 %vm1369_vm3, %v1459_v9 }
 0x790   : > { %v1455_v40 = vmul.f32 %v4163_v35, %v4145_v28  ;;  %3846 = vmatpush3.bf16.msra.mxu0 %v1604_v38  ;;  %3847 = vmatprep.mubr.msk.bf16.mxu0 %vm4273_vm1, %v4272_v30  ;;  %v1708_v1 = vpop.permute.xlu0 %1707 }
 0x791   : > { %3857 = vmatprep.subr.bf16.mxu0 %v4272_v30 }
 0x792   : > { %v1460_v42 = vpack.c.bf16 %v1455_v40, %v1454_v34  ;;  %v4165_v15 = vpop.eup %4164 }
 0x793   : > { %v1456_v51 = vmul.f32 %v4165_v15, %v4696_v5 }
 0x794   : > { %3842 = vmatmul.mubr.msk.bf16.vlgmr.msra.gmra.mxu1 %vm1369_vm3, %v1460_v42  ;;  %v1760_v50 = vpop.permute.xlu0 %1759 }
 0x795   : > { %3852 = vmatpush3.bf16.xpose.msra.mxu1 %v1663_v39  ;;  %3853 = vmatprep.mubr.msk.bf16.mxu1 %vm4273_vm1, %v4272_v30 }
 0x796   : > { %3863 = vmatprep.subr.bf16.mxu1 %v4272_v30 }
 0x79c   : > { %3854 = vmatmul.mubr.msk.bf16.vlgmr.msra.gmra.mxu1 %vm1171_vm2, %v1656_v43 }
 0x79d   : > { %3865 = vmatprep.mubr.msk.bf16.mxu1 %vm4273_vm1, %v4272_v30 }
 0x7b5   : > { %v1441_v44 = vpop.xlane.xlu1 %1440 }
 0x7b6   : > { %4166 = vrcp.f32 %v1441_v44 }
 0x7b9   : > { %v1762_v46 = vpop.permute.xlu1 %1761 }
 0x7ba   : > { %v1767_v47 = vsel %vm1171_vm2, %v1762_v46, 0 }
 0x7bb   : > { %3864 = vmatpush3.bf16.xpose.msra.mxu1 %v1767_v47 }
 0x7bc   : > { %3875 = vmatprep.subr.bf16.mxu1 %v4272_v30 }
 0x7bd   : > { %v1814_v54 = vpop.permute.xlu1 %1813 }
 0x7be   : > { %v1819_v27 = vsel %vm1171_vm2, %v1814_v54, 0 }
 0x7c1   : > { %v1812_v5 = vpop.permute.xlu1 %1811 }
 0x7c2   : > { %3866 = vmatmul.mubr.msk.bf16.vlgmr.msra.gmra.mxu1 %vm1171_vm2, %v1760_v50 }
 0x7c3   : > { %v4167_v16 = vpop.eup %4166  ;;  %3877 = vmatprep.mubr.msk.bf16.mxu1 %vm4273_vm1, %v4272_v30 }
 0x7c4   : > { %v1457_v28 = vmul.f32 %v4167_v16, %v4706_v59 }
 0x7c6   : > { %v1461_v52 = vpack.c.bf16 %v1457_v28, %v1456_v51 }
 0x7c8   : > { %3848 = vmatmul.mubr.msk.bf16.vlgmr.msra.gmra.mxu0 %vm1369_vm3, %v1461_v52 }
 0x7c9   : > { %3858 = vmatpush3.bf16.xpose.msra.mxu0 %v1715_v53  ;;  %3859 = vmatprep.mubr.msk.bf16.mxu0 %vm4273_vm1, %v4272_v30 }
 0x7ca   : > { %3869 = vmatprep.subr.bf16.mxu0 %v4272_v30 }
 0x7d0   : > { %3860 = vmatmul.mubr.msk.bf16.vlgmr.msra.gmra.mxu0 %vm1171_vm2, %v1708_v1 }
 0x7d1   : > { %3870 = vmatpush3.bf16.xpose.msra.mxu0 %v1819_v27  ;;  %3871 = vmatprep.mubr.msk.bf16.mxu0 %vm4273_vm1, %v4272_v30 }
 0x7d2   : > { %3881 = vmatprep.subr.bf16.mxu0 %v4272_v30 }
 0x7d8   : > { %3872 = vmatmul.mubr.msk.bf16.vlgmr.msra.gmra.mxu0 %vm1171_vm2, %v1812_v5 }
 0x7d9   : > { %3883 = vmatprep.mubr.msk.bf16.mxu0 %vm4273_vm1, %v4272_v30 }
 0x847   : > { %v4750_v55 = vpop.f32.mrf.mxu1 }
 0x849   : > { %v3831_v41 = vpop.f32.mrf.mxu1 }
 0x84b   : > { %v4752_v56 = vpop.f32.mrf.mxu1 }
 0x84c   : > { %v1650_v57 = vpack.c.bf16 %v4752_v56, %v4750_v55 }
 0x84d   : > { %v3832_v59 = vpop.f32.mrf.mxu1 }
 0x84f   : > { %v4756_v12 = vpop.f32.mrf.mxu0 }
 0x851   : > { %v3837_v38 = vpop.f32.mrf.mxu0 }
 0x853   : > { %v4758_v29 = vpop.f32.mrf.mxu0 }
 0x854   : > { %v4760_v60 = vpop.f32.mrf.mxu1  ;;  %v1651_v61 = vpack.c.bf16 %v4758_v29, %v4756_v12 }
 0x855   : > { %v3838_v62 = vpop.f32.mrf.mxu0 }
 0x856   : > { %v3843_v63 = vpop.f32.mrf.mxu1 }
 0x858   : > { %v4764_v3 = vpop.f32.mrf.mxu1 }
 0x859   : > { %v1652_v49 = vpack.c.bf16 %v4764_v3, %v4760_v60 }
 0x85a   : > { %v3844_v8 = vpop.f32.mrf.mxu1 }
 0x85c   : > { %v1699_v11 = vpop.f32.mrf.mxu1 }
 0x85d   : > { %v1862_v14 = vsel %vm1369_vm3, %v1699_v11, -inf }
 0x85e   : > { %1863 = vmax.xlane.f32.xlu0 %v1862_v14  ;;  %v3855_v17 = vpop.f32.mrf.mxu1 }
 0x860   : > { %v1702_v19 = vpop.f32.mrf.mxu1 }
 0x861   : > { %v1865_v22 = vsel %vm1369_vm3, %v1702_v19, -inf }
 0x862   : > { %1866 = vmax.xlane.f32.xlu1 %v1865_v22  ;;  %v3856_v24 = vpop.f32.mrf.mxu1 }
 0x882   : > { %v1803_v18 = vpop.f32.mrf.mxu1 }
 0x883   : > { %v1874_v50 = vsel %vm1369_vm3, %v1803_v18, -inf }
 0x884   : > { %v3867_v23 = vpop.f32.mrf.mxu1 }
 0x886   : > { %v1806_v25 = vpop.f32.mrf.mxu1 }
 0x887   : > { %v1877_v9 = vsel %vm1369_vm3, %v1806_v25, -inf }
 0x888   : > { %1878 = vmax.xlane.f32.xlu1 %v1877_v9  ;;  %v4771_v35 = vpop.f32.mrf.mxu0  ;;  %v3868_v34 = vpop.f32.mrf.mxu1 }
 0x88a   : > { %v3849_v40 = vpop.f32.mrf.mxu0 }
 0x88c   : > { %v4773_v4 = vpop.f32.mrf.mxu0 }
 0x88d   : > { %v1653_v42 = vpack.c.bf16 %v4773_v4, %v4771_v35 }
 0x88e   : > { %v3850_v39 = vpop.f32.mrf.mxu0 }
 0x890   : > { %v1751_v43 = vpop.f32.mrf.mxu0 }
 0x891   : > { %v1868_v20 = vsel %vm1369_vm3, %v1751_v43, -inf }
 0x892   : > { %1869 = vmax.xlane.f32.xlu0 %v1868_v20  ;;  %v3861_v44 = vpop.f32.mrf.mxu0 }
 0x894   : > { %v1754_v46 = vpop.f32.mrf.mxu0 }
 0x895   : > { %v1871_v47 = vsel %vm1369_vm3, %v1754_v46, -inf }
 0x896   : > { %1872 = vmax.xlane.f32.xlu0 %v1871_v47  ;;  %v3862_v1 = vpop.f32.mrf.mxu0 }
 0x898   : > { %v1855_v15 = vpop.f32.mrf.mxu0 }
 0x899   : > { %v1880_v28 = vsel %vm1369_vm3, %v1855_v15, -inf }
 0x89a   : > { %1875 = vmax.xlane.f32.xlu0 %v1874_v50  ;;  %v3873_v16 = vpop.f32.mrf.mxu0 }
 0x89c   : > { %v4780_v51 = vpop.f32.mrf.mxu0 }
 0x89d   : > { %v1883_v52 = vsel %vm1369_vm3, %v4780_v51, -inf }
 0x89e   : > { %1881 = vmax.xlane.f32.xlu0 %v1880_v28  ;;  %1884 = vmax.xlane.f32.xlu1 %v1883_v52  ;;  %v3874_v53 = vpop.f32.mrf.mxu0 }
 0x8e7   : > { %v1864_v54 = vpop.xlane.xlu0 %1863 }
 0x8e8   : > { %v1886_v27 = vsub.f32 %v1699_v11, %v1864_v54 }
 0x8ea   : > { %v1894_v5 = vmul.f32 1.442695, %v1886_v27 }
 0x8eb   : > { %v1867_v41 = vpop.xlane.xlu1 %1866 }
 0x8ec   : > { %4168 = vpow2.f32 %v1894_v5  ;;  %v1887_v59 = vsub.f32 %v1702_v19, %v1867_v41 }
 0x8ee   : > { %v1896_v38 = vmul.f32 1.442695, %v1887_v59 }
 0x8f0   : > { %4170 = vpow2.f32 %v1896_v38 }
 0x8f9   : > { %v4785_v62 = vpop.eup %4168 }
 0x8fa   : > { %v1910_v63 = vsel %vm1369_vm3, %v4785_v62, 0.0 }
 0x8fb   : > { %1911 = vadd.xlane.f32.xlu0 %v1910_v63 }
 0x8fd   : > { %v4789_v8 = vpop.eup %4170 }
 0x8fe   : > { %v1913_v14 = vsel %vm1369_vm3, %v4789_v8, 0.0 }
 0x8ff   : > { %1914 = vadd.xlane.f32.xlu1 %v1913_v14 }
 0x911   : > { %v1879_v17 = vpop.xlane.xlu1 %1878 }
 0x912   : > { %v1891_v24 = vsub.f32 %v1806_v25, %v1879_v17 }
 0x914   : > { %v1904_v34 = vmul.f32 1.442695, %v1891_v24 }
 0x91b   : > { %v1870_v11 = vpop.xlane.xlu0 %1869 }
 0x91c   : > { %v1888_v22 = vsub.f32 %v1751_v43, %v1870_v11 }
 0x91e   : > { %v1898_v23 = vmul.f32 1.442695, %v1888_v22 }
 0x91f   : > { %v1873_v19 = vpop.xlane.xlu0 %1872 }
 0x920   : > { %4172 = vpow2.f32 %v1898_v23  ;;  %v1889_v9 = vsub.f32 %v1754_v46, %v1873_v19 }
 0x922   : > { %v1900_v40 = vmul.f32 1.442695, %v1889_v9 }
 0x923   : > { %v1876_v39 = vpop.xlane.xlu0 %1875 }
 0x924   : > { %4174 = vpow2.f32 %v1900_v40  ;;  %v1890_v20 = vsub.f32 %v1803_v18, %v1876_v39 }
 0x925   : > { %4176 = vpow2.f32 %v1904_v34 }
 0x926   : > { %v1902_v44 = vmul.f32 1.442695, %v1890_v20 }
 0x927   : > { %v1882_v47 = vpop.xlane.xlu0 %1881  ;;  %v1885_v27 = vpop.xlane.xlu1 %1884 }
 0x928   : > { %4178 = vpow2.f32 %v1902_v44  ;;  %v1892_v1 = vsub.f32 %v1855_v15, %v1882_v47  ;;  %v1893_v5 = vsub.f32 %v4780_v51, %v1885_v27 }
 0x92a   : > { %v1906_v50 = vmul.f32 1.442695, %v1892_v1  ;;  %v1908_v41 = vmul.f32 1.442695, %v1893_v5 }
 0x92c   : > { %4180 = vpow2.f32 %v1906_v50 }
 0x92d   : > { %v4793_v16 = vpop.eup %4172  ;;  %4182 = vpow2.f32 %v1908_v41 }
 0x92e   : > { %v1916_v25 = vsel %vm1369_vm3, %v4793_v16, 0.0 }
 0x92f   : > { %1917 = vadd.xlane.f32.xlu0 %v1916_v25 }
 0x931   : > { %v4175_v43 = vpop.eup %4174 }
 0x932   : > { %v1919_v46 = vsel %vm1369_vm3, %v4175_v43, 0.0  ;;  %v4798_v28 = vpop.eup %4176 }
 0x933   : > { %1920 = vadd.xlane.f32.xlu1 %v1919_v46  ;;  %v1925_v15 = vsel %vm1369_vm3, %v4798_v28, 0.0 }
 0x935   : > { %v4800_v18 = vpop.eup %4178 }
 0x936   : > { %v1922_v52 = vsel %vm1369_vm3, %v4800_v18, 0.0 }
 0x937   : > { %1923 = vadd.xlane.f32.xlu0 %v1922_v52  ;;  %1926 = vadd.xlane.f32.xlu1 %v1925_v15 }
 0x939   : > { %v4806_v53 = vpop.eup %4180 }
 0x93a   : > { %v1928_v54 = vsel %vm1369_vm3, %v4806_v53, 0.0  ;;  %v4183_v59 = vpop.eup %4182 }
 0x93b   : > { %1929 = vadd.xlane.f32.xlu0 %v1928_v54  ;;  %v1931_v38 = vsel %vm1369_vm3, %v4183_v59, 0.0  ;;  %v1148_v54 = vld [vmem:[%s5164_s11] sm:$0xf] }
 0x948   : > { %2001 = vrot.lane.b32.xlu1 %v4626_v13, %s4278_s15 }
 0x94c   : > { %2048 = vrot.lane.b32.xlu1 %v4638_v31, %s4278_s15 }
 0x951   : > { %1954 = vrot.lane.b32.xlu0 %v4630_v6, %s4278_s15 }
 0x955   : > { %2309 = vrot.lane.b32.xlu0 %v4630_v6, %s4279_s16 }
 0x959   : > { %2307 = vrot.lane.b32.xlu0 %v4633_v10, %s4280_s17 }
 0x95d   : > { %2358 = vrot.lane.b32.xlu0 %v4628_v48, %s4280_s17 }
 0x961   : > { %2409 = vrot.lane.b32.xlu0 %v4640_v32, %s4280_s17 }
 0x970   : > { %1932 = vadd.xlane.f32.xlu1 %v1931_v38 }
 0x981   : > { %2095 = vrot.lane.b32.xlu1 %v4643_v33, %s4278_s15 }
 0x984   : > { %v1912_v63 = vpop.xlane.xlu0 %1911 }
 0x985   : > { %2360 = vrot.lane.b32.xlu1 %v4626_v13, %s4279_s16 }
 0x988   : > { %v1915_v51 = vpop.xlane.xlu1 %1914 }
 0x989   : > { %2411 = vrot.lane.b32.xlu1 %v4638_v31, %s4279_s16  ;;  %4184 = vrcp.f32 %v1915_v51  ;;  %v2240_v51 = vsel %vm2158_vm4, %v1148_v54, 0 }
 0x98a   : > { %4186 = vrcp.f32 %v1912_v63 }
 0x98d   : > { %2462 = vrot.lane.b32.xlu1 %v4643_v33, %s4279_s16 }
 0x991   : > { %2460 = vrot.lane.b32.xlu1 %v4636_v26, %s4280_s17 }
 0x996   : > { %v4185_v24 = vpop.eup %4184 }
 0x997   : > { %v4187_v9 = vpop.eup %4186  ;;  %v1943_v34 = vmul.f32 %v4185_v24, %v4789_v8 }
 0x998   : > { %v1942_v20 = vmul.f32 %v4187_v9, %v4785_v62 }
 0x99a   : > { %v1950_v47 = vpack.c.bf16 %v1943_v34, %v1942_v20 }
 0x9b8   : > { %v1918_v14 = vpop.xlane.xlu0 %1917 }
 0x9b9   : > { %4188 = vrcp.f32 %v1918_v14  ;;  %v1149_v14 = vld [vmem:[%s5164_s11 + $0x4] sm:$0xf] }
 0x9bc   : > { %v1921_v17 = vpop.xlane.xlu1 %1920 }
 0x9bd   : > { %4190 = vrcp.f32 %v1921_v17 }
 0x9c0   : > { %v1924_v11 = vpop.xlane.xlu0 %1923  ;;  %v1927_v22 = vpop.xlane.xlu1 %1926 }
 0x9c1   : > { %4192 = vrcp.f32 %v1924_v11 }
 0x9c2   : > { %4194 = vrcp.f32 %v1927_v22 }
 0x9c4   : > { %v1930_v23 = vpop.xlane.xlu0 %1929  ;;  %v2002_v19 = vpop.permute.xlu1 %2001 }
 0x9c5   : > { %3882 = vmatpush3.bf16.msra.mxu0 %v2002_v19  ;;  %4196 = vrcp.f32 %v1930_v23 }
 0x9c6   : > { %3893 = vmatprep.subr.bf16.mxu0 %v4272_v30  ;;  %v4189_v40 = vpop.eup %4188 }
 0x9c7   : > { %v1944_v1 = vmul.f32 %v4189_v40, %v4793_v16 }
 0x9c8   : > { %v1955_v39 = vpop.permute.xlu0 %1954  ;;  %v2049_v25 = vpop.permute.xlu1 %2048 }
 0x9c9   : > { %3876 = vmatpush3.bf16.msra.mxu1 %v1955_v39 }
 0x9ca   : > { %v4191_v44 = vpop.eup %4190  ;;  %3887 = vmatprep.subr.bf16.mxu1 %v4272_v30 }
 0x9cb   : > { %v1945_v50 = vmul.f32 %v4191_v44, %v4175_v43 }
 0x9cc   : > { %3878 = vmatmul.mubr.msk.bf16.vlgmr.msra.gmra.mxu1 %vm1369_vm3, %v1950_v47  ;;  %v2310_v55 = vpop.permute.xlu0 %2309 }
 0x9cd   : > { %3888 = vmatpush3.bf16.msra.mxu1 %v2049_v25  ;;  %v1951_v46 = vpack.c.bf16 %v1945_v50, %v1944_v1  ;;  %3889 = vmatprep.mubr.msk.bf16.mxu1 %vm4273_vm1, %v4272_v30  ;;  %v2315_v9 = vsel %vm1171_vm2, %v2310_v55, 0 }
 0x9ce   : > { %v4193_v8 = vpop.eup %4192  ;;  %4035 = vmatprep.subr.msk.bf16.mxu1 %vm2158_vm4, %v1149_v14 }
 0x9cf   : > { %v4195_v52 = vpop.eup %4194  ;;  %3884 = vmatmul.mubr.msk.bf16.vlgmr.msra.gmra.mxu0 %vm1369_vm3, %v1951_v46  ;;  %v1946_v62 = vmul.f32 %v4193_v8, %v4800_v18 }
 0x9d0   : > { %v1947_v15 = vmul.f32 %v4195_v52, %v4798_v28  ;;  %3895 = vmatprep.mubr.msk.bf16.mxu0 %vm4273_vm1, %v4272_v30 }
 0x9d2   : > { %v1952_v16 = vpack.c.bf16 %v1947_v15, %v1946_v62  ;;  %v4197_v18 = vpop.eup %4196 }
 0x9d3   : > { %v1948_v5 = vmul.f32 %v4197_v18, %v4806_v53  ;;  %v2160_v53 = vsel %vm2158_vm4, %v1149_v14, 0 }
 0x9d4   : > { %3890 = vmatmul.mubr.msk.bf16.vlgmr.msra.gmra.mxu1 %vm1369_vm3, %v1952_v16 }
 0x9d5   : > { %3900 = vmatpush3.bf16.msra.mxu1 %v2160_v53 }
 0x9d6   : > { %3919 = vmatprep.subr.bf16.mxu1 %v4272_v30 }
 0x9f9   : > { %v1933_v43 = vpop.xlane.xlu1 %1932 }
 0x9fa   : > { %4198 = vrcp.f32 %v1933_v43 }
 0x9fd   : > { %v2096_v27 = vpop.permute.xlu1 %2095 }
 0x9fe   : > { %3894 = vmatpush3.bf16.msra.mxu0 %v2096_v27 }
 0x9ff   : > { %4036 = vmatprep.subr.msk.bf16.mxu0 %vm2158_vm4, %v1148_v54 }
 0xa01   : > { %v2361_v63 = vpop.permute.xlu1 %2360 }
 0xa05   : > { %v2412_v56 = vpop.permute.xlu1 %2411 }
 0xa06   : > { %v2417_v15 = vsel %vm1171_vm2, %v2412_v56, 0 }
 0xa07   : > { %v4199_v28 = vpop.eup %4198 }
 0xa08   : > { %v1949_v41 = vmul.f32 %v4199_v28, %v4183_v59  ;;  %v2366_v59 = vsel %vm1171_vm2, %v2361_v63, 0 }
 0xa09   : > { %v2463_v12 = vpop.permute.xlu1 %2462 }
 0xa0a   : > { %v1953_v38 = vpack.c.bf16 %v1949_v41, %v1948_v5 }
 0xa0c   : > { %3896 = vmatmul.mubr.msk.bf16.vlgmr.msra.gmra.mxu0 %vm1369_vm3, %v1953_v38 }
 0xa0d   : > { %3911 = vmatprep.mubr.msk.bf16.mxu0 %vm1171_vm2, %v1650_v57  ;;  %3910 = vmatpush3.bf16.msra.mxu0 %v2240_v51  ;;  %v2308_v57 = vpop.permute.xlu0 %2307  ;;  %v2461_v60 = vpop.permute.xlu1 %2460 }
 0xa0e   : > { %3925 = vmatprep.subr.bf16.mxu0 %v4272_v30 }
 0xa11   : > { %v2359_v29 = vpop.permute.xlu0 %2358 }
 0xa14   : > { %3912 = vmatmul.mubr.msk.bf16.vlgmr.msra.gmra.mxu0 %vm1171_vm2, %v1651_v61  ;;  %v2468_v61 = vsel %vm1171_vm2, %v2463_v12, 0 }
 0xa15   : > { %3926 = vmatpush3.bf16.xpose.msra.mxu0 %v2366_v59  ;;  %3915 = vmatprep.mubr.msk.bf16.mxu0 %vm1171_vm2, %v1652_v49  ;;  %v2410_v27 = vpop.permute.xlu0 %2409 }
 0xa16   : > { %3937 = vmatprep.subr.bf16.mxu0 %v4272_v30 }
 0xa1c   : > { %3916 = vmatmul.mubr.msk.bf16.gmra.mxu0 %vm1171_vm2, %v1653_v42 }
 0xa1d   : > { %3927 = vmatprep.mubr.msk.bf16.mxu0 %vm4273_vm1, %v4272_v30 }
 0xa24   : > { %3928 = vmatmul.mubr.msk.bf16.vlgmr.msra.gmra.mxu0 %vm1171_vm2, %v2359_v29 }
 0xa25   : > { %3938 = vmatpush3.bf16.xpose.msra.mxu0 %v2468_v61  ;;  %3939 = vmatprep.mubr.msk.bf16.mxu0 %vm4273_vm1, %v4272_v30 }
 0xa26   : > { %3949 = vmatprep.subr.bf16.mxu0 %v4272_v30 }
 0xa2c   : > { %3940 = vmatmul.mubr.msk.bf16.vlgmr.msra.gmra.mxu0 %vm1171_vm2, %v2461_v60 }
 0xa2d   : > { %3951 = vmatprep.mubr.msk.bf16.mxu0 %vm4273_vm1, %v4272_v30 }
 0xa8c   : > { %v1994_v3 = vpop.f32.mrf.mxu1 }
 0xa8e   : > { %v3879_v49 = vpop.f32.mrf.mxu1 }
 0xa8f   : > { %v2041_v35 = vpop.f32.mrf.mxu0 }
 0xa90   : > { %v1997_v4 = vpop.f32.mrf.mxu1 }
 0xa91   : > { %v2142_v42 = vpack.c.bf16 %v1997_v4, %v1994_v3  ;;  %v3885_v17 = vpop.f32.mrf.mxu0 }
 0xa92   : > { %v3880_v11 = vpop.f32.mrf.mxu1 }
 0xa93   : > { %v2044_v22 = vpop.f32.mrf.mxu0  ;;  %3901 = vmatprep.mubr.msk.bf16.mxu1 %vm1171_vm2, %v2142_v42 }
 0xa94   : > { %v2143_v24 = vpack.c.bf16 %v2044_v22, %v2041_v35  ;;  %v2088_v23 = vpop.f32.mrf.mxu1 }
 0xa95   : > { %v3886_v19 = vpop.f32.mrf.mxu0 }
 0xa96   : > { %v3891_v34 = vpop.f32.mrf.mxu1  ;;  %3902 = vmatmul.mubr.msk.bf16.vlgmr.msra.gmra.mxu1 %vm1171_vm2, %v2143_v24 }
 0xa97   : > { %3920 = vmatpush3.bf16.xpose.msra.mxu1 %v2315_v9 }
 0xa98   : > { %v2091_v40 = vpop.f32.mrf.mxu1  ;;  %3931 = vmatprep.subr.bf16.mxu1 %v4272_v30 }
 0xa99   : > { %v2144_v39 = vpack.c.bf16 %v2091_v40, %v2088_v23 }
 0xa9a   : > { %v3892_v20 = vpop.f32.mrf.mxu1 }
 0xa9b   : > { %3905 = vmatprep.mubr.msk.bf16.mxu1 %vm1171_vm2, %v2144_v39 }
 0xacc   : > { %v2135_v44 = vpop.f32.mrf.mxu0 }
 0xace   : > { %v3897_v47 = vpop.f32.mrf.mxu0 }
 0xad0   : > { %v2138_v1 = vpop.f32.mrf.mxu0 }
 0xad1   : > { %v2145_v50 = vpack.c.bf16 %v2138_v1, %v2135_v44 }
 0xad2   : > { %v3898_v25 = vpop.f32.mrf.mxu0 }
 0xad3   : > { %3906 = vmatmul.mubr.msk.bf16.gmra.mxu1 %vm1171_vm2, %v2145_v50 }
 0xad4   : > { %v4886_v46 = vpop.f32.mrf.mxu0  ;;  %3921 = vmatprep.mubr.msk.bf16.mxu1 %vm4273_vm1, %v4272_v30 }
 0xad6   : > { %v4890_v8 = vpop.f32.mrf.mxu0 }
 0xad8   : > { %v4892_v52 = vpop.f32.mrf.mxu0 }
 0xada   : > { %v4894_v62 = vpop.f32.mrf.mxu0 }
 0xadb   : > { %3922 = vmatmul.mubr.msk.bf16.vlgmr.msra.gmra.mxu1 %vm1171_vm2, %v2308_v57 }
 0xadc   : > { %3932 = vmatpush3.bf16.xpose.msra.mxu1 %v2417_v15  ;;  %v4898_v16 = vpop.f32.mrf.mxu0  ;;  %3933 = vmatprep.mubr.msk.bf16.mxu1 %vm4273_vm1, %v4272_v30 }
 0xadd   : > { %3943 = vmatprep.subr.bf16.mxu1 %v4272_v30 }
 0xade   : > { %v4903_v43 = vpop.f32.mrf.mxu0 }
 0xae0   : > { %v4905_v54 = vpop.f32.mrf.mxu0 }
 0xae2   : > { %v4907_v18 = vpop.f32.mrf.mxu0 }
 0xae3   : > { %3934 = vmatmul.mubr.msk.bf16.vlgmr.msra.gmra.mxu1 %vm1171_vm2, %v2410_v27 }
 0xae4   : > { %v2402_v28 = vpop.f32.mrf.mxu0  ;;  %3945 = vmatprep.mubr.msk.bf16.mxu1 %vm4273_vm1, %v4272_v30 }
 0xae5   : > { %v2517_v17 = vsel %vm1369_vm3, %v2402_v28, -inf }
 0xae6   : > { %v3929_v5 = vpop.f32.mrf.mxu0 }
 0xae8   : > { %v2405_v41 = vpop.f32.mrf.mxu0 }
 0xae9   : > { %v2520_v24 = vsel %vm1369_vm3, %v2405_v41, -inf }
 0xaea   : > { %v3930_v38 = vpop.f32.mrf.mxu0 }
 0xaec   : > { %v2504_v51 = vpop.f32.mrf.mxu0 }
 0xaed   : > { %v2529_v39 = vsel %vm1369_vm3, %v2504_v51, -inf }
 0xaee   : > { %v3941_v63 = vpop.f32.mrf.mxu0 }
 0xaf0   : > { %v2507_v14 = vpop.f32.mrf.mxu0 }
 0xaf1   : > { %v2532_v20 = vsel %vm1369_vm3, %v2507_v14, -inf }
 0xaf2   : > { %v3942_v53 = vpop.f32.mrf.mxu0 }
 0xb56   : > { %v4912_v59 = vpop.f32.mrf.mxu1 }
 0xb58   : > { %v4914_v55 = vpop.f32.mrf.mxu1 }
 0xb5a   : > { %v4916_v56 = vpop.f32.mrf.mxu1 }
 0xb5c   : > { %v4918_v57 = vpop.f32.mrf.mxu1 }
 0xb93   : > { %v4920_v12 = vpop.f32.mrf.mxu1 }
 0xb95   : > { %v4922_v29 = vpop.f32.mrf.mxu1 }
 0xb97   : > { %v4924_v61 = vpop.f32.mrf.mxu1 }
 0xb99   : > { %v4926_v60 = vpop.f32.mrf.mxu1 }
 0xb9b   : > { %v2351_v3 = vpop.f32.mrf.mxu1 }
 0xb9c   : > { %v2511_v49 = vsel %vm1369_vm3, %v2351_v3, -inf }
 0xb9d   : > { %2512 = vmax.xlane.f32.xlu0 %v2511_v49  ;;  %v3923_v35 = vpop.f32.mrf.mxu1 }
 0xb9f   : > { %v2354_v4 = vpop.f32.mrf.mxu1 }
 0xba0   : > { %v2514_v42 = vsel %vm1369_vm3, %v2354_v4, -inf }
 0xba1   : > { %2515 = vmax.xlane.f32.xlu1 %v2514_v42  ;;  %v3924_v11 = vpop.f32.mrf.mxu1  ;;  %2518 = vmax.xlane.f32.xlu0 %v2517_v17 }
 0xba3   : > { %v2453_v22 = vpop.f32.mrf.mxu1 }
 0xba4   : > { %v2523_v34 = vsel %vm1369_vm3, %v2453_v22, -inf }
 0xba5   : > { %v3935_v23 = vpop.f32.mrf.mxu1  ;;  %2521 = vmax.xlane.f32.xlu0 %v2520_v24 }
 0xba7   : > { %v4932_v19 = vpop.f32.mrf.mxu1 }
 0xba8   : > { %v2526_v9 = vsel %vm1369_vm3, %v4932_v19, -inf }
 0xba9   : > { %2527 = vmax.xlane.f32.xlu1 %v2526_v9  ;;  %v3936_v40 = vpop.f32.mrf.mxu1  ;;  %2524 = vmax.xlane.f32.xlu0 %v2523_v34 }
 0xbad   : > { %2530 = vmax.xlane.f32.xlu0 %v2529_v39  ;;  %2533 = vmax.xlane.f32.xlu1 %v2532_v20 }
 0xc26   : > { %v2513_v44 = vpop.xlane.xlu0 %2512 }
 0xc27   : > { %v2535_v53 = vsub.f32 %v2351_v3, %v2513_v44 }
 0xc29   : > { %v2543_v24 = vmul.f32 1.442695, %v2535_v53 }
 0xc2a   : > { %v2519_v47 = vpop.xlane.xlu0 %2518  ;;  %v2516_v25 = vpop.xlane.xlu1 %2515 }
 0xc2b   : > { %v2537_v1 = vsub.f32 %v2402_v28, %v2519_v47  ;;  %v2536_v49 = vsub.f32 %v2354_v4, %v2516_v25 }
 0xc2d   : > { %v2547_v50 = vmul.f32 1.442695, %v2537_v1  ;;  %v2545_v28 = vmul.f32 1.442695, %v2536_v49 }
 0xc2e   : > { %v2522_v15 = vpop.xlane.xlu0 %2521 }
 0xc2f   : > { %v2538_v27 = vsub.f32 %v2405_v41, %v2522_v15  ;;  %4200 = vpow2.f32 %v2547_v50 }
 0xc31   : > { %v2549_v5 = vmul.f32 1.442695, %v2538_v27 }
 0xc32   : > { %v2528_v38 = vpop.xlane.xlu1 %2527  ;;  %v2525_v63 = vpop.xlane.xlu0 %2524 }
 0xc33   : > { %4202 = vpow2.f32 %v2549_v5  ;;  %v2539_v23 = vsub.f32 %v2453_v22, %v2525_v63  ;;  %v2540_v27 = vsub.f32 %v4932_v19, %v2528_v38 }
 0xc35   : > { %v2551_v41 = vmul.f32 1.442695, %v2539_v23  ;;  %v2553_v5 = vmul.f32 1.442695, %v2540_v27 }
 0xc36   : > { %v2531_v35 = vpop.xlane.xlu0 %2530  ;;  %v2534_v42 = vpop.xlane.xlu1 %2533 }
 0xc37   : > { %v2541_v17 = vsub.f32 %v2504_v51, %v2531_v35  ;;  %v2542_v11 = vsub.f32 %v2507_v14, %v2534_v42 }
 0xc39   : > { %v2555_v9 = vmul.f32 1.442695, %v2541_v17  ;;  %v2557_v34 = vmul.f32 1.442695, %v2542_v11 }
 0xc3b   : > { %4204 = vpow2.f32 %v2555_v9 }
 0xc3c   : > { %4206 = vpow2.f32 %v2557_v34  ;;  %v4201_v40 = vpop.eup %4200 }
 0xc3d   : > { %4208 = vpow2.f32 %v2543_v24  ;;  %v2565_v39 = vsel %vm1369_vm3, %v4201_v40, 0.0 }
 0xc3e   : > { %4210 = vpow2.f32 %v2545_v28  ;;  %2566 = vadd.xlane.f32.xlu0 %v2565_v39 }
 0xc3f   : > { %4212 = vpow2.f32 %v2551_v41 }
 0xc40   : > { %v4203_v3 = vpop.eup %4202  ;;  %4214 = vpow2.f32 %v2553_v5 }
 0xc41   : > { %v2568_v4 = vsel %vm1369_vm3, %v4203_v3, 0.0 }
 0xc42   : > { %2569 = vadd.xlane.f32.xlu1 %v2568_v4 }
 0xc48   : > { %v4941_v51 = vpop.eup %4204 }
 0xc49   : > { %v4943_v14 = vpop.eup %4206  ;;  %v2577_v22 = vsel %vm1369_vm3, %v4941_v51, 0.0 }
 0xc4a   : > { %v4209_v20 = vpop.eup %4208  ;;  %2578 = vadd.xlane.f32.xlu0 %v2577_v22  ;;  %v2580_v44 = vsel %vm1369_vm3, %v4943_v14, 0.0 }
 0xc4b   : > { %v4211_v47 = vpop.eup %4210  ;;  %2581 = vadd.xlane.f32.xlu1 %v2580_v44  ;;  %v2559_v1 = vsel %vm1369_vm3, %v4209_v20, 0.0 }
 0xc4c   : > { %v4950_v50 = vpop.eup %4212  ;;  %v2562_v25 = vsel %vm1369_vm3, %v4211_v47, 0.0 }
 0xc4d   : > { %v2571_v15 = vsel %vm1369_vm3, %v4950_v50, 0.0  ;;  %v4963_v63 = vpop.eup %4214 }
 0xc4e   : > { %2560 = vadd.xlane.f32.xlu0 %v2559_v1  ;;  %v2574_v53 = vsel %vm1369_vm3, %v4963_v63, 0.0 }
 0xc4f   : > { %2563 = vadd.xlane.f32.xlu1 %v2562_v25 }
 0xc52   : > { %2572 = vadd.xlane.f32.xlu0 %v2571_v15 }
 0xc60   : > { %2650 = vrot.lane.b32.xlu1 %v4626_v13, %s4281_s22 }
 0xc64   : > { %2697 = vrot.lane.b32.xlu1 %v4638_v31, %s4281_s22 }
 0xc68   : > { %2603 = vrot.lane.b32.xlu0 %v4630_v6, %s4281_s22 }
 0xc6c   : > { %2885 = vrot.lane.b32.xlu0 %v4630_v6, %s4282_s23 }
 0xc70   : > { %2936 = vrot.lane.b32.xlu0 %v4626_v13, %s4282_s23 }
 0xc74   : > { %2934 = vrot.lane.b32.xlu0 %v4628_v48, %s4283_s24 }
 0xc78   : > { %2985 = vrot.lane.b32.xlu0 %v4640_v32, %s4283_s24 }
 0xc88   : > { %2575 = vadd.xlane.f32.xlu1 %v2574_v53 }
 0xc99   : > { %2744 = vrot.lane.b32.xlu1 %v4643_v33, %s4281_s22 }
 0xc9d   : > { %2883 = vrot.lane.b32.xlu1 %v4633_v10, %s4283_s24 }
 0xca1   : > { %2987 = vrot.lane.b32.xlu1 %v4638_v31, %s4282_s23 }
 0xca5   : > { %3038 = vrot.lane.b32.xlu1 %v4643_v33, %s4282_s23 }
 0xca9   : > { %3036 = vrot.lane.b32.xlu1 %v4636_v26, %s4283_s24 }
 0xcc7   : > { %v2567_v48 = vpop.xlane.xlu0 %2566 }
 0xcc8   : > { %4216 = vrcp.f32 %v2567_v48 }
 0xccb   : > { %v2570_v19 = vpop.xlane.xlu1 %2569 }
 0xccc   : > { %4218 = vrcp.f32 %v2570_v19 }
 0xcd3   : > { %v2579_v32 = vpop.xlane.xlu0 %2578 }
 0xcd4   : > { %v2582_v38 = vpop.xlane.xlu1 %2581 }
 0xcd5   : > { %v4217_v49 = vpop.eup %4216 }
 0xcd6   : > { %v2593_v11 = vmul.f32 %v4217_v49, %v4201_v40 }
 0xcd7   : > { %v2561_v35 = vpop.xlane.xlu0 %2560 }
 0xcd8   : > { %4220 = vrcp.f32 %v2561_v35  ;;  %v2564_v42 = vpop.xlane.xlu1 %2563 }
 0xcd9   : > { %v4219_v17 = vpop.eup %4218  ;;  %4222 = vrcp.f32 %v2564_v42 }
 0xcda   : > { %v2594_v10 = vmul.f32 %v4219_v17, %v4203_v3  ;;  %4224 = vrcp.f32 %v2579_v32 }
 0xcdb   : > { %v2573_v24 = vpop.xlane.xlu0 %2572  ;;  %4226 = vrcp.f32 %v2582_v38 }
 0xcdc   : > { %v2651_v23 = vpop.permute.xlu1 %2650  ;;  %v2600_v9 = vpack.c.bf16 %v2594_v10, %v2593_v11  ;;  %4228 = vrcp.f32 %v2573_v24 }
 0xcdd   : > { %3950 = vmatpush3.bf16.msra.mxu0 %v2651_v23 }
 0xcde   : > { %3961 = vmatprep.subr.bf16.mxu0 %v4272_v30 }
 0xcdf   : > { %v2604_v26 = vpop.permute.xlu0 %2603 }
 0xce0   : > { %3952 = vmatmul.mubr.msk.bf16.vlgmr.msra.gmra.mxu0 %vm1369_vm3, %v2600_v9  ;;  %3944 = vmatpush3.bf16.msra.mxu1 %v2604_v26  ;;  %v2698_v3 = vpop.permute.xlu1 %2697 }
 0xce1   : > { %3955 = vmatprep.subr.bf16.mxu1 %v4272_v30  ;;  %3963 = vmatprep.mubr.msk.bf16.mxu0 %vm4273_vm1, %v4272_v30 }
 0xce3   : > { %v2886_v25 = vpop.permute.xlu0 %2885 }
 0xce4   : > { %v2891_v27 = vsel %vm1171_vm2, %v2886_v25, 0 }
 0xce5   : > { %v4221_v34 = vpop.eup %4220 }
 0xce6   : > { %v4223_v28 = vpop.eup %4222  ;;  %v2591_v41 = vmul.f32 %v4221_v34, %v4209_v20 }
 0xce7   : > { %v2592_v40 = vmul.f32 %v4223_v28, %v4211_v47  ;;  %v4225_v4 = vpop.eup %4224  ;;  %v2937_v53 = vpop.permute.xlu0 %2936 }
 0xce8   : > { %v4227_v22 = vpop.eup %4226  ;;  %v2597_v1 = vmul.f32 %v4225_v4, %v4941_v51  ;;  %v2942_v38 = vsel %vm1171_vm2, %v2937_v53, 0 }
 0xce9   : > { %v2599_v39 = vpack.c.bf16 %v2592_v40, %v2591_v41  ;;  %v2598_v20 = vmul.f32 %v4227_v22, %v4943_v14  ;;  %v4229_v51 = vpop.eup %4228 }
 0xcea   : > { %v2595_v19 = vmul.f32 %v4229_v51, %v4950_v50  ;;  %v1150_v50 = vld [vmem:[%s5164_s11 + $0x8] sm:$0xf] }
 0xceb   : > { %3946 = vmatmul.mubr.msk.bf16.vlgmr.msra.gmra.mxu1 %vm1369_vm3, %v2599_v39  ;;  %v2602_v15 = vpack.c.bf16 %v2598_v20, %v2597_v1  ;;  %v2935_v42 = vpop.permute.xlu0 %2934 }
 0xcec   : > { %3956 = vmatpush3.bf16.msra.mxu1 %v2698_v3  ;;  %3957 = vmatprep.mubr.msk.bf16.mxu1 %vm4273_vm1, %v4272_v30 }
 0xced   : > { %4037 = vmatprep.subr.msk.bf16.mxu1 %vm2158_vm4, %v1150_v50 }
 0xd11   : > { %v2576_v44 = vpop.xlane.xlu1 %2575 }
 0xd12   : > { %4230 = vrcp.f32 %v2576_v44 }
 0xd15   : > { %v2745_v47 = vpop.permute.xlu1 %2744 }
 0xd16   : > { %3962 = vmatpush3.bf16.msra.mxu0 %v2745_v47 }
 0xd17   : > { %3977 = vmatprep.subr.bf16.mxu0 %v4272_v30 }
 0xd19   : > { %3964 = vmatmul.mubr.msk.bf16.vlgmr.msra.gmra.mxu0 %vm1369_vm3, %v2602_v15  ;;  %v2884_v5 = vpop.permute.xlu1 %2883 }
 0xd1a   : > { %3978 = vmatpush3.bf16.xpose.msra.mxu0 %v2891_v27  ;;  %3979 = vmatprep.mubr.msk.bf16.mxu0 %vm4273_vm1, %v4272_v30 }
 0xd1b   : > { %3983 = vmatprep.subr.bf16.mxu0 %v4272_v30 }
 0xd1d   : > { %v2988_v48 = vpop.permute.xlu1 %2987 }
 0xd1e   : > { %v2993_v3 = vsel %vm1171_vm2, %v2988_v48, 0 }
 0xd1f   : > { %v4231_v14 = vpop.eup %4230 }
 0xd20   : > { %v2596_v32 = vmul.f32 %v4231_v14, %v4963_v63  ;;  %v2808_v63 = vsel %vm2158_vm4, %v1150_v50, 0 }
 0xd21   : > { %3980 = vmatmul.mubr.msk.bf16.vlgmr.msra.gmra.mxu0 %vm1171_vm2, %v2884_v5  ;;  %v3039_v35 = vpop.permute.xlu1 %3038 }
 0xd22   : > { %3984 = vmatpush3.bf16.xpose.msra.mxu0 %v2942_v38  ;;  %v2601_v49 = vpack.c.bf16 %v2596_v32, %v2595_v19  ;;  %3985 = vmatprep.mubr.msk.bf16.mxu0 %vm4273_vm1, %v4272_v30  ;;  %v3044_v17 = vsel %vm1171_vm2, %v3039_v35, 0 }
 0xd23   : > { %3995 = vmatprep.subr.bf16.mxu0 %v4272_v30 }
 0xd24   : > { %3958 = vmatmul.mubr.msk.bf16.vlgmr.msra.gmra.mxu1 %vm1369_vm3, %v2601_v49 }
 0xd25   : > { %v3037_v11 = vpop.permute.xlu1 %3036  ;;  %3968 = vmatpush3.bf16.msra.mxu1 %v2808_v63 }
 0xd26   : > { %3989 = vmatprep.subr.bf16.mxu1 %v4272_v30 }
 0xd29   : > { %3986 = vmatmul.mubr.msk.bf16.vlgmr.msra.gmra.mxu0 %vm1171_vm2, %v2935_v42 }
 0xd2a   : > { %3996 = vmatpush3.bf16.xpose.msra.mxu0 %v3044_v17  ;;  %3997 = vmatprep.mubr.msk.bf16.mxu0 %vm4273_vm1, %v4272_v30 }
 0xd2b   : > { %4007 = vmatprep.subr.bf16.mxu0 %v4272_v30 }
 0xd31   : > { %3998 = vmatmul.mubr.msk.bf16.vlgmr.msra.gmra.mxu0 %vm1171_vm2, %v3037_v11  ;;  %v2986_v11 = vpop.permute.xlu0 %2985 }
 0xd32   : > { %4009 = vmatprep.mubr.msk.bf16.mxu0 %vm4273_vm1, %v4272_v30 }
 0xda0   : > { %v2690_v10 = vpop.f32.mrf.mxu0 }
 0xda2   : > { %v3953_v24 = vpop.f32.mrf.mxu0 }
 0xda4   : > { %v2693_v23 = vpop.f32.mrf.mxu0 }
 0xda5   : > { %v2792_v40 = vpack.c.bf16 %v2693_v23, %v2690_v10 }
 0xda6   : > { %v3954_v9 = vpop.f32.mrf.mxu0 }
 0xda7   : > { %v2285_v9 = vadd.f32 %v4886_v46, %v4912_v59 }
 0xdab   : > { %v2643_v26 = vpop.f32.mrf.mxu1 }
 0xdad   : > { %v3947_v34 = vpop.f32.mrf.mxu1 }
 0xdae   : > { %v2277_v34 = vadd.f32 %v4890_v8, %v4914_v55 }
 0xdaf   : > { %v2646_v28 = vpop.f32.mrf.mxu1 }
 0xdb0   : > { %v2791_v41 = vpack.c.bf16 %v2646_v28, %v2643_v26 }
 0xdb1   : > { %v3948_v39 = vpop.f32.mrf.mxu1 }
 0xdb2   : > { %3969 = vmatprep.mubr.msk.bf16.mxu1 %vm1171_vm2, %v2791_v41 }
 0xdb3   : > { %3970 = vmatmul.mubr.msk.bf16.vlgmr.msra.gmra.mxu1 %vm1171_vm2, %v2792_v40  ;;  %v2288_v40 = vadd.f32 %v4892_v52, %v4916_v56  ;;  %v2301_v52 = vadd.f32 %v4898_v16, %v4920_v12  ;;  %v2293_v56 = vadd.f32 %v4903_v43, %v4922_v29  ;;  %v2296_v16 = vadd.f32 %v4907_v18, %v4926_v60 }
 0xdb4   : > { %3990 = vmatpush3.bf16.xpose.msra.mxu1 %v2993_v3 }
 0xdb5   : > { %4001 = vmatprep.subr.bf16.mxu1 %v4272_v30 }
 0xdd9   : > { %v2784_v4 = vpop.f32.mrf.mxu0 }
 0xddb   : > { %v3965_v22 = vpop.f32.mrf.mxu0 }
 0xddd   : > { %v2787_v44 = vpop.f32.mrf.mxu0 }
 0xdde   : > { %v2794_v32 = vpack.c.bf16 %v2787_v44, %v2784_v4  ;;  %v2280_v4 = vadd.f32 %v4894_v62, %v4918_v57 }
 0xddf   : > { %v3966_v1 = vpop.f32.mrf.mxu0 }
 0xde1   : > { %v2927_v20 = vpop.f32.mrf.mxu0 }
 0xde2   : > { %v3087_v47 = vsel %vm1369_vm3, %v2927_v20, -inf }
 0xde3   : > { %3088 = vmax.xlane.f32.xlu0 %v3087_v47  ;;  %v3981_v25 = vpop.f32.mrf.mxu0 }
 0xde4   : > { %v2737_v15 = vpop.f32.mrf.mxu1 }
 0xde5   : > { %v2930_v27 = vpop.f32.mrf.mxu0 }
 0xde6   : > { %v3959_v5 = vpop.f32.mrf.mxu1  ;;  %v3090_v51 = vsel %vm1369_vm3, %v2930_v27, -inf }
 0xde7   : > { %3091 = vmax.xlane.f32.xlu1 %v3090_v51  ;;  %v3982_v53 = vpop.f32.mrf.mxu0 }
 0xde8   : > { %v2740_v14 = vpop.f32.mrf.mxu1 }
 0xde9   : > { %v2793_v48 = vpack.c.bf16 %v2740_v14, %v2737_v15  ;;  %v2978_v19 = vpop.f32.mrf.mxu0 }
 0xdea   : > { %v3960_v38 = vpop.f32.mrf.mxu1  ;;  %v3093_v49 = vsel %vm1369_vm3, %v2978_v19, -inf }
 0xdeb   : > { %3973 = vmatprep.mubr.msk.bf16.mxu1 %vm1171_vm2, %v2793_v48  ;;  %3094 = vmax.xlane.f32.xlu0 %v3093_v49  ;;  %v3987_v35 = vpop.f32.mrf.mxu0 }
 0xdec   : > { %3974 = vmatmul.mubr.msk.bf16.gmra.mxu1 %vm1171_vm2, %v2794_v32 }
 0xded   : > { %v2981_v42 = vpop.f32.mrf.mxu0  ;;  %3991 = vmatprep.mubr.msk.bf16.mxu1 %vm4273_vm1, %v4272_v30 }
 0xdee   : > { %v3096_v17 = vsel %vm1369_vm3, %v2981_v42, -inf }
 0xdef   : > { %3097 = vmax.xlane.f32.xlu0 %v3096_v17  ;;  %v3988_v50 = vpop.f32.mrf.mxu0 }
 0xdf1   : > { %v5022_v63 = vpop.f32.mrf.mxu0 }
 0xdf3   : > { %v3999_v10 = vpop.f32.mrf.mxu0 }
 0xdf4   : > { %3992 = vmatmul.mubr.msk.bf16.vlgmr.msra.gmra.mxu1 %vm1171_vm2, %v2986_v11 }
 0xdf5   : > { %v5025_v24 = vpop.f32.mrf.mxu0  ;;  %4003 = vmatprep.mubr.msk.bf16.mxu1 %vm4273_vm1, %v4272_v30 }
 0xdf6   : > { %v3108_v11 = vsel %vm1369_vm3, %v5025_v24, -inf }
 0xdf7   : > { %v4000_v23 = vpop.f32.mrf.mxu0 }
 0xe6c   : > { %v3089_v59 = vpop.xlane.xlu0 %3088 }
 0xe6d   : > { %v3111_v8 = vsub.f32 %v2927_v20, %v3089_v59  ;;  %v2304_v20 = vadd.f32 %v4905_v54, %v4924_v61 }
 0xe6f   : > { %v3119_v25 = vmul.f32 1.442695, %v3111_v8 }
 0xe70   : > { %v3092_v55 = vpop.xlane.xlu1 %3091 }
 0xe71   : > { %v3112_v47 = vsub.f32 %v2930_v27, %v3092_v55  ;;  %4232 = vpow2.f32 %v3119_v25 }
 0xe73   : > { %v3971_v26 = vpop.f32.mrf.mxu1  ;;  %v3121_v62 = vmul.f32 1.442695, %v3112_v47 }
 0xe74   : > { %v5033_v28 = vadd.f32 %v3971_v26, %v2285_v9  ;;  %v3095_v1 = vpop.xlane.xlu0 %3094 }
 0xe75   : > { %v2844_v41 = vpop.f32.mrf.mxu1  ;;  %v3113_v15 = vsub.f32 %v2978_v19, %v3095_v1  ;;  %4234 = vpow2.f32 %v3121_v62 }
 0xe76   : > { %v5037_v39 = vadd.f32 %v2844_v41, %v2277_v34 }
 0xe77   : > { %v3972_v3 = vpop.f32.mrf.mxu1  ;;  %v3123_v51 = vmul.f32 1.442695, %v3113_v15 }
 0xe78   : > { %v5041_v22 = vadd.f32 %v3972_v3, %v2288_v40  ;;  %v3098_v5 = vpop.xlane.xlu0 %3097 }
 0xe79   : > { %v2847_v44 = vpop.f32.mrf.mxu1  ;;  %v3114_v53 = vsub.f32 %v2981_v42, %v3098_v5  ;;  %4236 = vpow2.f32 %v3123_v51  ;;  %v3105_v42 = vsel %vm1369_vm3, %v5022_v63, -inf }
 0xe7a   : > { %v5043_v46 = vadd.f32 %v2847_v44, %v2280_v4 }
 0xe7b   : > { %v3125_v43 = vmul.f32 1.442695, %v3114_v53 }
 0xe7d   : > { %4238 = vpow2.f32 %v3125_v43 }
 0xe7e   : > { %v5065_v18 = vpop.eup %4232 }
 0xe7f   : > { %v3135_v50 = vsel %vm1369_vm3, %v5065_v18, 0.0 }
 0xe82   : > { %v4235_v17 = vpop.eup %4234 }
 0xe83   : > { %v3138_v9 = vsel %vm1369_vm3, %v4235_v17, 0.0 }
 0xe86   : > { %v4237_v10 = vpop.eup %4236 }
 0xe87   : > { %v3141_v23 = vsel %vm1369_vm3, %v4237_v10, 0.0 }
 0xe8a   : > { %v4239_v26 = vpop.eup %4238 }
 0xe8b   : > { %v3144_v34 = vsel %vm1369_vm3, %v4239_v26, 0.0 }
 0xeac   : > { %v3975_v57 = vpop.f32.mrf.mxu1 }
 0xead   : > { %v5049_v14 = vadd.f32 %v3975_v57, %v2301_v52 }
 0xeae   : > { %v2860_v48 = vpop.f32.mrf.mxu1 }
 0xeaf   : > { %v5053_v27 = vadd.f32 %v2860_v48, %v2293_v56 }
 0xeb0   : > { %v3976_v19 = vpop.f32.mrf.mxu1 }
 0xeb1   : > { %v5057_v12 = vadd.f32 %v3976_v19, %v2304_v20 }
 0xeb2   : > { %v2863_v29 = vpop.f32.mrf.mxu1 }
 0xeb3   : > { %v5059_v32 = vadd.f32 %v2863_v29, %v2296_v16 }
 0xeb4   : > { %v3029_v38 = vpop.f32.mrf.mxu1 }
 0xeb5   : > { %v3099_v49 = vsel %vm1369_vm3, %v3029_v38, -inf }
 0xeb6   : > { %v3993_v35 = vpop.f32.mrf.mxu1  ;;  %3100 = vmax.xlane.f32.xlu0 %v3099_v49 }
 0xeb8   : > { %v3032_v54 = vpop.f32.mrf.mxu1 }
 0xeb9   : > { %v3102_v61 = vsel %vm1369_vm3, %v3032_v54, -inf }
 0xeba   : > { %v3994_v60 = vpop.f32.mrf.mxu1  ;;  %3103 = vmax.xlane.f32.xlu1 %v3102_v61  ;;  %3106 = vmax.xlane.f32.xlu0 %v3105_v42 }
 0xebe   : > { %3136 = vadd.xlane.f32.xlu0 %v3135_v50  ;;  %3109 = vmax.xlane.f32.xlu1 %v3108_v11 }
 0xec2   : > { %3142 = vadd.xlane.f32.xlu0 %v3141_v23  ;;  %3139 = vadd.xlane.f32.xlu1 %v3138_v9 }
 0xec6   : > { %3145 = vadd.xlane.f32.xlu1 %v3144_v34 }
 0xf3f   : > { %v3101_v41 = vpop.xlane.xlu0 %3100 }
 0xf40   : > { %v3115_v40 = vsub.f32 %v3029_v38, %v3101_v41 }
 0xf42   : > { %v3127_v1 = vmul.f32 1.442695, %v3115_v40 }
 0xf43   : > { %v3104_v3 = vpop.xlane.xlu1 %3103  ;;  %v3107_v4 = vpop.xlane.xlu0 %3106 }
 0xf44   : > { %v3117_v44 = vsub.f32 %v5022_v63, %v3107_v4 }
 0xf46   : > { %v3131_v59 = vmul.f32 1.442695, %v3117_v44  ;;  %v1151_v44 = vld [vmem:[%s5164_s11 + $0xc] sm:$0xf] }
 0xf47   : > { %v3110_v8 = vpop.xlane.xlu1 %3109  ;;  %v3137_v48 = vpop.xlane.xlu0 %3136 }
 0xf48   : > { %v3118_v55 = vsub.f32 %v5025_v24, %v3110_v8  ;;  %4240 = vpow2.f32 %v3131_v59  ;;  %v3116_v24 = vsub.f32 %v3032_v54, %v3104_v3  ;;  %v3384_v59 = vsel %vm2158_vm4, %v1151_v44, 0 }
 0xf49   : > { %4242 = vpow2.f32 %v3127_v1 }
 0xf4a   : > { %v3133_v47 = vmul.f32 1.442695, %v3118_v55  ;;  %v3129_v62 = vmul.f32 1.442695, %v3116_v24 }
 0xf4b   : > { %v3140_v53 = vpop.xlane.xlu1 %3139  ;;  %v3143_v19 = vpop.xlane.xlu0 %3142 }
 0xf4c   : > { %4244 = vpow2.f32 %v3133_v47 }
 0xf4d   : > { %4246 = vpow2.f32 %v3129_v62 }
 0xf4f   : > { %v3146_v20 = vpop.xlane.xlu1 %3145 }
 0xf50   : > { %4248 = vrcp.f32 %v3146_v20 }
 0xf51   : > { %4250 = vrcp.f32 %v3140_v53 }
 0xf52   : > { %4252 = vrcp.f32 %v3143_v19 }
 0xf53   : > { %4254 = vrcp.f32 %v3137_v48 }
 0xf55   : > { %v4241_v25 = vpop.eup %4240 }
 0xf56   : > { %v3153_v15 = vsel %vm1369_vm3, %v4241_v25, 0.0  ;;  %v5077_v5 = vpop.eup %4242 }
 0xf57   : > { %3154 = vadd.xlane.f32.xlu0 %v3153_v15  ;;  %v3147_v63 = vsel %vm1369_vm3, %v5077_v5, 0.0 }
 0xf59   : > { %v4245_v52 = vpop.eup %4244 }
 0xf5a   : > { %v3156_v56 = vsel %vm1369_vm3, %v4245_v52, 0.0  ;;  %v4247_v57 = vpop.eup %4246 }
 0xf5b   : > { %3157 = vadd.xlane.f32.xlu1 %v3156_v56  ;;  %3148 = vadd.xlane.f32.xlu0 %v3147_v63  ;;  %v3150_v51 = vsel %vm1369_vm3, %v4247_v57, 0.0 }
 0xf6c   : > { %3226 = vrot.lane.b32.xlu1 %v4626_v13, %s4284_s30 }
 0xf70   : > { %3273 = vrot.lane.b32.xlu1 %v4638_v31, %s4284_s30  ;;  %v4249_v31 = vpop.eup %4248 }
 0xf71   : > { %3179 = vrot.lane.b32.xlu0 %v4630_v6, %s4284_s30  ;;  %v4251_v6 = vpop.eup %4250  ;;  %v3170_v49 = vmul.f32 %v4249_v31, %v4239_v26 }
 0xf72   : > { %v4253_v43 = vpop.eup %4252  ;;  %v3168_v35 = vmul.f32 %v4251_v6, %v4235_v17 }
 0xf73   : > { %v4255_v38 = vpop.eup %4254  ;;  %v3169_v61 = vmul.f32 %v4253_v43, %v4237_v10 }
 0xf74   : > { %v3167_v42 = vmul.f32 %v4255_v38, %v5065_v18 }
 0xf75   : > { %v3176_v60 = vpack.c.bf16 %v3170_v49, %v3169_v61 }
 0xf76   : > { %v3175_v50 = vpack.c.bf16 %v3168_v35, %v3167_v42  ;;  %v3642_v35 = vld [vmem:[%s5165_s12] ss:$0 sm:$0xff] }
 0xf94   : > { %3151 = vadd.xlane.f32.xlu1 %v3150_v51 }
 0xfa5   : > { %3320 = vrot.lane.b32.xlu1 %v4643_v33, %s4284_s30 }
 0xfe0   : > { %v3155_v13 = vpop.xlane.xlu0 %3154 }
 0xfe4   : > { %v3158_v16 = vpop.xlane.xlu1 %3157  ;;  %v3149_v29 = vpop.xlane.xlu0 %3148 }
 0xfe5   : > { %4256 = vrcp.f32 %v3158_v16 }
 0xfe6   : > { %4258 = vrcp.f32 %v3155_v13 }
 0xfe7   : > { %4260 = vrcp.f32 %v3149_v29 }
 0xfe8   : > { %v3227_v54 = vpop.permute.xlu1 %3226  ;;  %v3180_v33 = vpop.permute.xlu0 %3179 }
 0xfe9   : > { %4008 = vmatpush3.bf16.msra.mxu0 %v3227_v54  ;;  %4002 = vmatpush3.bf16.msra.mxu1 %v3180_v33 }
 0xfea   : > { %4019 = vmatprep.subr.bf16.mxu0 %v4272_v30  ;;  %4013 = vmatprep.subr.bf16.mxu1 %v4272_v30 }
 0xfec   : > { %4010 = vmatmul.mubr.msk.bf16.vlgmr.msra.gmra.mxu0 %vm1369_vm3, %v3176_v60  ;;  %v3274_v11 = vpop.permute.xlu1 %3273  ;;  %4004 = vmatmul.mubr.msk.bf16.vlgmr.msra.gmra.mxu1 %vm1369_vm3, %v3175_v50 }
 0xfed   : > { %4021 = vmatprep.mubr.msk.bf16.mxu0 %vm4273_vm1, %v4272_v30  ;;  %4014 = vmatpush3.bf16.msra.mxu1 %v3274_v11 }
 0xfee   : > { %4015 = vmatprep.mubr.msk.bf16.mxu1 %vm4273_vm1, %v4272_v30  ;;  %4038 = vmatprep.subr.msk.bf16.mxu1 %vm2158_vm4, %v1151_v44 }
 0xff2   : > { %v4257_v18 = vpop.eup %4256 }
 0xff3   : > { %v4259_v10 = vpop.eup %4258  ;;  %v3174_v23 = vmul.f32 %v4257_v18, %v4245_v52 }
 0xff4   : > { %v3173_v26 = vmul.f32 %v4259_v10, %v4241_v25  ;;  %v4261_v41 = vpop.eup %4260 }
 0xff5   : > { %v3171_v3 = vmul.f32 %v4261_v41, %v5077_v5 }
 0xff6   : > { %v3178_v34 = vpack.c.bf16 %v3174_v23, %v3173_v26 }
0x101d   : > { %v3152_v17 = vpop.xlane.xlu1 %3151 }
0x101e   : > { %4262 = vrcp.f32 %v3152_v17 }
0x1021   : > { %v3321_v9 = vpop.permute.xlu1 %3320 }
0x1022   : > { %4020 = vmatpush3.bf16.msra.mxu0 %v3321_v9 }
0x1025   : > { %4022 = vmatmul.mubr.msk.bf16.vlgmr.msra.gmra.mxu0 %vm1369_vm3, %v3178_v34 }
0x102b   : > { %v4263_v40 = vpop.eup %4262 }
0x102c   : > { %v3172_v4 = vmul.f32 %v4263_v40, %v4247_v57 }
0x102e   : > { %v3177_v30 = vpack.c.bf16 %v3172_v4, %v3171_v3 }
0x1030   : > { %4016 = vmatmul.mubr.msk.bf16.vlgmr.msra.gmra.mxu1 %vm1369_vm3, %v3177_v30 }
0x1031   : > { %4026 = vmatpush3.bf16.msra.mxu1 %v3384_v59 }
0x10ac   : > { %v3266_v1 = vpop.f32.mrf.mxu0  ;;  %v3219_v8 = vpop.f32.mrf.mxu1 }
0x10ae   : > { %v4011_v55 = vpop.f32.mrf.mxu0  ;;  %v4005_v47 = vpop.f32.mrf.mxu1 }
0x10b0   : > { %v3269_v25 = vpop.f32.mrf.mxu0  ;;  %v3222_v15 = vpop.f32.mrf.mxu1 }
0x10b1   : > { %v3368_v5 = vpack.c.bf16 %v3269_v25, %v3266_v1  ;;  %v3367_v52 = vpack.c.bf16 %v3222_v15, %v3219_v8 }
0x10b2   : > { %v4012_v56 = vpop.f32.mrf.mxu0  ;;  %v4006_v63 = vpop.f32.mrf.mxu1 }
0x10b3   : > { %4027 = vmatprep.mubr.msk.bf16.mxu1 %vm1171_vm2, %v3367_v52 }
0x10b4   : > { %4028 = vmatmul.mubr.msk.bf16.vlgmr.msra.gmra.mxu1 %vm1171_vm2, %v3368_v5 }
0x10e5   : > { %v3360_v24 = vpop.f32.mrf.mxu0 }
0x10e7   : > { %v4023_v62 = vpop.f32.mrf.mxu0 }
0x10e9   : > { %v3363_v57 = vpop.f32.mrf.mxu0 }
0x10ea   : > { %v3370_v13 = vpack.c.bf16 %v3363_v57, %v3360_v24 }
0x10eb   : > { %v4024_v51 = vpop.f32.mrf.mxu0 }
0x10f0   : > { %v3313_v53 = vpop.f32.mrf.mxu1 }
0x10f2   : > { %v4017_v48 = vpop.f32.mrf.mxu1 }
0x10f4   : > { %v3316_v20 = vpop.f32.mrf.mxu1 }
0x10f5   : > { %v3369_v19 = vpack.c.bf16 %v3316_v20, %v3313_v53 }
0x10f6   : > { %v4018_v31 = vpop.f32.mrf.mxu1 }
0x10f7   : > { %4031 = vmatprep.mubr.msk.bf16.mxu1 %vm1171_vm2, %v3369_v19 }
0x10f8   : > { %4032 = vmatmul.mubr.msk.bf16.gmra.mxu1 %vm1171_vm2, %v3370_v13 }
0x1174   : > { %v4029_v6 = vpop.f32.mrf.mxu1 }
0x1175   : > { %v3453_v16 = vadd.f32 %v4029_v6, %v5033_v28 }
0x1176   : > { %v3420_v43 = vpop.f32.mrf.mxu1 }
0x1177   : > { %v3451_v29 = vadd.f32 %v3420_v43, %v5037_v39  ;;  %v3461_v38 = vadd.f32 %v3453_v16, %v4509_v37 }
0x1178   : > { %v4030_v49 = vpop.f32.mrf.mxu1 }
0x1179   : > { %v3459_v54 = vadd.f32 %v3451_v29, %v4506_v36  ;;  %v3454_v61 = vadd.f32 %v4030_v49, %v5041_v22  ;;  %v3476_v33 = vadd.f32 %v3642_v35, %v3461_v38 }
0x117a   : > { %v3423_v37 = vpop.f32.mrf.mxu1 }
0x117b   : > { %v3474_v28 = vadd.f32 %v3642_v35, %v3459_v54  ;;  %v3452_v39 = vadd.f32 %v3423_v37, %v5043_v46  ;;  %v3462_v42 = vadd.f32 %v3454_v61, %v4517_v0  ;;  %3484 = vst.msk [vmem:[%s5121_s20 + $0x10] sm:$0xff] %vm460_vm0, %v3476_v33 }
0x117d   : > { %3482 = vst.msk [vmem:[%s5121_s20] sm:$0xff] %vm460_vm0, %v3474_v28  ;;  %v3460_v36 = vadd.f32 %v3452_v39, %v4514_v45  ;;  %v3477_v60 = vadd.f32 %v3642_v35, %v3462_v42 }
0x117f   : > { %v3475_v22 = vadd.f32 %v3642_v35, %v3460_v36  ;;  %3485 = vst.msk [vmem:[%s5121_s20 + $0x18] sm:$0xff] %vm460_vm0, %v3477_v60 }
0x1181   : > { %3483 = vst.msk [vmem:[%s5121_s20 + $0x8] sm:$0xff] %vm460_vm0, %v3475_v22 }
0x11b8   : > { %v4033_v50 = vpop.f32.mrf.mxu1 }
0x11b9   : > { %v3457_v46 = vadd.f32 %v4033_v50, %v5049_v14 }
0x11ba   : > { %v3436_v11 = vpop.f32.mrf.mxu1 }
0x11bb   : > { %v3455_v0 = vadd.f32 %v3436_v11, %v5053_v27  ;;  %v3465_v45 = vadd.f32 %v3457_v46, %v4529_v21 }
0x11bc   : > { %v4034_v18 = vpop.f32.mrf.mxu1 }
0x11bd   : > { %v3463_v17 = vadd.f32 %v3455_v0, %v4524_v2  ;;  %v3458_v10 = vadd.f32 %v4034_v18, %v5057_v12  ;;  %v3480_v34 = vadd.f32 %v3642_v35, %v3465_v45 }
0x11be   : > { %v3439_v23 = vpop.f32.mrf.mxu1 }
0x11bf   : > { %v3478_v9 = vadd.f32 %v3642_v35, %v3463_v17  ;;  %v3456_v26 = vadd.f32 %v3439_v23, %v5059_v32  ;;  %v3466_v41 = vadd.f32 %v3458_v10, %v4537_v7  ;;  %3488 = vst.msk [vmem:[%s5121_s20 + $0x30] sm:$0xff] %vm460_vm0, %v3480_v34 }
0x11c1   : > { %3486 = vst.msk [vmem:[%s5121_s20 + $0x20] sm:$0xff] %vm460_vm0, %v3478_v9  ;;  %v3464_v14 = vadd.f32 %v3456_v26, %v4534_v58  ;;  %v3481_v21 = vadd.f32 %v3642_v35, %v3466_v41 }
0x11c3   : > { %v3479_v27 = vadd.f32 %v3642_v35, %v3464_v14  ;;  %3489 = vst.msk [vmem:[%s5121_s20 + $0x38] sm:$0xff] %vm460_vm0, %v3481_v21 }
0x11c5   : > { %3487 = vst.msk [vmem:[%s5121_s20 + $0x28] sm:$0xff] %vm460_vm0, %v3479_v27 }
0x11c6 PF: > { %s23_s25 = sadd.s32 1, %s4270_s25  }
0x11c7   : > { %p20_p4 = scmp.ge.s32.totalorder %s23_s25, 4  }
0x11c9   :  { %22 = sbr.rel (!%p20_p4) target bundleno = 1 (0x1), region = 102 }

</bundles_post_ra>
